<compile_context>
chip_gen: v7x
topology: tpu7x:2x2x1
jax: 0.10.0
libtpu: 0.0.40
codegen_flags: <defaults>
</compile_context>

<pallas_src>
import functools

import jax
import jax.numpy as jnp
import numpy as np
from jax import lax
from jax.experimental import pallas as pl
from jax.experimental.pallas import tpu as pltpu


def _gelu_exact(x):
    # PyTorch nn.GELU() default = exact erf formulation (kept for parity).
    return 0.5 * x * (1.0 + lax.erf(x * (1.0 / np.sqrt(2.0))))


def _round_up(v, m):
    return ((v + m - 1) // m) * m


def _pad_to(a, shape):
    pads = [(0, t - s) for s, t in zip(a.shape, shape)]
    if all(p == (0, 0) for p in pads):
        return a
    return jnp.pad(a, pads)


def _spec(shape, index_map, *, single_buffer=False):
    """BlockSpec; single-buffer constant-index operands when supported."""
    if single_buffer and hasattr(pl, "Buffered"):
        try:
            return pl.BlockSpec(shape, index_map, pipeline_mode=pl.Buffered(1))
        except TypeError:
            pass  # older API without pipeline_mode -> default double-buffering
    return pl.BlockSpec(shape, index_map)


def _dino_projector_kernel(x_ref, w1_ref, b1_ref, w2_ref, b2_ref,
                           w3_ref, b3_ref, weff_ref, o_ref, h_ref):
    # Grid = (row tiles i, projection tiles j). The MLP + L2-normalize only
    # runs on the first projection tile; the result is cached in VMEM scratch
    # h_ref (already in matmul dtype) and reused for every subsequent P tile of
    # the same row tile (axis 1 is "arbitrary" -> sequential, so this is safe).
    @pl.when(pl.program_id(1) == 0)
    def _compute_mlp():
        x = x_ref[...]                                    # already matmul dtype
        h = jnp.dot(x, w1_ref[...],
                    preferred_element_type=jnp.float32) + b1_ref[...]
        h = _gelu_exact(h)
        h = jnp.dot(h.astype(w2_ref.dtype), w2_ref[...],
                    preferred_element_type=jnp.float32) + b2_ref[...]
        h = _gelu_exact(h)
        h = jnp.dot(h.astype(w3_ref.dtype), w3_ref[...],
                    preferred_element_type=jnp.float32) + b3_ref[...]
        h = _gelu_exact(h)
        # F.normalize(dim=-1): x / max(||x||_2, 1e-12)   (f32 math)
        row_norm = jnp.sqrt(jnp.sum(h * h, axis=-1, keepdims=True))
        h_ref[...] = (h / jnp.maximum(row_norm, 1e-12)).astype(h_ref.dtype)

    # Weight-norm linear: w_eff^T precomputed in the wrapper. No per-step cast.
    o_ref[...] = jnp.dot(h_ref[...], weff_ref[...],
                         preferred_element_type=jnp.float32).astype(o_ref.dtype)


@functools.partial(jax.jit, static_argnames=("tile_m", "tile_p", "matmul_dtype",
                                             "single_buffer_weights"))
def dino_projector(x, params, *, tile_m=256, tile_p=2048,
                   matmul_dtype=jnp.bfloat16, single_buffer_weights=True):
    """x: (..., embedding_dim) -> (..., projection_dim)."""
    w1t, b1, w2t, b2, w3t, b3, vt, g = params
    E, H = w1t.shape
    B = w3t.shape[1]
    P = vt.shape[1]
    assert tile_m % 8 == 0 and tile_p % 128 == 0

    lead = x.shape[:-1]
    n = int(np.prod(lead)) if lead else 1

    # --- Hoist weight-norm effective weight out of the kernel (loop-invariant)
    vtf = vt.astype(jnp.float32)
    col_norm = jnp.sqrt(jnp.sum(vtf * vtf, axis=0, keepdims=True))
    w_eff_t = vtf * (g.astype(jnp.float32).reshape(1, P) / col_norm)

    # --- Pad to lane/sublane friendly sizes (zero padding is semantics-safe:
    #     GELU(0) == 0, zero weight rows/cols contribute nothing, L2 norm is
    #     unchanged by zero tail entries; padded rows/cols are sliced off).
    E_p, H_p, B_p = (_round_up(d, 128) for d in (E, H, B))
    P_128 = _round_up(P, 128)
    tp = max(128, (min(tile_p, P_128) // 128) * 128)
    P_p = _round_up(P_128, tp)                 # pad P up; never shrink the tile
    n_p = _round_up(max(n, 1), tile_m)

    x_pad = _pad_to(x.reshape(n, E).astype(jnp.float32),
                    (n_p, E_p)).astype(matmul_dtype)
    w1p = _pad_to(w1t.astype(jnp.float32), (E_p, H_p)).astype(matmul_dtype)
    b1p = _pad_to(b1.astype(jnp.float32).reshape(1, H), (1, H_p))
    w2p = _pad_to(w2t.astype(jnp.float32), (H_p, H_p)).astype(matmul_dtype)
    b2p = _pad_to(b2.astype(jnp.float32).reshape(1, H), (1, H_p))
    w3p = _pad_to(w3t.astype(jnp.float32), (H_p, B_p)).astype(matmul_dtype)
    b3p = _pad_to(b3.astype(jnp.float32).reshape(1, B), (1, B_p))
    weffp = _pad_to(w_eff_t, (B_p, P_p)).astype(matmul_dtype)

    gm = n_p // tile_m
    gp = P_p // tp

    const = lambda i, j: (0, 0)
    sb = single_buffer_weights
    in_specs = [
        pl.BlockSpec((tile_m, E_p), lambda i, j: (i, 0)),     # x rows
        _spec((E_p, H_p), const, single_buffer=sb),           # W1^T
        _spec((1, H_p), const, single_buffer=sb),             # b1
        _spec((H_p, H_p), const, single_buffer=sb),           # W2^T
        _spec((1, H_p), const, single_buffer=sb),             # b2
        _spec((H_p, B_p), const, single_buffer=sb),           # W3^T
        _spec((1, B_p), const, single_buffer=sb),             # b3
        pl.BlockSpec((B_p, tp), lambda i, j: (0, j)),         # w_eff^T (P tile)
    ]
    out_spec = pl.BlockSpec((tile_m, tp), lambda i, j: (i, j))

    # --- VMEM budget: double-buffered streams counted twice, single-buffered
    #     weights once, plus h scratch and the f32 MLP intermediates.
    itm = jnp.dtype(matmul_dtype).itemsize
    out_it = jnp.dtype(x.dtype).itemsize
    wbuf = 1 if sb else 2
    block_bytes = (
        2 * tile_m * E_p * itm                                # x tile (x2)
        + wbuf * (E_p * H_p + H_p * H_p + H_p * B_p) * itm    # W1, W2, W3
        + wbuf * (2 * H_p + B_p) * 4                          # biases (f32)
        + 2 * B_p * tp * itm                                  # weff tile (x2)
        + 2 * tile_m * tp * out_it                            # out tile (x2)
        + tile_m * B_p * itm                                  # h scratch
        + 2 * tile_m * H_p * 4 + tile_m * B_p * 4             # f32 MLP temps
    )
    vmem_limit = int(min(max(block_bytes + (4 << 20), 32 << 20), 64 << 20))

    flops = 2 * n_p * (E_p * H_p + H_p * H_p + H_p * B_p + B_p * P_p)
    transcendentals = n_p * (2 * H_p + B_p)
    bytes_accessed = int(
        x_pad.size * itm
        + (w1p.size + w2p.size + w3p.size) * itm
        + (b1p.size + b2p.size + b3p.size) * 4
        + gm * weffp.size * itm          # weff re-streamed once per row tile
        + n_p * P_p * out_it)            # padded output writeback

    out = pl.pallas_call(
        _dino_projector_kernel,
        out_shape=jax.ShapeDtypeStruct((n_p, P_p), x.dtype),
        grid_spec=pltpu.PrefetchScalarGridSpec(
            num_scalar_prefetch=0,
            grid=(gm, gp),
            in_specs=in_specs,
            out_specs=out_spec,
            scratch_shapes=[pltpu.VMEM((tile_m, B_p), matmul_dtype)],
        ),
        compiler_params=pltpu.CompilerParams(
            dimension_semantics=("parallel", "arbitrary"),
            vmem_limit_bytes=vmem_limit,
        ),
        cost_estimate=pl.CostEstimate(
            flops=int(flops),
            transcendentals=int(transcendentals),
            bytes_accessed=bytes_accessed,
        ),
    )(x_pad, w1p, b1p, w2p, b2p, w3p, b3p, weffp)

    out = out[:n, :P]
    return out.reshape(*lead, P)


def init_params(key, embedding_dim, hidden_dim, bottleneck_dim, projection_dim):
    """Deterministic synthetic parameters (num_layers=3 configuration)."""
    ks = jax.random.split(key, 8)
    scale = 0.05
    w1 = jax.random.normal(ks[0], (hidden_dim, embedding_dim), jnp.float32) * scale
    b1 = jax.random.normal(ks[1], (hidden_dim,), jnp.float32) * scale
    w2 = jax.random.normal(ks[2], (hidden_dim, hidden_dim), jnp.float32) * scale
    b2 = jax.random.normal(ks[3], (hidden_dim,), jnp.float32) * scale
    w3 = jax.random.normal(ks[4], (bottleneck_dim, hidden_dim), jnp.float32) * scale
    b3 = jax.random.normal(ks[5], (bottleneck_dim,), jnp.float32) * scale
    v = jax.random.normal(ks[6], (projection_dim, bottleneck_dim), jnp.float32) * scale
    g = jax.random.normal(ks[7], (projection_dim,), jnp.float32) * scale + 1.0
    # Glue: transpose PyTorch (out, in) weights to (in, out); biases/g stay 1-D.
    return (w1.T, b1, w2.T, b2, w3.T, b3, v.T, g)


def reference(x, params):
    """Pure-JAX reference matching the PyTorch forward."""
    w1t, b1, w2t, b2, w3t, b3, vt, g = params
    h = jax.nn.gelu(x @ w1t + b1, approximate=False)
    h = jax.nn.gelu(h @ w2t + b2, approximate=False)
    h = jax.nn.gelu(h @ w3t + b3, approximate=False)
    h = h / jnp.maximum(jnp.linalg.norm(h, axis=-1, keepdims=True), 1e-12)
    w_eff_t = vt * (g / jnp.linalg.norm(vt, axis=0, keepdims=True))
    return h @ w_eff_t


if __name__ == "__main__":
    embedding_dim, hidden_dim, bottleneck_dim, projection_dim = 32, 64, 32, 64
    batch, seq = 2, 8

    key = jax.random.PRNGKey(0)
    kx, kp = jax.random.split(key)
    x = jax.random.normal(kx, (batch, seq, embedding_dim), jnp.float32)
    params = init_params(kp, embedding_dim, hidden_dim, bottleneck_dim,
                         projection_dim)

    ref = reference(x, params)

    def _run(**kw):
        try:
            return jax.block_until_ready(dino_projector(x, params, **kw))
        except Exception:
            # Fallback if this jax version rejects single-buffered pipeline_mode.
            return jax.block_until_ready(
                dino_projector(x, params, single_buffer_weights=False, **kw))

    # Default bf16 MXU fast path: loose tolerance vs the f32 reference
    # (intermediate activations are also cast to bf16 for the dots).
    out_bf16 = _run()
    assert out_bf16.shape == (batch, seq, projection_dim)
    np.testing.assert_allclose(np.asarray(out_bf16), np.asarray(ref),
                               rtol=5e-2, atol=5e-2)

    # f32 matmul path: strict numerical parity with the PyTorch-style forward.
    out_f32 = _run(matmul_dtype=jnp.float32)
    np.testing.assert_allclose(np.asarray(out_f32), np.asarray(ref),
                               rtol=1e-5, atol=1e-5)

    print("KERNEL_OK")
</pallas_src>

<mosaic_0001>
module attributes {stable_mosaic.version = 11 : i64} {
  func.func @_dino_projector_kernel(%arg0: i32, %arg1: i32, %arg2: memref<256x128xbf16, #tpu.memory_space<vmem>>, %arg3: memref<128x128xbf16, #tpu.memory_space<vmem>>, %arg4: memref<1x128xf32, #tpu.memory_space<vmem>>, %arg5: memref<128x128xbf16, #tpu.memory_space<vmem>>, %arg6: memref<1x128xf32, #tpu.memory_space<vmem>>, %arg7: memref<128x128xbf16, #tpu.memory_space<vmem>>, %arg8: memref<1x128xf32, #tpu.memory_space<vmem>>, %arg9: memref<128x128xbf16, #tpu.memory_space<vmem>>, %arg10: memref<256x128xf32, #tpu.memory_space<vmem>>, %arg11: memref<256x128xbf16, #tpu.memory_space<vmem>>) attributes {dimension_semantics = [#tpu.dimension_semantics<parallel>, #tpu.dimension_semantics<arbitrary>], iteration_bounds = array<i64: 1, 1>, scalar_prefetch = 0 : i64, scratch_operands = 1 : i64, tpu.core_type = #tpu.core_type<tc>, window_params = [{transform_indices = @transform_0, window_bounds = array<i64: 256, 128>}, {pipeline_mode = #tpu.pipeline_mode<synchronous>, transform_indices = @transform_1, window_bounds = array<i64: 128, 128>}, {pipeline_mode = #tpu.pipeline_mode<synchronous>, transform_indices = @transform_2, window_bounds = array<i64: 1, 128>}, {pipeline_mode = #tpu.pipeline_mode<synchronous>, transform_indices = @transform_3, window_bounds = array<i64: 128, 128>}, {pipeline_mode = #tpu.pipeline_mode<synchronous>, transform_indices = @transform_4, window_bounds = array<i64: 1, 128>}, {pipeline_mode = #tpu.pipeline_mode<synchronous>, transform_indices = @transform_5, window_bounds = array<i64: 128, 128>}, {pipeline_mode = #tpu.pipeline_mode<synchronous>, transform_indices = @transform_6, window_bounds = array<i64: 1, 128>}, {transform_indices = @transform_7, window_bounds = array<i64: 128, 128>}, {transform_indices = @transform_8, window_bounds = array<i64: 256, 128>}]} {
    %c0_i32 = arith.constant 0 : i32
    %0 = arith.cmpi eq, %arg1, %c0_i32 : i32
    %1 = arith.extui %0 : i1 to i32
    %c0_i32_0 = arith.constant 0 : i32
    %2 = arith.cmpi ne, %1, %c0_i32_0 : i32
    scf.if %2 {
      %c0_6 = arith.constant 0 : index
      %c0_7 = arith.constant 0 : index
      %7 = vector.load %arg2[%c0_6, %c0_7] : memref<256x128xbf16, #tpu.memory_space<vmem>>, vector<256x128xbf16>
      %c0_8 = arith.constant 0 : index
      %c0_9 = arith.constant 0 : index
      %8 = vector.load %arg3[%c0_8, %c0_9] : memref<128x128xbf16, #tpu.memory_space<vmem>>, vector<128x128xbf16>
      %cst_10 = arith.constant dense<0.000000e+00> : vector<256x128xf32>
      %9 = tpu.matmul %7, %8, %cst_10 {dimension_numbers = #tpu.dot_dimension_numbers<[1], [0], [0], [1], [0, 0, 1, 1], [], []>} : vector<256x128xbf16>, vector<128x128xbf16>, vector<256x128xf32> -> vector<256x128xf32>
      %c0_11 = arith.constant 0 : index
      %c0_12 = arith.constant 0 : index
      %10 = vector.load %arg4[%c0_11, %c0_12] : memref<1x128xf32, #tpu.memory_space<vmem>>, vector<1x128xf32>
      %11 = vector.broadcast %10 : vector<1x128xf32> to vector<256x128xf32>
      %12 = arith.addf %9, %11 : vector<256x128xf32>
      %cst_13 = arith.constant 5.000000e-01 : f32
      %13 = vector.broadcast %cst_13 : f32 to vector<256x128xf32>
      %14 = arith.mulf %13, %12 : vector<256x128xf32>
      %cst_14 = arith.constant 0.707106769 : f32
      %15 = vector.broadcast %cst_14 : f32 to vector<256x128xf32>
      %16 = arith.mulf %12, %15 : vector<256x128xf32>
      %17 = math.erf %16 : vector<256x128xf32>
      %cst_15 = arith.constant 1.000000e+00 : f32
      %18 = vector.broadcast %cst_15 : f32 to vector<256x128xf32>
      %19 = arith.addf %18, %17 : vector<256x128xf32>
      %20 = arith.mulf %14, %19 : vector<256x128xf32>
      %21 = arith.truncf %20 : vector<256x128xf32> to vector<256x128xbf16>
      %c0_16 = arith.constant 0 : index
      %c0_17 = arith.constant 0 : index
      %22 = vector.load %arg5[%c0_16, %c0_17] : memref<128x128xbf16, #tpu.memory_space<vmem>>, vector<128x128xbf16>
      %cst_18 = arith.constant dense<0.000000e+00> : vector<256x128xf32>
      %23 = tpu.matmul %21, %22, %cst_18 {dimension_numbers = #tpu.dot_dimension_numbers<[1], [0], [0], [1], [0, 0, 1, 1], [], []>} : vector<256x128xbf16>, vector<128x128xbf16>, vector<256x128xf32> -> vector<256x128xf32>
      %c0_19 = arith.constant 0 : index
      %c0_20 = arith.constant 0 : index
      %24 = vector.load %arg6[%c0_19, %c0_20] : memref<1x128xf32, #tpu.memory_space<vmem>>, vector<1x128xf32>
      %25 = vector.broadcast %24 : vector<1x128xf32> to vector<256x128xf32>
      %26 = arith.addf %23, %25 : vector<256x128xf32>
      %cst_21 = arith.constant 5.000000e-01 : f32
      %27 = vector.broadcast %cst_21 : f32 to vector<256x128xf32>
      %28 = arith.mulf %27, %26 : vector<256x128xf32>
      %cst_22 = arith.constant 0.707106769 : f32
      %29 = vector.broadcast %cst_22 : f32 to vector<256x128xf32>
      %30 = arith.mulf %26, %29 : vector<256x128xf32>
      %31 = math.erf %30 : vector<256x128xf32>
      %cst_23 = arith.constant 1.000000e+00 : f32
      %32 = vector.broadcast %cst_23 : f32 to vector<256x128xf32>
      %33 = arith.addf %32, %31 : vector<256x128xf32>
      %34 = arith.mulf %28, %33 : vector<256x128xf32>
      %35 = arith.truncf %34 : vector<256x128xf32> to vector<256x128xbf16>
      %c0_24 = arith.constant 0 : index
      %c0_25 = arith.constant 0 : index
      %36 = vector.load %arg7[%c0_24, %c0_25] : memref<128x128xbf16, #tpu.memory_space<vmem>>, vector<128x128xbf16>
      %cst_26 = arith.constant dense<0.000000e+00> : vector<256x128xf32>
      %37 = tpu.matmul %35, %36, %cst_26 {dimension_numbers = #tpu.dot_dimension_numbers<[1], [0], [0], [1], [0, 0, 1, 1], [], []>} : vector<256x128xbf16>, vector<128x128xbf16>, vector<256x128xf32> -> vector<256x128xf32>
      %c0_27 = arith.constant 0 : index
      %c0_28 = arith.constant 0 : index
      %38 = vector.load %arg8[%c0_27, %c0_28] : memref<1x128xf32, #tpu.memory_space<vmem>>, vector<1x128xf32>
      %39 = vector.broadcast %38 : vector<1x128xf32> to vector<256x128xf32>
      %40 = arith.addf %37, %39 : vector<256x128xf32>
      %cst_29 = arith.constant 5.000000e-01 : f32
      %41 = vector.broadcast %cst_29 : f32 to vector<256x128xf32>
      %42 = arith.mulf %41, %40 : vector<256x128xf32>
      %cst_30 = arith.constant 0.707106769 : f32
      %43 = vector.broadcast %cst_30 : f32 to vector<256x128xf32>
      %44 = arith.mulf %40, %43 : vector<256x128xf32>
      %45 = math.erf %44 : vector<256x128xf32>
      %cst_31 = arith.constant 1.000000e+00 : f32
      %46 = vector.broadcast %cst_31 : f32 to vector<256x128xf32>
      %47 = arith.addf %46, %45 : vector<256x128xf32>
      %48 = arith.mulf %42, %47 : vector<256x128xf32>
      %49 = arith.mulf %48, %48 : vector<256x128xf32>
      %cst_32 = arith.constant dense<0.000000e+00> : vector<256xf32>
      %50 = vector.multi_reduction <add>, %49, %cst_32 [1] : vector<256x128xf32> to vector<256xf32>
      %51 = vector.shape_cast %50 : vector<256xf32> to vector<256x1xf32>
      %52 = math.sqrt %51 : vector<256x1xf32>
      %cst_33 = arith.constant 9.99999996E-13 : f32
      %53 = vector.broadcast %cst_33 : f32 to vector<256x1xf32>
      %54 = arith.maximumf %52, %53 : vector<256x1xf32>
      %55 = vector.broadcast %54 : vector<256x1xf32> to vector<256x128xf32>
      %56 = arith.divf %48, %55 : vector<256x128xf32>
      %57 = arith.truncf %56 : vector<256x128xf32> to vector<256x128xbf16>
      %c0_34 = arith.constant 0 : index
      %c0_35 = arith.constant 0 : index
      %58 = vector.load %arg11[%c0_34, %c0_35] : memref<256x128xbf16, #tpu.memory_space<vmem>>, vector<256x128xbf16>
      tpu.vector_store %arg11[%c0_34, %c0_35], %57 {strides = array<i32>} : memref<256x128xbf16, #tpu.memory_space<vmem>>, vector<256x128xbf16>,
    } else {
    }
    %c0 = arith.constant 0 : index
    %c0_1 = arith.constant 0 : index
    %3 = vector.load %arg11[%c0, %c0_1] : memref<256x128xbf16, #tpu.memory_space<vmem>>, vector<256x128xbf16>
    %c0_2 = arith.constant 0 : index
    %c0_3 = arith.constant 0 : index
    %4 = vector.load %arg9[%c0_2, %c0_3] : memref<128x128xbf16, #tpu.memory_space<vmem>>, vector<128x128xbf16>
    %cst = arith.constant dense<0.000000e+00> : vector<256x128xf32>
    %5 = tpu.matmul %3, %4, %cst {dimension_numbers = #tpu.dot_dimension_numbers<[1], [0], [0], [1], [0, 0, 1, 1], [], []>} : vector<256x128xbf16>, vector<128x128xbf16>, vector<256x128xf32> -> vector<256x128xf32>
    %c0_4 = arith.constant 0 : index
    %c0_5 = arith.constant 0 : index
    %6 = vector.load %arg10[%c0_4, %c0_5] : memref<256x128xf32, #tpu.memory_space<vmem>>, vector<256x128xf32>
    tpu.vector_store %arg10[%c0_4, %c0_5], %5 {strides = array<i32>} : memref<256x128xf32, #tpu.memory_space<vmem>>, vector<256x128xf32>,
    return
  }
  func.func @transform_0(%arg0: i32, %arg1: i32) -> (i32, i32) {
    %c0_i32 = arith.constant 0 : i32
    %c0_i32_0 = arith.constant 0 : i32
    return %arg0, %c0_i32 : i32, i32
  }
  func.func @transform_1(%arg0: i32, %arg1: i32) -> (i32, i32) {
    %c0_i32 = arith.constant 0 : i32
    %c0_i32_0 = arith.constant 0 : i32
    %c0_i32_1 = arith.constant 0 : i32
    return %c0_i32, %c0_i32_0 : i32, i32
  }
  func.func @transform_2(%arg0: i32, %arg1: i32) -> (i32, i32) {
    %c0_i32 = arith.constant 0 : i32
    %c0_i32_0 = arith.constant 0 : i32
    %c0_i32_1 = arith.constant 0 : i32
    return %c0_i32, %c0_i32_0 : i32, i32
  }
  func.func @transform_3(%arg0: i32, %arg1: i32) -> (i32, i32) {
    %c0_i32 = arith.constant 0 : i32
    %c0_i32_0 = arith.constant 0 : i32
    %c0_i32_1 = arith.constant 0 : i32
    return %c0_i32, %c0_i32_0 : i32, i32
  }
  func.func @transform_4(%arg0: i32, %arg1: i32) -> (i32, i32) {
    %c0_i32 = arith.constant 0 : i32
    %c0_i32_0 = arith.constant 0 : i32
    %c0_i32_1 = arith.constant 0 : i32
    return %c0_i32, %c0_i32_0 : i32, i32
  }
  func.func @transform_5(%arg0: i32, %arg1: i32) -> (i32, i32) {
    %c0_i32 = arith.constant 0 : i32
    %c0_i32_0 = arith.constant 0 : i32
    %c0_i32_1 = arith.constant 0 : i32
    return %c0_i32, %c0_i32_0 : i32, i32
  }
  func.func @transform_6(%arg0: i32, %arg1: i32) -> (i32, i32) {
    %c0_i32 = arith.constant 0 : i32
    %c0_i32_0 = arith.constant 0 : i32
    %c0_i32_1 = arith.constant 0 : i32
    return %c0_i32, %c0_i32_0 : i32, i32
  }
  func.func @transform_7(%arg0: i32, %arg1: i32) -> (i32, i32) {
    %c0_i32 = arith.constant 0 : i32
    %c0_i32_0 = arith.constant 0 : i32
    return %c0_i32, %arg1 : i32, i32
  }
  func.func @transform_8(%arg0: i32, %arg1: i32) -> (i32, i32) {
    %c0_i32 = arith.constant 0 : i32
    return %arg0, %arg1 : i32, i32
  }
}

module attributes {stable_mosaic.version = 11 : i64} {
  func.func @_dino_projector_kernel(%arg0: i32, %arg1: i32, %arg2: memref<256x128xbf16, #tpu.memory_space<vmem>>, %arg3: memref<128x128xbf16, #tpu.memory_space<vmem>>, %arg4: memref<1x128xf32, #tpu.memory_space<vmem>>, %arg5: memref<128x128xbf16, #tpu.memory_space<vmem>>, %arg6: memref<1x128xf32, #tpu.memory_space<vmem>>, %arg7: memref<128x128xbf16, #tpu.memory_space<vmem>>, %arg8: memref<1x128xf32, #tpu.memory_space<vmem>>, %arg9: memref<128x128xbf16, #tpu.memory_space<vmem>>, %arg10: memref<256x128xf32, #tpu.memory_space<vmem>>, %arg11: memref<256x128xbf16, #tpu.memory_space<vmem>>) attributes {dimension_semantics = [#tpu.dimension_semantics<parallel>, #tpu.dimension_semantics<arbitrary>], iteration_bounds = array<i64: 1, 1>, scalar_prefetch = 0 : i64, scratch_operands = 1 : i64, tpu.core_type = #tpu.core_type<tc>, window_params = [{transform_indices = @transform_0, window_bounds = array<i64: 256, 128>}, {pipeline_mode = #tpu.pipeline_mode<synchronous>, transform_indices = @transform_1, window_bounds = array<i64: 128, 128>}, {pipeline_mode = #tpu.pipeline_mode<synchronous>, transform_indices = @transform_2, window_bounds = array<i64: 1, 128>}, {pipeline_mode = #tpu.pipeline_mode<synchronous>, transform_indices = @transform_3, window_bounds = array<i64: 128, 128>}, {pipeline_mode = #tpu.pipeline_mode<synchronous>, transform_indices = @transform_4, window_bounds = array<i64: 1, 128>}, {pipeline_mode = #tpu.pipeline_mode<synchronous>, transform_indices = @transform_5, window_bounds = array<i64: 128, 128>}, {pipeline_mode = #tpu.pipeline_mode<synchronous>, transform_indices = @transform_6, window_bounds = array<i64: 1, 128>}, {transform_indices = @transform_7, window_bounds = array<i64: 128, 128>}, {transform_indices = @transform_8, window_bounds = array<i64: 256, 128>}]} {
    %c0_i32 = arith.constant 0 : i32
    %0 = arith.cmpi eq, %arg1, %c0_i32 : i32
    %1 = arith.extui %0 : i1 to i32
    %c0_i32_0 = arith.constant 0 : i32
    %2 = arith.cmpi ne, %1, %c0_i32_0 : i32
    scf.if %2 {
      %c0_6 = arith.constant 0 : index
      %c0_7 = arith.constant 0 : index
      %7 = vector.load %arg2[%c0_6, %c0_7] : memref<256x128xbf16, #tpu.memory_space<vmem>>, vector<256x128xbf16>
      %c0_8 = arith.constant 0 : index
      %c0_9 = arith.constant 0 : index
      %8 = vector.load %arg3[%c0_8, %c0_9] : memref<128x128xbf16, #tpu.memory_space<vmem>>, vector<128x128xbf16>
      %cst_10 = arith.constant dense<0.000000e+00> : vector<256x128xf32>
      %9 = tpu.matmul %7, %8, %cst_10 {dimension_numbers = #tpu.dot_dimension_numbers<[1], [0], [0], [1], [0, 0, 1, 1], [], []>} : vector<256x128xbf16>, vector<128x128xbf16>, vector<256x128xf32> -> vector<256x128xf32>
      %c0_11 = arith.constant 0 : index
      %c0_12 = arith.constant 0 : index
      %10 = vector.load %arg4[%c0_11, %c0_12] : memref<1x128xf32, #tpu.memory_space<vmem>>, vector<1x128xf32>
      %11 = vector.broadcast %10 : vector<1x128xf32> to vector<256x128xf32>
      %12 = arith.addf %9, %11 : vector<256x128xf32>
      %cst_13 = arith.constant 5.000000e-01 : f32
      %13 = vector.broadcast %cst_13 : f32 to vector<256x128xf32>
      %14 = arith.mulf %13, %12 : vector<256x128xf32>
      %cst_14 = arith.constant 0.707106769 : f32
      %15 = vector.broadcast %cst_14 : f32 to vector<256x128xf32>
      %16 = arith.mulf %12, %15 : vector<256x128xf32>
      %17 = math.erf %16 : vector<256x128xf32>
      %cst_15 = arith.constant 1.000000e+00 : f32
      %18 = vector.broadcast %cst_15 : f32 to vector<256x128xf32>
      %19 = arith.addf %18, %17 : vector<256x128xf32>
      %20 = arith.mulf %14, %19 : vector<256x128xf32>
      %21 = arith.truncf %20 : vector<256x128xf32> to vector<256x128xbf16>
      %c0_16 = arith.constant 0 : index
      %c0_17 = arith.constant 0 : index
      %22 = vector.load %arg5[%c0_16, %c0_17] : memref<128x128xbf16, #tpu.memory_space<vmem>>, vector<128x128xbf16>
      %cst_18 = arith.constant dense<0.000000e+00> : vector<256x128xf32>
      %23 = tpu.matmul %21, %22, %cst_18 {dimension_numbers = #tpu.dot_dimension_numbers<[1], [0], [0], [1], [0, 0, 1, 1], [], []>} : vector<256x128xbf16>, vector<128x128xbf16>, vector<256x128xf32> -> vector<256x128xf32>
      %c0_19 = arith.constant 0 : index
      %c0_20 = arith.constant 0 : index
      %24 = vector.load %arg6[%c0_19, %c0_20] : memref<1x128xf32, #tpu.memory_space<vmem>>, vector<1x128xf32>
      %25 = vector.broadcast %24 : vector<1x128xf32> to vector<256x128xf32>
      %26 = arith.addf %23, %25 : vector<256x128xf32>
      %cst_21 = arith.constant 5.000000e-01 : f32
      %27 = vector.broadcast %cst_21 : f32 to vector<256x128xf32>
      %28 = arith.mulf %27, %26 : vector<256x128xf32>
      %cst_22 = arith.constant 0.707106769 : f32
      %29 = vector.broadcast %cst_22 : f32 to vector<256x128xf32>
      %30 = arith.mulf %26, %29 : vector<256x128xf32>
      %31 = math.erf %30 : vector<256x128xf32>
      %cst_23 = arith.constant 1.000000e+00 : f32
      %32 = vector.broadcast %cst_23 : f32 to vector<256x128xf32>
      %33 = arith.addf %32, %31 : vector<256x128xf32>
      %34 = arith.mulf %28, %33 : vector<256x128xf32>
      %35 = arith.truncf %34 : vector<256x128xf32> to vector<256x128xbf16>
      %c0_24 = arith.constant 0 : index
      %c0_25 = arith.constant 0 : index
      %36 = vector.load %arg7[%c0_24, %c0_25] : memref<128x128xbf16, #tpu.memory_space<vmem>>, vector<128x128xbf16>
      %cst_26 = arith.constant dense<0.000000e+00> : vector<256x128xf32>
      %37 = tpu.matmul %35, %36, %cst_26 {dimension_numbers = #tpu.dot_dimension_numbers<[1], [0], [0], [1], [0, 0, 1, 1], [], []>} : vector<256x128xbf16>, vector<128x128xbf16>, vector<256x128xf32> -> vector<256x128xf32>
      %c0_27 = arith.constant 0 : index
      %c0_28 = arith.constant 0 : index
      %38 = vector.load %arg8[%c0_27, %c0_28] : memref<1x128xf32, #tpu.memory_space<vmem>>, vector<1x128xf32>
      %39 = vector.broadcast %38 : vector<1x128xf32> to vector<256x128xf32>
      %40 = arith.addf %37, %39 : vector<256x128xf32>
      %cst_29 = arith.constant 5.000000e-01 : f32
      %41 = vector.broadcast %cst_29 : f32 to vector<256x128xf32>
      %42 = arith.mulf %41, %40 : vector<256x128xf32>
      %cst_30 = arith.constant 0.707106769 : f32
      %43 = vector.broadcast %cst_30 : f32 to vector<256x128xf32>
      %44 = arith.mulf %40, %43 : vector<256x128xf32>
      %45 = math.erf %44 : vector<256x128xf32>
      %cst_31 = arith.constant 1.000000e+00 : f32
      %46 = vector.broadcast %cst_31 : f32 to vector<256x128xf32>
      %47 = arith.addf %46, %45 : vector<256x128xf32>
      %48 = arith.mulf %42, %47 : vector<256x128xf32>
      %49 = arith.mulf %48, %48 : vector<256x128xf32>
      %cst_32 = arith.constant dense<0.000000e+00> : vector<256xf32>
      %50 = vector.multi_reduction <add>, %49, %cst_32 [1] : vector<256x128xf32> to vector<256xf32>
      %51 = vector.shape_cast %50 : vector<256xf32> to vector<256x1xf32>
      %52 = math.sqrt %51 : vector<256x1xf32>
      %cst_33 = arith.constant 9.99999996E-13 : f32
      %53 = vector.broadcast %cst_33 : f32 to vector<256x1xf32>
      %54 = arith.maximumf %52, %53 : vector<256x1xf32>
      %55 = vector.broadcast %54 : vector<256x1xf32> to vector<256x128xf32>
      %56 = arith.divf %48, %55 : vector<256x128xf32>
      %57 = arith.truncf %56 : vector<256x128xf32> to vector<256x128xbf16>
      %c0_34 = arith.constant 0 : index
      %c0_35 = arith.constant 0 : index
      %58 = vector.load %arg11[%c0_34, %c0_35] : memref<256x128xbf16, #tpu.memory_space<vmem>>, vector<256x128xbf16>
      tpu.vector_store %arg11[%c0_34, %c0_35], %57 {strides = array<i32>} : memref<256x128xbf16, #tpu.memory_space<vmem>>, vector<256x128xbf16>,
    } else {
    }
    %c0 = arith.constant 0 : index
    %c0_1 = arith.constant 0 : index
    %3 = vector.load %arg11[%c0, %c0_1] : memref<256x128xbf16, #tpu.memory_space<vmem>>, vector<256x128xbf16>
    %c0_2 = arith.constant 0 : index
    %c0_3 = arith.constant 0 : index
    %4 = vector.load %arg9[%c0_2, %c0_3] : memref<128x128xbf16, #tpu.memory_space<vmem>>, vector<128x128xbf16>
    %cst = arith.constant dense<0.000000e+00> : vector<256x128xf32>
    %5 = tpu.matmul %3, %4, %cst {dimension_numbers = #tpu.dot_dimension_numbers<[1], [0], [0], [1], [0, 0, 1, 1], [], []>} : vector<256x128xbf16>, vector<128x128xbf16>, vector<256x128xf32> -> vector<256x128xf32>
    %c0_4 = arith.constant 0 : index
    %c0_5 = arith.constant 0 : index
    %6 = vector.load %arg10[%c0_4, %c0_5] : memref<256x128xf32, #tpu.memory_space<vmem>>, vector<256x128xf32>
    tpu.vector_store %arg10[%c0_4, %c0_5], %5 {strides = array<i32>} : memref<256x128xf32, #tpu.memory_space<vmem>>, vector<256x128xf32>,
    return
  }
  func.func @transform_0(%arg0: i32, %arg1: i32) -> (i32, i32) {
    %c0_i32 = arith.constant 0 : i32
    %c0_i32_0 = arith.constant 0 : i32
    return %arg0, %c0_i32 : i32, i32
  }
  func.func @transform_1(%arg0: i32, %arg1: i32) -> (i32, i32) {
    %c0_i32 = arith.constant 0 : i32
    %c0_i32_0 = arith.constant 0 : i32
    %c0_i32_1 = arith.constant 0 : i32
    return %c0_i32, %c0_i32_0 : i32, i32
  }
  func.func @transform_2(%arg0: i32, %arg1: i32) -> (i32, i32) {
    %c0_i32 = arith.constant 0 : i32
    %c0_i32_0 = arith.constant 0 : i32
    %c0_i32_1 = arith.constant 0 : i32
    return %c0_i32, %c0_i32_0 : i32, i32
  }
  func.func @transform_3(%arg0: i32, %arg1: i32) -> (i32, i32) {
    %c0_i32 = arith.constant 0 : i32
    %c0_i32_0 = arith.constant 0 : i32
    %c0_i32_1 = arith.constant 0 : i32
    return %c0_i32, %c0_i32_0 : i32, i32
  }
  func.func @transform_4(%arg0: i32, %arg1: i32) -> (i32, i32) {
    %c0_i32 = arith.constant 0 : i32
    %c0_i32_0 = arith.constant 0 : i32
    %c0_i32_1 = arith.constant 0 : i32
    return %c0_i32, %c0_i32_0 : i32, i32
  }
  func.func @transform_5(%arg0: i32, %arg1: i32) -> (i32, i32) {
    %c0_i32 = arith.constant 0 : i32
    %c0_i32_0 = arith.constant 0 : i32
    %c0_i32_1 = arith.constant 0 : i32
    return %c0_i32, %c0_i32_0 : i32, i32
  }
  func.func @transform_6(%arg0: i32, %arg1: i32) -> (i32, i32) {
    %c0_i32 = arith.constant 0 : i32
    %c0_i32_0 = arith.constant 0 : i32
    %c0_i32_1 = arith.constant 0 : i32
    return %c0_i32, %c0_i32_0 : i32, i32
  }
  func.func @transform_7(%arg0: i32, %arg1: i32) -> (i32, i32) {
    %c0_i32 = arith.constant 0 : i32
    %c0_i32_0 = arith.constant 0 : i32
    return %c0_i32, %arg1 : i32, i32
  }
  func.func @transform_8(%arg0: i32, %arg1: i32) -> (i32, i32) {
    %c0_i32 = arith.constant 0 : i32
    return %arg0, %arg1 : i32, i32
  }
}

</mosaic_0001>

<bundles_post_ra>
// kernel: dino_projector.1
= control target key start
LH: loop header
LB: loop body
LE: loop exit
PB: predicated region body
PF: predicated region fallthrough
CT: control target
= control target key end

     0   :  { %s3914_s1 = inlined_call_operand.vmem [shape: bf16[128,128], index: 1, kind: input, shape index: {}]   ;;  %s3915_s0 = inlined_call_operand.vmem [shape: bf16[256,128], index: 0, kind: input, shape index: {}]   ;;  %s3916_s3 = inlined_call_operand.vmem [shape: bf16[128,128], index: 3, kind: input, shape index: {}]   ;;  %s3917_s5 = inlined_call_operand.vmem [shape: bf16[128,128], index: 5, kind: input, shape index: {}]   ;;  %s3918_s2 = inlined_call_operand.vmem [shape: f32[1,128], index: 2, kind: input, shape index: {}]   ;;  %s3919_s4 = inlined_call_operand.vmem [shape: f32[1,128], index: 4, kind: input, shape index: {}]   ;;  %s3920_s7 = inlined_call_operand.vmem [shape: bf16[128,128], index: 7, kind: input, shape index: {}]   ;;  %s3921_s6 = inlined_call_operand.vmem [shape: f32[1,128], index: 6, kind: input, shape index: {}]   ;;  %s3922_s8 = inlined_call_operand.vmem [shape: f32[256,128], index: 8, kind: output, shape index: {}]  }
   0x1   :  { %v2434_v0 = vld [vmem:[%s3914_s1] sm:$0xff]   ;;  %v2435_v1 = vld [vmem:[%s3914_s1 + $0x8] sm:$0xff]   ;;  %v2436_v2 = vld [vmem:[%s3914_s1 + $0x10] sm:$0xff]  }
   0x2   :  { %2242 = vmatprep.subr.bf16.mxu0 %v2434_v0  ;;  %v2437_v3 = vld [vmem:[%s3914_s1 + $0x18] sm:$0xff]   ;;  %v2442_v4 = vld [vmem:[%s3915_s0] sm:$0xff]   ;;  %v2439_v6 = vld [vmem:[%s3914_s1 + $0x28] sm:$0xff]  }
   0x3   :  { %2243 = vmatpush3.bf16.msra.mxu0 %v2434_v0  ;;  %2258 = vmatprep.mubr.bf16.mxu0 %v2442_v4  ;;  %v2438_v5 = vld [vmem:[%s3914_s1 + $0x20] sm:$0xff]   ;;  %v2440_v7 = vld [vmem:[%s3914_s1 + $0x30] sm:$0xff]   ;;  %v2441_v8 = vld [vmem:[%s3914_s1 + $0x38] sm:$0xff]  }
   0x4   :  { %2244 = vmatprep.subr.bf16.mxu0 %v2435_v1  ;;  %v2458_v9 = vld [vmem:[%s3916_s3] sm:$0xff]   ;;  %v2459_v10 = vld [vmem:[%s3916_s3 + $0x8] sm:$0xff]   ;;  %v2444_v12 = vld [vmem:[%s3915_s0 + $0x10] sm:$0xff]  }
   0x5   :  { %2290 = vmatprep.subr.bf16.mxu1 %v2458_v9  ;;  %v2443_v11 = vld [vmem:[%s3915_s0 + $0x8] sm:$0xff]   ;;  %v2445_v13 = vld [vmem:[%s3915_s0 + $0x18] sm:$0xff]   ;;  %v2446_v14 = vld [vmem:[%s3915_s0 + $0x20] sm:$0xff]  }
   0x6   :  { %2291 = vmatpush3.bf16.msra.mxu1 %v2458_v9  ;;  %v2447_v15 = vld [vmem:[%s3915_s0 + $0x28] sm:$0xff]   ;;  %v2448_v16 = vld [vmem:[%s3915_s0 + $0x30] sm:$0xff]   ;;  %v2449_v17 = vld [vmem:[%s3915_s0 + $0x38] sm:$0xff]  }
   0x7   :  { %2245 = vmatpush3.bf16.msra.mxu0 %v2435_v1  ;;  %2292 = vmatprep.subr.bf16.mxu1 %v2459_v10  ;;  %v2450_v18 = vld [vmem:[%s3915_s0 + $0x40] sm:$0xff]   ;;  %v2451_v19 = vld [vmem:[%s3915_s0 + $0x48] sm:$0xff]   ;;  %v2452_v20 = vld [vmem:[%s3915_s0 + $0x50] sm:$0xff]  }
   0x8   :  { %2246 = vmatprep.subr.bf16.mxu0 %v2436_v2  ;;  %v2453_v21 = vld [vmem:[%s3915_s0 + $0x58] sm:$0xff]   ;;  %v2454_v22 = vld [vmem:[%s3915_s0 + $0x60] sm:$0xff]   ;;  %v2455_v23 = vld [vmem:[%s3915_s0 + $0x68] sm:$0xff]  }
   0x9   :  { %v2456_v24 = vld [vmem:[%s3915_s0 + $0x70] sm:$0xff]   ;;  %v2457_v25 = vld [vmem:[%s3915_s0 + $0x78] sm:$0xff]   ;;  %v2462_v28 = vld [vmem:[%s3916_s3 + $0x20] sm:$0xff]  }
   0xa   :  { %2293 = vmatpush3.bf16.msra.mxu1 %v2459_v10  ;;  %v2460_v26 = vld [vmem:[%s3916_s3 + $0x10] sm:$0xff]   ;;  %v2461_v27 = vld [vmem:[%s3916_s3 + $0x18] sm:$0xff]   ;;  %v2463_v29 = vld [vmem:[%s3916_s3 + $0x28] sm:$0xff]  }
   0xb   :  { %2247 = vmatpush3.bf16.msra.mxu0 %v2436_v2  ;;  %2294 = vmatprep.subr.bf16.mxu1 %v2460_v26  ;;  %v2464_v30 = vld [vmem:[%s3916_s3 + $0x30] sm:$0xff]   ;;  %v2465_v31 = vld [vmem:[%s3916_s3 + $0x38] sm:$0xff]   ;;  %v2466_v32 = vld [vmem:[%s3917_s5] sm:$0xff]  }
   0xc   :  { %2248 = vmatprep.subr.bf16.mxu0 %v2437_v3  ;;  %v2467_v33 = vld [vmem:[%s3917_s5 + $0x8] sm:$0xff]   ;;  %v2468_v34 = vld [vmem:[%s3917_s5 + $0x10] sm:$0xff]   ;;  %v2469_v35 = vld [vmem:[%s3917_s5 + $0x18] sm:$0xff]  }
   0xd   :  { %v2470_v36 = vld [vmem:[%s3917_s5 + $0x20] sm:$0xff]  }
   0xe   :  { %2295 = vmatpush3.bf16.msra.mxu1 %v2460_v26  ;;  %v2961_v37 = vld [vmem:[%s3918_s2] ss:$0 sm:$0xff] }
   0xf   :  { %2249 = vmatpush3.bf16.msra.mxu0 %v2437_v3  ;;  %2296 = vmatprep.subr.bf16.mxu1 %v2461_v27 }
  0x10   :  { %2250 = vmatprep.subr.bf16.mxu0 %v2438_v5 }
  0x12   :  { %2297 = vmatpush3.bf16.msra.mxu1 %v2461_v27 }
  0x13   :  { %2251 = vmatpush3.bf16.msra.mxu0 %v2438_v5  ;;  %2298 = vmatprep.subr.bf16.mxu1 %v2462_v28 }
  0x14   :  { %2252 = vmatprep.subr.bf16.mxu0 %v2439_v6 }
  0x16   :  { %2299 = vmatpush3.bf16.msra.mxu1 %v2462_v28 }
  0x17   :  { %2253 = vmatpush3.bf16.msra.mxu0 %v2439_v6  ;;  %2300 = vmatprep.subr.bf16.mxu1 %v2463_v29 }
  0x18   :  { %2254 = vmatprep.subr.bf16.mxu0 %v2440_v7 }
  0x1a   :  { %2301 = vmatpush3.bf16.msra.mxu1 %v2463_v29 }
  0x1b   :  { %2255 = vmatpush3.bf16.msra.mxu0 %v2440_v7  ;;  %2302 = vmatprep.subr.bf16.mxu1 %v2464_v30 }
  0x1c   :  { %2256 = vmatprep.subr.bf16.mxu0 %v2441_v8 }
  0x1e   :  { %2303 = vmatpush3.bf16.msra.mxu1 %v2464_v30 }
  0x1f   :  { %2257 = vmatpush3.bf16.msra.mxu0 %v2441_v8  ;;  %2304 = vmatprep.subr.bf16.mxu1 %v2465_v31 }
  0x20   :  { %2338 = vmatprep.subr.bf16.mxu0 %v2466_v32 }
  0x22   :  { %2259 = vmatmul.mubr.bf16.vlgmr.msra.gmra.mrb[0].mxu0 %v2443_v11  ;;  %2305 = vmatpush3.bf16.msra.mxu1 %v2465_v31 }
  0x23   :  { %2262 = vmatprep.mubr.bf16.mxu0 %v2444_v12  ;;  %2339 = vmatpush3.bf16.msra.mxu0 %v2466_v32 }
  0x24   :  { %2340 = vmatprep.subr.bf16.mxu0 %v2467_v33 }
  0x27   :  { %2341 = vmatpush3.bf16.msra.mxu0 %v2467_v33 }
  0x28   :  { %2342 = vmatprep.subr.bf16.mxu0 %v2468_v34 }
  0x2a   :  { %2263 = vmatmul.mubr.bf16.gmra.mrb[4].mxu0 %v2445_v13 }
  0x2b   :  { %2266 = vmatprep.mubr.bf16.mxu0 %v2446_v14  ;;  %2343 = vmatpush3.bf16.msra.mxu0 %v2468_v34 }
  0x2c   :  { %2344 = vmatprep.subr.bf16.mxu0 %v2469_v35 }
  0x2f   :  { %2345 = vmatpush3.bf16.msra.mxu0 %v2469_v35 }
  0x30   :  { %2346 = vmatprep.subr.bf16.mxu0 %v2470_v36 }
  0x32   :  { %2267 = vmatmul.mubr.bf16.gmra.mrb[8].mxu0 %v2447_v15 }
  0x33   :  { %2270 = vmatprep.mubr.bf16.mxu0 %v2448_v16  ;;  %2347 = vmatpush3.bf16.msra.mxu0 %v2470_v36 }
  0x3a   :  { %2271 = vmatmul.mubr.bf16.gmra.mrb[12].mxu0 %v2449_v17 }
  0x3b   :  { %2274 = vmatprep.mubr.bf16.mxu0 %v2450_v18 }
  0x42   :  { %2275 = vmatmul.mubr.bf16.gmra.mrb[16].mxu0 %v2451_v19 }
  0x43   :  { %2278 = vmatprep.mubr.bf16.mxu0 %v2452_v20 }
  0x4a   :  { %2279 = vmatmul.mubr.bf16.gmra.mrb[20].mxu0 %v2453_v21 }
  0x4b   :  { %2282 = vmatprep.mubr.bf16.mxu0 %v2454_v22 }
  0x52   :  { %2283 = vmatmul.mubr.bf16.gmra.mrb[24].mxu0 %v2455_v23 }
  0x53   :  { %2286 = vmatprep.mubr.bf16.mxu0 %v2456_v24 }
  0x5a   :  { %2287 = vmatmul.mubr.bf16.gmra.mrb[28].mxu0 %v2457_v25 }
  0xf5   :  { %v2260_v38 = vpop.f32.mrb[0].mxu0 }
  0xf6   :  { %v276_v39 = vadd.f32 %v2260_v38, %v2961_v37  ;;  %v267_v40 = vpop.f32.mrb[1].mxu0 }
  0xf7   :  { %v268_v41 = vadd.f32 %v2961_v37, %v267_v40  ;;  %v2261_v42 = vpop.f32.mrb[2].mxu0 }
  0xf8   :  { %v428_v43 = vmul.f32 0.70710677, %v276_v39  ;;  %v279_v44 = vadd.f32 %v2261_v42, %v2961_v37  ;;  %v270_v45 = vpop.f32.mrb[3].mxu0  ;;  %v396_v2 = vmul.f32 0.5, %v276_v39 }
  0xf9   :  { %v426_v46 = vmul.f32 0.70710677, %v268_v41  ;;  %v271_v47 = vadd.f32 %v2961_v37, %v270_v45  ;;  %v394_v12 = vmul.f32 0.5, %v268_v41 }
  0xfa   :  { %2482 = verf.f32 %v428_v43  ;;  %v429_v48 = vmul.f32 0.70710677, %v279_v44  ;;  %v397_v7 = vmul.f32 0.5, %v279_v44 }
  0xfb   :  { %2484 = verf.f32 %v426_v46  ;;  %v427_v49 = vmul.f32 0.70710677, %v271_v47  ;;  %v395_v18 = vmul.f32 0.5, %v271_v47 }
  0xfc   :  { %2486 = verf.f32 %v429_v48 }
  0xfd   :  { %2488 = verf.f32 %v427_v49  ;;  %v2264_v50 = vpop.f32.mrb[4].mxu0 }
  0xfe   :  { %v292_v51 = vadd.f32 %v2264_v50, %v2961_v37  ;;  %v283_v52 = vpop.f32.mrb[5].mxu0 }
  0xff   :  { %v284_v53 = vadd.f32 %v2961_v37, %v283_v52  ;;  %v2265_v54 = vpop.f32.mrb[6].mxu0 }
 0x100   :  { %v432_v55 = vmul.f32 0.70710677, %v292_v51  ;;  %v295_v56 = vadd.f32 %v2265_v54, %v2961_v37  ;;  %v286_v57 = vpop.f32.mrb[7].mxu0  ;;  %v400_v38 = vmul.f32 0.5, %v292_v51 }
 0x101   :  { %v430_v58 = vmul.f32 0.70710677, %v284_v53  ;;  %v287_v59 = vadd.f32 %v2961_v37, %v286_v57  ;;  %v398_v43 = vmul.f32 0.5, %v284_v53 }
 0x102   :  { %2490 = verf.f32 %v432_v55  ;;  %v433_v60 = vmul.f32 0.70710677, %v295_v56  ;;  %v401_v39 = vmul.f32 0.5, %v295_v56 }
 0x103   :  { %2492 = verf.f32 %v430_v58  ;;  %v431_v61 = vmul.f32 0.70710677, %v287_v59  ;;  %v399_v44 = vmul.f32 0.5, %v287_v59 }
 0x104   :  { %v2483_v62 = vpop.eup %2482  ;;  %2494 = verf.f32 %v433_v60 }
 0x105   :  { %v2485_v63 = vpop.eup %2484  ;;  %2496 = verf.f32 %v431_v61  ;;  %v2268_v0 = vpop.f32.mrb[8].mxu0  ;;  %v492_v3 = vadd.f32 1.0, %v2483_v62 }
 0x106   :  { %v2487_v1 = vpop.eup %2486  ;;  %v2972_v4 = vadd.f32 %v2268_v0, %v2961_v37  ;;  %v299_v5 = vpop.f32.mrb[9].mxu0  ;;  %v490_v11 = vadd.f32 1.0, %v2485_v63 }
 0x107   :  { %v2489_v6 = vpop.eup %2488  ;;  %v493_v8 = vadd.f32 1.0, %v2487_v1  ;;  %v2975_v9 = vadd.f32 %v2961_v37, %v299_v5  ;;  %v2269_v10 = vpop.f32.mrb[10].mxu0  ;;  %v524_v21 = vmul.f32 %v492_v3, %v396_v2 }
 0x108   :  { %v436_v13 = vmul.f32 0.70710677, %v2972_v4  ;;  %v2979_v14 = vadd.f32 %v2269_v10, %v2961_v37  ;;  %v302_v15 = vpop.f32.mrb[11].mxu0  ;;  %v491_v16 = vadd.f32 1.0, %v2489_v6  ;;  %v522_v24 = vmul.f32 %v490_v11, %v394_v12 }
 0x109   :  { %v525_v17 = vmul.f32 %v493_v8, %v397_v7  ;;  %v434_v19 = vmul.f32 0.70710677, %v2975_v9  ;;  %v2983_v20 = vadd.f32 %v2961_v37, %v302_v15  ;;  %v404_v5 = vmul.f32 0.5, %v2972_v4 }
 0x10a   :  { %2498 = verf.f32 %v436_v13  ;;  %v437_v22 = vmul.f32 0.70710677, %v2979_v14  ;;  %v523_v25 = vmul.f32 %v491_v16, %v395_v18  ;;  %v405_v6 = vmul.f32 0.5, %v2979_v14 }
 0x10b   :  { %2500 = verf.f32 %v434_v19  ;;  %v435_v23 = vmul.f32 0.70710677, %v2983_v20  ;;  %v555_v27 = vpack.c.bf16 %v525_v17, %v524_v21  ;;  %v402_v11 = vmul.f32 0.5, %v2975_v9 }
 0x10c   :  { %v2491_v26 = vpop.eup %2490  ;;  %2502 = verf.f32 %v437_v22  ;;  %v554_v31 = vpack.c.bf16 %v523_v25, %v522_v24  ;;  %v403_v12 = vmul.f32 0.5, %v2983_v20 }
 0x10d   :  { %v2493_v28 = vpop.eup %2492  ;;  %v496_v29 = vadd.f32 1.0, %v2491_v26  ;;  %2504 = verf.f32 %v435_v23  ;;  %v2272_v30 = vpop.f32.mrb[12].mxu0 }
 0x10e   :  { %v2495_v32 = vpop.eup %2494  ;;  %v494_v33 = vadd.f32 1.0, %v2493_v28  ;;  %v2988_v34 = vadd.f32 %v2272_v30, %v2961_v37  ;;  %v315_v35 = vpop.f32.mrb[13].mxu0  ;;  %2306 = vmatprep.mubr.bf16.mxu1 %v554_v31 }
 0x10f   :  { %v2497_v36 = vpop.eup %2496  ;;  %v497_v40 = vadd.f32 1.0, %v2495_v32  ;;  %v2991_v41 = vadd.f32 %v2961_v37, %v315_v35  ;;  %v2273_v42 = vpop.f32.mrb[14].mxu0  ;;  %2307 = vmatmul.mubr.bf16.vlgmr.msra.gmra.mrb[0].mxu1 %v555_v27  ;;  %v528_v48 = vmul.f32 %v496_v29, %v400_v38 }
 0x110   :  { %v495_v45 = vadd.f32 1.0, %v2497_v36  ;;  %v440_v46 = vmul.f32 0.70710677, %v2988_v34  ;;  %v318_v47 = vpop.f32.mrb[15].mxu0  ;;  %v327_v51 = vadd.f32 %v2273_v42, %v2961_v37  ;;  %v526_v52 = vmul.f32 %v494_v33, %v398_v43 }
 0x111   :  { %v529_v49 = vmul.f32 %v497_v40, %v401_v39  ;;  %v438_v50 = vmul.f32 0.70710677, %v2991_v41  ;;  %v319_v55 = vadd.f32 %v2961_v37, %v318_v47  ;;  %v408_v32 = vmul.f32 0.5, %v2988_v34 }
 0x112   :  { %v527_v54 = vmul.f32 %v495_v45, %v399_v44  ;;  %2506 = verf.f32 %v440_v46  ;;  %v441_v56 = vmul.f32 0.70710677, %v327_v51  ;;  %v406_v39 = vmul.f32 0.5, %v2991_v41 }
 0x113   :  { %2508 = verf.f32 %v438_v50  ;;  %v557_v53 = vpack.c.bf16 %v529_v49, %v528_v48  ;;  %v439_v58 = vmul.f32 0.70710677, %v319_v55  ;;  %v409_v40 = vmul.f32 0.5, %v327_v51 }
 0x114   :  { %v2499_v57 = vpop.eup %2498  ;;  %v556_v59 = vpack.c.bf16 %v527_v54, %v526_v52  ;;  %2510 = verf.f32 %v441_v56  ;;  %v407_v45 = vmul.f32 0.5, %v319_v55 }
 0x115   :  { %v2501_v60 = vpop.eup %2500  ;;  %v500_v61 = vadd.f32 1.0, %v2499_v57  ;;  %v2276_v62 = vpop.f32.mrb[16].mxu0  ;;  %2512 = verf.f32 %v439_v58 }
 0x116   :  { %v2503_v63 = vpop.eup %2502  ;;  %v498_v0 = vadd.f32 1.0, %v2501_v60  ;;  %v2998_v1 = vadd.f32 %v2276_v62, %v2961_v37  ;;  %v331_v2 = vpop.f32.mrb[17].mxu0  ;;  %2310 = vmatprep.mubr.bf16.mxu1 %v556_v59 }
 0x117   :  { %v2505_v3 = vpop.eup %2504  ;;  %v501_v7 = vadd.f32 1.0, %v2503_v63  ;;  %v3003_v8 = vadd.f32 %v2961_v37, %v331_v2  ;;  %v2277_v10 = vpop.f32.mrb[18].mxu0  ;;  %2311 = vmatmul.mubr.bf16.gmra.mrb[4].mxu1 %v557_v53  ;;  %v532_v17 = vmul.f32 %v500_v61, %v404_v5 }
 0x118   :  { %v499_v13 = vadd.f32 1.0, %v2505_v3  ;;  %v444_v15 = vmul.f32 0.70710677, %v2998_v1  ;;  %v334_v16 = vpop.f32.mrb[19].mxu0  ;;  %v343_v14 = vadd.f32 %v2277_v10, %v2961_v37  ;;  %v530_v19 = vmul.f32 %v498_v0, %v402_v11 }
 0x119   :  { %v533_v18 = vmul.f32 %v501_v7, %v405_v6  ;;  %v442_v4 = vmul.f32 0.70710677, %v3003_v8  ;;  %v335_v22 = vadd.f32 %v2961_v37, %v334_v16  ;;  %v412_v63 = vmul.f32 0.5, %v2998_v1 }
 0x11a   :  { %v531_v21 = vmul.f32 %v499_v13, %v403_v12  ;;  %2514 = verf.f32 %v444_v15  ;;  %v445_v9 = vmul.f32 0.70710677, %v343_v14  ;;  %v410_v6 = vmul.f32 0.5, %v3003_v8 }
 0x11b   :  { %2516 = verf.f32 %v442_v4  ;;  %v559_v23 = vpack.c.bf16 %v533_v18, %v532_v17  ;;  %v443_v24 = vmul.f32 0.70710677, %v335_v22  ;;  %v413_v7 = vmul.f32 0.5, %v343_v14 }
 0x11c   :  { %v2507_v20 = vpop.eup %2506  ;;  %v558_v25 = vpack.c.bf16 %v531_v21, %v530_v19  ;;  %2518 = verf.f32 %v445_v9  ;;  %v411_v13 = vmul.f32 0.5, %v335_v22 }
 0x11d   :  { %v2509_v26 = vpop.eup %2508  ;;  %v2280_v27 = vpop.f32.mrb[20].mxu0  ;;  %v504_v28 = vadd.f32 1.0, %v2507_v20  ;;  %2520 = verf.f32 %v443_v24 }
 0x11e   :  { %v3012_v29 = vadd.f32 %v2280_v27, %v2961_v37  ;;  %v347_v30 = vpop.f32.mrb[21].mxu0  ;;  %2314 = vmatprep.mubr.bf16.mxu1 %v558_v25  ;;  %v2511_v31 = vpop.eup %2510  ;;  %v502_v33 = vadd.f32 1.0, %v2509_v26 }
 0x11f   :  { %v3016_v35 = vadd.f32 %v2961_v37, %v347_v30  ;;  %v2281_v36 = vpop.f32.mrb[22].mxu0  ;;  %v2513_v38 = vpop.eup %2512  ;;  %v505_v42 = vadd.f32 1.0, %v2511_v31  ;;  %2315 = vmatmul.mubr.bf16.gmra.mrb[8].mxu1 %v559_v23  ;;  %v536_v48 = vmul.f32 %v504_v28, %v408_v32 }
 0x120   :  { %v448_v43 = vmul.f32 0.70710677, %v3012_v29  ;;  %v350_v44 = vpop.f32.mrb[23].mxu0  ;;  %v503_v46 = vadd.f32 1.0, %v2513_v38  ;;  %v3022_v34 = vadd.f32 %v2281_v36, %v2961_v37  ;;  %v534_v41 = vmul.f32 %v502_v33, %v406_v39 }
 0x121   :  { %v446_v47 = vmul.f32 0.70710677, %v3016_v35  ;;  %v537_v49 = vmul.f32 %v505_v42, %v409_v40  ;;  %v3025_v50 = vadd.f32 %v2961_v37, %v350_v44  ;;  %v416_v30 = vmul.f32 0.5, %v3012_v29 }
 0x122   :  { %2522 = verf.f32 %v448_v43  ;;  %v535_v51 = vmul.f32 %v503_v46, %v407_v45  ;;  %v449_v52 = vmul.f32 0.70710677, %v3022_v34  ;;  %v414_v38 = vmul.f32 0.5, %v3016_v35 }
 0x123   :  { %2524 = verf.f32 %v446_v47  ;;  %v447_v55 = vmul.f32 0.70710677, %v3025_v50  ;;  %v561_v56 = vpack.c.bf16 %v537_v49, %v536_v48  ;;  %v417_v39 = vmul.f32 0.5, %v3022_v34 }
 0x124   :  { %v2515_v54 = vpop.eup %2514  ;;  %2526 = verf.f32 %v449_v52  ;;  %v560_v58 = vpack.c.bf16 %v535_v51, %v534_v41  ;;  %v415_v44 = vmul.f32 0.5, %v3025_v50 }
 0x125   :  { %v2517_v53 = vpop.eup %2516  ;;  %v2284_v57 = vpop.f32.mrb[24].mxu0  ;;  %v508_v59 = vadd.f32 1.0, %v2515_v54  ;;  %2528 = verf.f32 %v447_v55 }
 0x126   :  { %v3030_v60 = vadd.f32 %v2284_v57, %v2961_v37  ;;  %v363_v61 = vpop.f32.mrb[25].mxu0  ;;  %v2519_v62 = vpop.eup %2518  ;;  %v506_v0 = vadd.f32 1.0, %v2517_v53  ;;  %2318 = vmatprep.mubr.bf16.mxu1 %v560_v58 }
 0x127   :  { %v3034_v2 = vadd.f32 %v2961_v37, %v363_v61  ;;  %v2285_v3 = vpop.f32.mrb[26].mxu0  ;;  %v2521_v5 = vpop.eup %2520  ;;  %v509_v10 = vadd.f32 1.0, %v2519_v62  ;;  %2319 = vmatmul.mubr.bf16.gmra.mrb[12].mxu1 %v561_v56  ;;  %v540_v17 = vmul.f32 %v508_v59, %v412_v63 }
 0x128   :  { %v452_v11 = vmul.f32 0.70710677, %v3030_v60  ;;  %v366_v12 = vpop.f32.mrb[27].mxu0  ;;  %v507_v15 = vadd.f32 1.0, %v2521_v5  ;;  %v375_v1 = vadd.f32 %v2285_v3, %v2961_v37  ;;  %v538_v19 = vmul.f32 %v506_v0, %v410_v6 }
 0x129   :  { %v450_v16 = vmul.f32 0.70710677, %v3034_v2  ;;  %v541_v18 = vmul.f32 %v509_v10, %v413_v7  ;;  %v367_v4 = vadd.f32 %v2961_v37, %v366_v12  ;;  %v420_v59 = vmul.f32 0.5, %v3030_v60 }
 0x12a   :  { %2530 = verf.f32 %v452_v11  ;;  %v539_v21 = vmul.f32 %v507_v15, %v411_v13  ;;  %v453_v8 = vmul.f32 0.70710677, %v375_v1  ;;  %v421_v61 = vmul.f32 0.5, %v375_v1 }
 0x12b   :  { %2532 = verf.f32 %v450_v16  ;;  %v451_v9 = vmul.f32 0.70710677, %v367_v4  ;;  %v563_v23 = vpack.c.bf16 %v541_v18, %v540_v17  ;;  %v418_v62 = vmul.f32 0.5, %v3034_v2 }
 0x12c   :  { %v2523_v14 = vpop.eup %2522  ;;  %2534 = verf.f32 %v453_v8  ;;  %v562_v24 = vpack.c.bf16 %v539_v21, %v538_v19  ;;  %v419_v63 = vmul.f32 0.5, %v367_v4 }
 0x12d   :  { %v2525_v20 = vpop.eup %2524  ;;  %v2288_v22 = vpop.f32.mrb[28].mxu0  ;;  %v512_v25 = vadd.f32 1.0, %v2523_v14  ;;  %2536 = verf.f32 %v451_v9 }
 0x12e   :  { %v388_v26 = vadd.f32 %v2288_v22, %v2961_v37  ;;  %v379_v27 = vpop.f32.mrb[29].mxu0  ;;  %v2527_v28 = vpop.eup %2526  ;;  %v510_v31 = vadd.f32 1.0, %v2525_v20  ;;  %2322 = vmatprep.mubr.bf16.mxu1 %v562_v24  ;;  %v2471_v24 = vld [vmem:[%s3917_s5 + $0x28] sm:$0xff]  }
 0x12f   :  { %v380_v32 = vadd.f32 %v2961_v37, %v379_v27  ;;  %v2289_v33 = vpop.f32.mrb[30].mxu0  ;;  %v2529_v36 = vpop.eup %2528  ;;  %v513_v40 = vadd.f32 1.0, %v2527_v28  ;;  %2323 = vmatmul.mubr.bf16.gmra.mrb[16].mxu1 %v563_v23  ;;  %v544_v47 = vmul.f32 %v512_v25, %v416_v30  ;;  %2348 = vmatprep.subr.bf16.mxu0 %v2471_v24  ;;  %v2472_v25 = vld [vmem:[%s3917_s5 + $0x30] sm:$0xff]   ;;  %v3063_v27 = vld [vmem:[%s3919_s4] ss:$0 sm:$0xff] }
 0x130   :  { %v456_v42 = vmul.f32 0.70710677, %v388_v26  ;;  %v382_v43 = vpop.f32.mrb[31].mxu0  ;;  %v511_v45 = vadd.f32 1.0, %v2529_v36  ;;  %v391_v29 = vadd.f32 %v2289_v33, %v2961_v37  ;;  %v542_v41 = vmul.f32 %v510_v31, %v414_v38  ;;  %2349 = vmatpush3.bf16.msra.mxu0 %v2471_v24 }
 0x131   :  { %v454_v46 = vmul.f32 0.70710677, %v380_v32  ;;  %v545_v48 = vmul.f32 %v513_v40, %v417_v39  ;;  %v383_v49 = vadd.f32 %v2961_v37, %v382_v43  ;;  %v424_v1 = vmul.f32 0.5, %v388_v26  ;;  %2350 = vmatprep.subr.bf16.mxu0 %v2472_v25  ;;  %v2473_v26 = vld [vmem:[%s3917_s5 + $0x38] sm:$0xff]  }
 0x132   :  { %2538 = verf.f32 %v456_v42  ;;  %v543_v51 = vmul.f32 %v511_v45, %v415_v44  ;;  %v457_v35 = vmul.f32 0.70710677, %v391_v29  ;;  %v425_v18 = vmul.f32 0.5, %v391_v29 }
 0x133   :  { %2540 = verf.f32 %v454_v46  ;;  %v455_v52 = vmul.f32 0.70710677, %v383_v49  ;;  %v565_v54 = vpack.c.bf16 %v545_v48, %v544_v47  ;;  %v422_v2 = vmul.f32 0.5, %v380_v32 }
 0x134   :  { %v2531_v34 = vpop.eup %2530  ;;  %2542 = verf.f32 %v457_v35  ;;  %v564_v56 = vpack.c.bf16 %v543_v51, %v542_v41  ;;  %v423_v4 = vmul.f32 0.5, %v383_v49  ;;  %2351 = vmatpush3.bf16.msra.mxu0 %v2472_v25 }
 0x135   :  { %v2533_v55 = vpop.eup %2532  ;;  %v516_v50 = vadd.f32 1.0, %v2531_v34  ;;  %2544 = verf.f32 %v455_v52  ;;  %2352 = vmatprep.subr.bf16.mxu0 %v2473_v26 }
 0x136   :  { %v2535_v53 = vpop.eup %2534  ;;  %v514_v57 = vadd.f32 1.0, %v2533_v55  ;;  %2326 = vmatprep.mubr.bf16.mxu1 %v564_v56 }
 0x137   :  { %v2537_v58 = vpop.eup %2536  ;;  %v517_v37 = vadd.f32 1.0, %v2535_v53  ;;  %2327 = vmatmul.mubr.bf16.gmra.mrb[20].mxu1 %v565_v54  ;;  %v548_v3 = vmul.f32 %v516_v50, %v420_v59 }
 0x138   :  { %v515_v0 = vadd.f32 1.0, %v2537_v58  ;;  %v546_v6 = vmul.f32 %v514_v57, %v418_v62  ;;  %2353 = vmatpush3.bf16.msra.mxu0 %v2473_v26 }
 0x139   :  { %v549_v5 = vmul.f32 %v517_v37, %v421_v61 }
 0x13a   :  { %v547_v7 = vmul.f32 %v515_v0, %v419_v63 }
 0x13b   :  { %v567_v11 = vpack.c.bf16 %v549_v5, %v548_v3 }
 0x13c   :  { %v2539_v10 = vpop.eup %2538  ;;  %v566_v13 = vpack.c.bf16 %v547_v7, %v546_v6 }
 0x13d   :  { %v2541_v12 = vpop.eup %2540  ;;  %v520_v15 = vadd.f32 1.0, %v2539_v10 }
 0x13e   :  { %v2543_v16 = vpop.eup %2542  ;;  %v518_v17 = vadd.f32 1.0, %v2541_v12  ;;  %2330 = vmatprep.mubr.bf16.mxu1 %v566_v13 }
 0x13f   :  { %v2545_v60 = vpop.eup %2544  ;;  %v521_v19 = vadd.f32 1.0, %v2543_v16  ;;  %2331 = vmatmul.mubr.bf16.gmra.mrb[24].mxu1 %v567_v11  ;;  %v552_v8 = vmul.f32 %v520_v15, %v424_v1 }
 0x140   :  { %v519_v21 = vadd.f32 1.0, %v2545_v60  ;;  %v550_v9 = vmul.f32 %v518_v17, %v422_v2 }
 0x141   :  { %v553_v14 = vmul.f32 %v521_v19, %v425_v18 }
 0x142   :  { %v551_v23 = vmul.f32 %v519_v21, %v423_v4 }
 0x143   :  { %v569_v20 = vpack.c.bf16 %v553_v14, %v552_v8 }
 0x144   :  { %v568_v22 = vpack.c.bf16 %v551_v23, %v550_v9 }
 0x146   :  { %2334 = vmatprep.mubr.bf16.mxu1 %v568_v22 }
 0x147   :  { %2335 = vmatmul.mubr.bf16.gmra.mrb[28].mxu1 %v569_v20 }
 0x1e2   :  { %v2308_v28 = vpop.f32.mrb[0].mxu1 }
 0x1e3   :  { %v684_v30 = vadd.f32 %v2308_v28, %v3063_v27  ;;  %v675_v31 = vpop.f32.mrb[1].mxu1 }
 0x1e4   :  { %v676_v32 = vadd.f32 %v3063_v27, %v675_v31  ;;  %v2309_v33 = vpop.f32.mrb[2].mxu1 }
 0x1e5   :  { %v836_v36 = vmul.f32 0.70710677, %v684_v30  ;;  %v687_v38 = vadd.f32 %v2309_v33, %v3063_v27  ;;  %v678_v39 = vpop.f32.mrb[3].mxu1  ;;  %v804_v62 = vmul.f32 0.5, %v684_v30 }
 0x1e6   :  { %v834_v40 = vmul.f32 0.70710677, %v676_v32  ;;  %v679_v42 = vadd.f32 %v3063_v27, %v678_v39  ;;  %v802_v6 = vmul.f32 0.5, %v676_v32 }
 0x1e7   :  { %2546 = verf.f32 %v836_v36  ;;  %v837_v43 = vmul.f32 0.70710677, %v687_v38  ;;  %v805_v63 = vmul.f32 0.5, %v687_v38 }
 0x1e8   :  { %2548 = verf.f32 %v834_v40  ;;  %v835_v44 = vmul.f32 0.70710677, %v679_v42  ;;  %v803_v7 = vmul.f32 0.5, %v679_v42 }
 0x1e9   :  { %2550 = verf.f32 %v837_v43 }
 0x1ea   :  { %2552 = verf.f32 %v835_v44  ;;  %v2312_v45 = vpop.f32.mrb[4].mxu1 }
 0x1eb   :  { %v700_v46 = vadd.f32 %v2312_v45, %v3063_v27  ;;  %v691_v29 = vpop.f32.mrb[5].mxu1 }
 0x1ec   :  { %v692_v47 = vadd.f32 %v3063_v27, %v691_v29  ;;  %v2313_v48 = vpop.f32.mrb[6].mxu1 }
 0x1ed   :  { %v840_v49 = vmul.f32 0.70710677, %v700_v46  ;;  %v703_v41 = vadd.f32 %v2313_v48, %v3063_v27  ;;  %v694_v51 = vpop.f32.mrb[7].mxu1  ;;  %v808_v28 = vmul.f32 0.5, %v700_v46 }
 0x1ee   :  { %v838_v35 = vmul.f32 0.70710677, %v692_v47  ;;  %v695_v34 = vadd.f32 %v3063_v27, %v694_v51  ;;  %v806_v36 = vmul.f32 0.5, %v692_v47 }
 0x1ef   :  { %2554 = verf.f32 %v840_v49  ;;  %v841_v52 = vmul.f32 0.70710677, %v703_v41  ;;  %v809_v30 = vmul.f32 0.5, %v703_v41 }
 0x1f0   :  { %2556 = verf.f32 %v838_v35  ;;  %v839_v54 = vmul.f32 0.70710677, %v695_v34  ;;  %v807_v38 = vmul.f32 0.5, %v695_v34 }
 0x1f1   :  { %v2547_v55 = vpop.eup %2546  ;;  %2558 = verf.f32 %v841_v52 }
 0x1f2   :  { %v2549_v56 = vpop.eup %2548  ;;  %v900_v50 = vadd.f32 1.0, %v2547_v55  ;;  %2560 = verf.f32 %v839_v54  ;;  %v2316_v53 = vpop.f32.mrb[8].mxu1 }
 0x1f3   :  { %v2551_v57 = vpop.eup %2550  ;;  %v898_v58 = vadd.f32 1.0, %v2549_v56  ;;  %v3074_v59 = vadd.f32 %v2316_v53, %v3063_v27  ;;  %v707_v61 = vpop.f32.mrb[9].mxu1 }
 0x1f4   :  { %v2553_v37 = vpop.eup %2552  ;;  %v901_v0 = vadd.f32 1.0, %v2551_v57  ;;  %v3077_v3 = vadd.f32 %v3063_v27, %v707_v61  ;;  %v2317_v5 = vpop.f32.mrb[10].mxu1  ;;  %v932_v13 = vmul.f32 %v900_v50, %v804_v62 }
 0x1f5   :  { %v899_v10 = vadd.f32 1.0, %v2553_v37  ;;  %v844_v11 = vmul.f32 0.70710677, %v3074_v59  ;;  %v710_v12 = vpop.f32.mrb[11].mxu1  ;;  %v719_v17 = vadd.f32 %v2317_v5, %v3063_v27  ;;  %v930_v60 = vmul.f32 %v898_v58, %v802_v6 }
 0x1f6   :  { %v933_v15 = vmul.f32 %v901_v0, %v805_v63  ;;  %v842_v16 = vmul.f32 0.70710677, %v3077_v3  ;;  %v711_v18 = vadd.f32 %v3063_v27, %v710_v12  ;;  %v812_v57 = vmul.f32 0.5, %v3074_v59 }
 0x1f7   :  { %v931_v1 = vmul.f32 %v899_v10, %v803_v7  ;;  %2562 = verf.f32 %v844_v11  ;;  %v845_v2 = vmul.f32 0.70710677, %v719_v17  ;;  %v810_v63 = vmul.f32 0.5, %v3077_v3 }
 0x1f8   :  { %v963_v19 = vpack.c.bf16 %v933_v15, %v932_v13  ;;  %2564 = verf.f32 %v842_v16  ;;  %v843_v21 = vmul.f32 0.70710677, %v711_v18  ;;  %v813_v0 = vmul.f32 0.5, %v719_v17 }
 0x1f9   :  { %v2555_v4 = vpop.eup %2554  ;;  %v962_v8 = vpack.c.bf16 %v931_v1, %v930_v60  ;;  %2566 = verf.f32 %v845_v2  ;;  %v811_v10 = vmul.f32 0.5, %v711_v18 }
 0x1fa   :  { %v2557_v14 = vpop.eup %2556  ;;  %v904_v9 = vadd.f32 1.0, %v2555_v4  ;;  %v2320_v23 = vpop.f32.mrb[12].mxu1  ;;  %2568 = verf.f32 %v843_v21 }
 0x1fb   :  { %v2559_v20 = vpop.eup %2558  ;;  %v902_v22 = vadd.f32 1.0, %v2557_v14  ;;  %v3084_v24 = vadd.f32 %v2320_v23, %v3063_v27  ;;  %v723_v25 = vpop.f32.mrb[13].mxu1  ;;  %2354 = vmatprep.mubr.bf16.mxu0 %v962_v8 }
 0x1fc   :  { %v2561_v26 = vpop.eup %2560  ;;  %v905_v31 = vadd.f32 1.0, %v2559_v20  ;;  %v3087_v32 = vadd.f32 %v3063_v27, %v723_v25  ;;  %v2321_v33 = vpop.f32.mrb[14].mxu1  ;;  %2355 = vmatmul.mubr.bf16.vlgmr.msra.gmra.mrb[32].mxu0 %v963_v19  ;;  %v936_v43 = vmul.f32 %v904_v9, %v808_v28 }
 0x1fd   :  { %v903_v39 = vadd.f32 1.0, %v2561_v26  ;;  %v848_v40 = vmul.f32 0.70710677, %v3084_v24  ;;  %v726_v42 = vpop.f32.mrb[15].mxu1  ;;  %v735_v29 = vadd.f32 %v2321_v33, %v3063_v27  ;;  %v934_v46 = vmul.f32 %v902_v22, %v806_v36 }
 0x1fe   :  { %v937_v44 = vmul.f32 %v905_v31, %v809_v30  ;;  %v846_v45 = vmul.f32 0.70710677, %v3087_v32  ;;  %v727_v49 = vadd.f32 %v3063_v27, %v726_v42  ;;  %v816_v20 = vmul.f32 0.5, %v3084_v24 }
 0x1ff   :  { %v935_v48 = vmul.f32 %v903_v39, %v807_v38  ;;  %2570 = verf.f32 %v848_v40  ;;  %v849_v41 = vmul.f32 0.70710677, %v735_v29  ;;  %v814_v30 = vmul.f32 0.5, %v3087_v32 }
 0x200   :  { %2572 = verf.f32 %v846_v45  ;;  %v965_v51 = vpack.c.bf16 %v937_v44, %v936_v43  ;;  %v847_v35 = vmul.f32 0.70710677, %v727_v49  ;;  %v817_v31 = vmul.f32 0.5, %v735_v29 }
 0x201   :  { %v2563_v47 = vpop.eup %2562  ;;  %v964_v34 = vpack.c.bf16 %v935_v48, %v934_v46  ;;  %2574 = verf.f32 %v849_v41  ;;  %v815_v39 = vmul.f32 0.5, %v727_v49 }
 0x202   :  { %v2565_v52 = vpop.eup %2564  ;;  %v2324_v54 = vpop.f32.mrb[16].mxu1  ;;  %v908_v55 = vadd.f32 1.0, %v2563_v47  ;;  %2576 = verf.f32 %v847_v35 }
 0x203   :  { %v3094_v56 = vadd.f32 %v2324_v54, %v3063_v27  ;;  %v739_v50 = vpop.f32.mrb[17].mxu1  ;;  %2358 = vmatprep.mubr.bf16.mxu0 %v964_v34  ;;  %v2567_v53 = vpop.eup %2566  ;;  %v906_v58 = vadd.f32 1.0, %v2565_v52 }
 0x204   :  { %v3098_v61 = vadd.f32 %v3063_v27, %v739_v50  ;;  %v2325_v37 = vpop.f32.mrb[18].mxu1  ;;  %2359 = vmatmul.mubr.bf16.gmra.mrb[36].mxu0 %v965_v51  ;;  %v2569_v62 = vpop.eup %2568  ;;  %v909_v5 = vadd.f32 1.0, %v2567_v53  ;;  %v940_v13 = vmul.f32 %v908_v55, %v812_v57 }
 0x205   :  { %v852_v6 = vmul.f32 0.70710677, %v3094_v56  ;;  %v742_v7 = vpop.f32.mrb[19].mxu1  ;;  %v907_v11 = vadd.f32 1.0, %v2569_v62  ;;  %v3104_v59 = vadd.f32 %v2325_v37, %v3063_v27  ;;  %v938_v60 = vmul.f32 %v906_v58, %v810_v63 }
 0x206   :  { %v850_v12 = vmul.f32 0.70710677, %v3098_v61  ;;  %v941_v15 = vmul.f32 %v909_v5, %v813_v0  ;;  %v3107_v16 = vadd.f32 %v3063_v27, %v742_v7  ;;  %v820_v50 = vmul.f32 0.5, %v3094_v56 }
 0x207   :  { %2578 = verf.f32 %v852_v6  ;;  %v939_v3 = vmul.f32 %v907_v11, %v811_v10  ;;  %v853_v17 = vmul.f32 0.70710677, %v3104_v59  ;;  %v818_v62 = vmul.f32 0.5, %v3098_v61 }
 0x208   :  { %2580 = verf.f32 %v850_v12  ;;  %v851_v18 = vmul.f32 0.70710677, %v3107_v16  ;;  %v967_v19 = vpack.c.bf16 %v941_v15, %v940_v13  ;;  %v821_v63 = vmul.f32 0.5, %v3104_v59 }
 0x209   :  { %v2571_v1 = vpop.eup %2570  ;;  %2582 = verf.f32 %v853_v17  ;;  %v966_v21 = vpack.c.bf16 %v939_v3, %v938_v60  ;;  %v819_v7 = vmul.f32 0.5, %v3107_v16 }
 0x20a   :  { %v2573_v2 = vpop.eup %2572  ;;  %v2328_v4 = vpop.f32.mrb[20].mxu1  ;;  %v912_v8 = vadd.f32 1.0, %v2571_v1  ;;  %2584 = verf.f32 %v851_v18 }
 0x20b   :  { %v3112_v14 = vadd.f32 %v2328_v4, %v3063_v27  ;;  %v755_v9 = vpop.f32.mrb[21].mxu1  ;;  %v2575_v23 = vpop.eup %2574  ;;  %v910_v22 = vadd.f32 1.0, %v2573_v2  ;;  %2362 = vmatprep.mubr.bf16.mxu0 %v966_v21 }
 0x20c   :  { %v3116_v25 = vadd.f32 %v3063_v27, %v755_v9  ;;  %v2329_v26 = vpop.f32.mrb[22].mxu1  ;;  %v2577_v28 = vpop.eup %2576  ;;  %v913_v33 = vadd.f32 1.0, %v2575_v23  ;;  %2363 = vmatmul.mubr.bf16.gmra.mrb[40].mxu0 %v967_v19  ;;  %v944_v43 = vmul.f32 %v912_v8, %v816_v20 }
 0x20d   :  { %v856_v36 = vmul.f32 0.70710677, %v3112_v14  ;;  %v758_v38 = vpop.f32.mrb[23].mxu1  ;;  %v911_v40 = vadd.f32 1.0, %v2577_v28  ;;  %v3122_v24 = vadd.f32 %v2329_v26, %v3063_v27  ;;  %v942_v32 = vmul.f32 %v910_v22, %v814_v30 }
 0x20e   :  { %v854_v42 = vmul.f32 0.70710677, %v3116_v25  ;;  %v945_v44 = vmul.f32 %v913_v33, %v817_v31  ;;  %v3125_v45 = vadd.f32 %v3063_v27, %v758_v38  ;;  %v824_v9 = vmul.f32 0.5, %v3112_v14 }
 0x20f   :  { %2586 = verf.f32 %v856_v36  ;;  %v943_v29 = vmul.f32 %v911_v40, %v815_v39  ;;  %v857_v46 = vmul.f32 0.70710677, %v3122_v24  ;;  %v822_v28 = vmul.f32 0.5, %v3116_v25 }
 0x210   :  { %2588 = verf.f32 %v854_v42  ;;  %v855_v49 = vmul.f32 0.70710677, %v3125_v45  ;;  %v969_v41 = vpack.c.bf16 %v945_v44, %v944_v43  ;;  %v825_v30 = vmul.f32 0.5, %v3122_v24 }
 0x211   :  { %v2579_v48 = vpop.eup %2578  ;;  %2590 = verf.f32 %v857_v46  ;;  %v968_v35 = vpack.c.bf16 %v943_v29, %v942_v32  ;;  %v823_v38 = vmul.f32 0.5, %v3125_v45 }
 0x212   :  { %v2581_v51 = vpop.eup %2580  ;;  %v2332_v47 = vpop.f32.mrb[24].mxu1  ;;  %v916_v34 = vadd.f32 1.0, %v2579_v48  ;;  %2592 = verf.f32 %v855_v49 }
 0x213   :  { %v3130_v52 = vadd.f32 %v2332_v47, %v3063_v27  ;;  %v771_v54 = vpop.f32.mrb[25].mxu1  ;;  %v2583_v55 = vpop.eup %2582  ;;  %v914_v53 = vadd.f32 1.0, %v2581_v51  ;;  %2366 = vmatprep.mubr.bf16.mxu0 %v968_v35 }
 0x214   :  { %v3134_v57 = vadd.f32 %v3063_v27, %v771_v54  ;;  %v2333_v58 = vpop.f32.mrb[26].mxu1  ;;  %v2585_v37 = vpop.eup %2584  ;;  %v917_v0 = vadd.f32 1.0, %v2583_v55  ;;  %2367 = vmatmul.mubr.bf16.gmra.mrb[44].mxu0 %v969_v41  ;;  %v948_v12 = vmul.f32 %v916_v34, %v820_v50 }
 0x215   :  { %v860_v5 = vmul.f32 0.70710677, %v3130_v52  ;;  %v774_v6 = vpop.f32.mrb[27].mxu1  ;;  %v915_v10 = vadd.f32 1.0, %v2585_v37  ;;  %v783_v11 = vadd.f32 %v2333_v58, %v3063_v27  ;;  %v946_v61 = vmul.f32 %v914_v53, %v818_v62 }
 0x216   :  { %v858_v56 = vmul.f32 0.70710677, %v3134_v57  ;;  %v949_v13 = vmul.f32 %v917_v0, %v821_v63  ;;  %v775_v15 = vadd.f32 %v3063_v27, %v774_v6  ;;  %v828_v34 = vmul.f32 0.5, %v3130_v52 }
 0x217   :  { %2594 = verf.f32 %v860_v5  ;;  %v947_v60 = vmul.f32 %v915_v10, %v819_v7  ;;  %v861_v59 = vmul.f32 0.70710677, %v783_v11  ;;  %v829_v54 = vmul.f32 0.5, %v783_v11 }
 0x218   :  { %2596 = verf.f32 %v858_v56  ;;  %v859_v17 = vmul.f32 0.70710677, %v775_v15  ;;  %v971_v1 = vpack.c.bf16 %v949_v13, %v948_v12  ;;  %v826_v55 = vmul.f32 0.5, %v3134_v57 }
 0x219   :  { %v2587_v3 = vpop.eup %2586  ;;  %2598 = verf.f32 %v861_v59  ;;  %v970_v19 = vpack.c.bf16 %v947_v60, %v946_v61  ;;  %v827_v50 = vmul.f32 0.5, %v775_v15 }
 0x21a   :  { %v2589_v18 = vpop.eup %2588  ;;  %v2336_v16 = vpop.f32.mrb[28].mxu1  ;;  %v920_v2 = vadd.f32 1.0, %v2587_v3  ;;  %2600 = verf.f32 %v859_v17 }
 0x21b   :  { %v796_v4 = vadd.f32 %v2336_v16, %v3063_v27  ;;  %v787_v21 = vpop.f32.mrb[29].mxu1  ;;  %v2591_v8 = vpop.eup %2590  ;;  %v918_v23 = vadd.f32 1.0, %v2589_v18  ;;  %2370 = vmatprep.mubr.bf16.mxu0 %v970_v19  ;;  %v2474_v19 = vld [vmem:[%s3920_s7] sm:$0xff]  }
 0x21c   :  { %v788_v20 = vadd.f32 %v3063_v27, %v787_v21  ;;  %v2337_v22 = vpop.f32.mrb[30].mxu1  ;;  %v2593_v26 = vpop.eup %2592  ;;  %v921_v31 = vadd.f32 1.0, %v2591_v8  ;;  %2371 = vmatmul.mubr.bf16.gmra.mrb[48].mxu0 %v971_v1  ;;  %v952_v42 = vmul.f32 %v920_v2, %v824_v9  ;;  %v2475_v2 = vld [vmem:[%s3920_s7 + $0x8] sm:$0xff]   ;;  %2386 = vmatprep.subr.bf16.mxu1 %v2474_v19  ;;  %v2477_v21 = vld [vmem:[%s3920_s7 + $0x18] sm:$0xff]   ;;  %v3168_v8 = vld [vmem:[%s3921_s6] ss:$0 sm:$0xff] }
 0x21d   :  { %v864_v33 = vmul.f32 0.70710677, %v796_v4  ;;  %v790_v36 = vpop.f32.mrb[31].mxu1  ;;  %v919_v39 = vadd.f32 1.0, %v2593_v26  ;;  %v799_v14 = vadd.f32 %v2337_v22, %v3063_v27  ;;  %v950_v32 = vmul.f32 %v918_v23, %v822_v28  ;;  %2387 = vmatpush3.bf16.msra.mxu1 %v2474_v19 }
 0x21e   :  { %v862_v40 = vmul.f32 0.70710677, %v788_v20  ;;  %v953_v43 = vmul.f32 %v921_v31, %v825_v30  ;;  %v791_v44 = vadd.f32 %v3063_v27, %v790_v36  ;;  %v832_v11 = vmul.f32 0.5, %v796_v4  ;;  %v2476_v4 = vld [vmem:[%s3920_s7 + $0x10] sm:$0xff]   ;;  %2388 = vmatprep.subr.bf16.mxu1 %v2475_v2 }
 0x21f   :  { %2602 = verf.f32 %v864_v33  ;;  %v951_v29 = vmul.f32 %v919_v39, %v823_v38  ;;  %v865_v25 = vmul.f32 0.70710677, %v799_v14  ;;  %v833_v13 = vmul.f32 0.5, %v799_v14 }
 0x220   :  { %2604 = verf.f32 %v862_v40  ;;  %v863_v46 = vmul.f32 0.70710677, %v791_v44  ;;  %v973_v48 = vpack.c.bf16 %v953_v43, %v952_v42  ;;  %v830_v57 = vmul.f32 0.5, %v788_v20 }
 0x221   :  { %v2595_v24 = vpop.eup %2594  ;;  %2606 = verf.f32 %v865_v25  ;;  %v972_v41 = vpack.c.bf16 %v951_v29, %v950_v32  ;;  %v831_v15 = vmul.f32 0.5, %v791_v44  ;;  %2389 = vmatpush3.bf16.msra.mxu1 %v2475_v2 }
 0x222   :  { %v2597_v49 = vpop.eup %2596  ;;  %v924_v45 = vadd.f32 1.0, %v2595_v24  ;;  %2608 = verf.f32 %v863_v46  ;;  %2390 = vmatprep.subr.bf16.mxu1 %v2476_v4 }
 0x223   :  { %v2599_v51 = vpop.eup %2598  ;;  %v922_v47 = vadd.f32 1.0, %v2597_v49  ;;  %2374 = vmatprep.mubr.bf16.mxu0 %v972_v41 }
 0x224   :  { %v2601_v35 = vpop.eup %2600  ;;  %v925_v27 = vadd.f32 1.0, %v2599_v51  ;;  %2375 = vmatmul.mubr.bf16.gmra.mrb[52].mxu0 %v973_v48  ;;  %v956_v58 = vmul.f32 %v924_v45, %v828_v34 }
 0x225   :  { %v923_v53 = vadd.f32 1.0, %v2601_v35  ;;  %v954_v62 = vmul.f32 %v922_v47, %v826_v55  ;;  %2391 = vmatpush3.bf16.msra.mxu1 %v2476_v4 }
 0x226   :  { %v957_v37 = vmul.f32 %v925_v27, %v829_v54  ;;  %2392 = vmatprep.subr.bf16.mxu1 %v2477_v21 }
 0x227   :  { %v955_v63 = vmul.f32 %v923_v53, %v827_v50 }
 0x228   :  { %v975_v5 = vpack.c.bf16 %v957_v37, %v956_v58 }
 0x229   :  { %v2603_v0 = vpop.eup %2602  ;;  %v974_v7 = vpack.c.bf16 %v955_v63, %v954_v62  ;;  %2393 = vmatpush3.bf16.msra.mxu1 %v2477_v21 }
 0x22a   :  { %v2605_v6 = vpop.eup %2604  ;;  %v928_v10 = vadd.f32 1.0, %v2603_v0 }
 0x22b   :  { %v2607_v56 = vpop.eup %2606  ;;  %v926_v12 = vadd.f32 1.0, %v2605_v6  ;;  %2378 = vmatprep.mubr.bf16.mxu0 %v974_v7 }
 0x22c   :  { %v2609_v52 = vpop.eup %2608  ;;  %v929_v61 = vadd.f32 1.0, %v2607_v56  ;;  %2379 = vmatmul.mubr.bf16.gmra.mrb[56].mxu0 %v975_v5  ;;  %v960_v59 = vmul.f32 %v928_v10, %v832_v11 }
 0x22d   :  { %v927_v60 = vadd.f32 1.0, %v2609_v52  ;;  %v958_v17 = vmul.f32 %v926_v12, %v830_v57 }
 0x22e   :  { %v961_v3 = vmul.f32 %v929_v61, %v833_v13 }
 0x22f   :  { %v959_v1 = vmul.f32 %v927_v60, %v831_v15 }
 0x230   :  { %v977_v18 = vpack.c.bf16 %v961_v3, %v960_v59 }
 0x231   :  { %v976_v16 = vpack.c.bf16 %v959_v1, %v958_v17 }
 0x233   :  { %2382 = vmatprep.mubr.bf16.mxu0 %v976_v16 }
 0x234   :  { %2383 = vmatmul.mubr.bf16.gmra.mrb[60].mxu0 %v977_v18 }
 0x2cf   :  { %v2356_v9 = vpop.f32.mrb[32].mxu0 }
 0x2d0   :  { %v1092_v23 = vadd.f32 %v2356_v9, %v3168_v8  ;;  %v1083_v20 = vpop.f32.mrb[33].mxu0 }
 0x2d1   :  { %v1084_v22 = vadd.f32 %v3168_v8, %v1083_v20  ;;  %v2357_v26 = vpop.f32.mrb[34].mxu0 }
 0x2d2   :  { %v1244_v28 = vmul.f32 0.70710677, %v1092_v23  ;;  %v1095_v30 = vadd.f32 %v2357_v26, %v3168_v8  ;;  %v1086_v31 = vpop.f32.mrb[35].mxu0  ;;  %v1212_v51 = vmul.f32 0.5, %v1092_v23 }
 0x2d3   :  { %v1242_v33 = vmul.f32 0.70710677, %v1084_v22  ;;  %v1087_v36 = vadd.f32 %v3168_v8, %v1086_v31  ;;  %v1210_v34 = vmul.f32 0.5, %v1084_v22 }
 0x2d4   :  { %2610 = verf.f32 %v1244_v28  ;;  %v1245_v38 = vmul.f32 0.70710677, %v1095_v30  ;;  %v1213_v6 = vmul.f32 0.5, %v1095_v30 }
 0x2d5   :  { %2612 = verf.f32 %v1242_v33  ;;  %v1243_v39 = vmul.f32 0.70710677, %v1087_v36  ;;  %v1211_v52 = vmul.f32 0.5, %v1087_v36 }
 0x2d6   :  { %2614 = verf.f32 %v1245_v38 }
 0x2d7   :  { %2616 = verf.f32 %v1243_v39  ;;  %v2360_v40 = vpop.f32.mrb[36].mxu0 }
 0x2d8   :  { %v1108_v14 = vadd.f32 %v2360_v40, %v3168_v8  ;;  %v1099_v42 = vpop.f32.mrb[37].mxu0 }
 0x2d9   :  { %v1100_v43 = vadd.f32 %v3168_v8, %v1099_v42  ;;  %v2361_v44 = vpop.f32.mrb[38].mxu0 }
 0x2da   :  { %v1248_v32 = vmul.f32 0.70710677, %v1108_v14  ;;  %v3177_v29 = vadd.f32 %v2361_v44, %v3168_v8  ;;  %v1102_v25 = vpop.f32.mrb[39].mxu0  ;;  %v1216_v23 = vmul.f32 0.5, %v1108_v14 }
 0x2db   :  { %v1246_v24 = vmul.f32 0.70710677, %v1100_v43  ;;  %v3180_v46 = vadd.f32 %v3168_v8, %v1102_v25  ;;  %v1214_v1 = vmul.f32 0.5, %v1100_v43 }
 0x2dc   :  { %2618 = verf.f32 %v1248_v32  ;;  %v1249_v48 = vmul.f32 0.70710677, %v3177_v29  ;;  %v1217_v36 = vmul.f32 0.5, %v3177_v29 }
 0x2dd   :  { %2620 = verf.f32 %v1246_v24  ;;  %v1247_v49 = vmul.f32 0.70710677, %v3180_v46  ;;  %v1215_v38 = vmul.f32 0.5, %v3180_v46 }
 0x2de   :  { %v2611_v41 = vpop.eup %2610  ;;  %2622 = verf.f32 %v1249_v48 }
 0x2df   :  { %v2613_v45 = vpop.eup %2612  ;;  %2624 = verf.f32 %v1247_v49  ;;  %v1308_v47 = vadd.f32 1.0, %v2611_v41  ;;  %v2364_v54 = vpop.f32.mrb[40].mxu0 }
 0x2e0   :  { %v2615_v35 = vpop.eup %2614  ;;  %v1306_v27 = vadd.f32 1.0, %v2613_v45  ;;  %v3185_v50 = vadd.f32 %v2364_v54, %v3168_v8  ;;  %v1115_v53 = vpop.f32.mrb[41].mxu0 }
 0x2e1   :  { %v2617_v55 = vpop.eup %2616  ;;  %v3187_v58 = vmul.f32 %v1308_v47, %v1212_v51  ;;  %v1309_v37 = vadd.f32 1.0, %v2615_v35  ;;  %v3190_v62 = vadd.f32 %v3168_v8, %v1115_v53  ;;  %v2365_v63 = vpop.f32.mrb[42].mxu0 }
 0x2e2   :  { %v3192_v0 = vmul.f32 %v1306_v27, %v1210_v34  ;;  %v1307_v5 = vadd.f32 1.0, %v2617_v55  ;;  %v1252_v7 = vmul.f32 0.70710677, %v3185_v50  ;;  %v3196_v10 = vadd.f32 %v2365_v63, %v3168_v8  ;;  %v1118_v56 = vpop.f32.mrb[43].mxu0 }
 0x2e3   :  { %v1372_v12 = vmul.f32 %v3187_v58, %v3187_v58  ;;  %v1250_v11 = vmul.f32 0.70710677, %v3190_v62  ;;  %v3202_v13 = vadd.f32 %v3168_v8, %v1118_v56  ;;  %v3207_v15 = vmul.f32 %v1309_v37, %v1213_v6 }
 0x2e4   :  { %v1370_v61 = vmul.f32 %v3192_v0, %v3192_v0  ;;  %2626 = verf.f32 %v1252_v7  ;;  %v1253_v57 = vmul.f32 0.70710677, %v3196_v10  ;;  %v3210_v3 = vmul.f32 %v1307_v5, %v1211_v52 }
 0x2e5   :  { %1406 = vadd.xlane.f32.xlu1 %v1372_v12  ;;  %2628 = verf.f32 %v1250_v11  ;;  %v1251_v59 = vmul.f32 0.70710677, %v3202_v13  ;;  %v1373_v18 = vmul.f32 %v3207_v15, %v3207_v15  ;;  %v1218_v35 = vmul.f32 0.5, %v3190_v62 }
 0x2e6   :  { %v2619_v60 = vpop.eup %2618  ;;  %1402 = vadd.xlane.f32.xlu0 %v1370_v61  ;;  %2630 = verf.f32 %v1253_v57  ;;  %v1371_v2 = vmul.f32 %v3210_v3, %v3210_v3  ;;  %v1220_v37 = vmul.f32 0.5, %v3185_v50  ;;  %v1221_v63 = vmul.f32 0.5, %v3196_v10 }
 0x2e7   :  { %v2621_v17 = vpop.eup %2620  ;;  %2632 = verf.f32 %v1251_v59  ;;  %v2368_v19 = vpop.f32.mrb[44].mxu0  ;;  %v1312_v21 = vadd.f32 1.0, %v2619_v60  ;;  %v1219_v50 = vmul.f32 0.5, %v3202_v13 }
 0x2e8   :  { %v2623_v16 = vpop.eup %2622  ;;  %v1310_v4 = vadd.f32 1.0, %v2621_v17  ;;  %v3217_v20 = vadd.f32 %v2368_v19, %v3168_v8  ;;  %v1131_v22 = vpop.f32.mrb[45].mxu0 }
 0x2e9   :  { %v2625_v9 = vpop.eup %2624  ;;  %1408 = vadd.xlane.f32.xlu1 %v1373_v18  ;;  %v3220_v26 = vadd.f32 %v3168_v8, %v1131_v22  ;;  %v2369_v28 = vpop.f32.mrb[46].mxu0  ;;  %v1313_v33 = vadd.f32 1.0, %v2623_v16  ;;  %v3236_v32 = vmul.f32 %v1312_v21, %v1216_v23 }
 0x2ea   :  { %1404 = vadd.xlane.f32.xlu0 %v1371_v2  ;;  %v3222_v30 = vmul.f32 %v1310_v4, %v1214_v1  ;;  %v1311_v31 = vadd.f32 1.0, %v2625_v9  ;;  %v1256_v39 = vmul.f32 0.70710677, %v3217_v20  ;;  %v3228_v40 = vadd.f32 %v2369_v28, %v3168_v8  ;;  %v1134_v14 = vpop.f32.mrb[47].mxu0 }
 0x2eb   :  { %v1254_v42 = vmul.f32 0.70710677, %v3220_v26  ;;  %v3232_v43 = vadd.f32 %v3168_v8, %v1134_v14  ;;  %v3242_v46 = vmul.f32 %v1313_v33, %v1217_v36  ;;  %v1376_v51 = vmul.f32 %v3236_v32, %v3236_v32 }
 0x2ec   :  { %v1374_v44 = vmul.f32 %v3222_v30, %v3222_v30  ;;  %2634 = verf.f32 %v1256_v39  ;;  %v1257_v29 = vmul.f32 0.70710677, %v3228_v40  ;;  %v3239_v25 = vmul.f32 %v1311_v31, %v1215_v38 }
 0x2ed   :  { %2636 = verf.f32 %v1254_v42  ;;  %v1255_v24 = vmul.f32 0.70710677, %v3232_v43  ;;  %v1377_v62 = vmul.f32 %v3242_v46, %v3242_v46  ;;  %v1222_v2 = vmul.f32 0.5, %v3220_v26 }
 0x2ee   :  { %1410 = vadd.xlane.f32.xlu0 %v1374_v44  ;;  %v2627_v48 = vpop.eup %2626  ;;  %2638 = verf.f32 %v1257_v29  ;;  %v1375_v49 = vmul.f32 %v3239_v25, %v3239_v25  ;;  %v1224_v38 = vmul.f32 0.5, %v3217_v20  ;;  %v1223_v26 = vmul.f32 0.5, %v3232_v43 }
 0x2ef   :  { %v2629_v41 = vpop.eup %2628  ;;  %2640 = verf.f32 %v1255_v24  ;;  %v2372_v45 = vpop.f32.mrb[48].mxu0  ;;  %v1316_v55 = vadd.f32 1.0, %v2627_v48 }
 0x2f0   :  { %v2631_v47 = vpop.eup %2630  ;;  %v3250_v34 = vadd.f32 %v2372_v45, %v3168_v8  ;;  %v1147_v54 = vpop.f32.mrb[49].mxu0  ;;  %1412 = vadd.xlane.f32.xlu1 %v1375_v49  ;;  %v1314_v27 = vadd.f32 1.0, %v2629_v41 }
 0x2f1   :  { %v2633_v53 = vpop.eup %2632  ;;  %v3255_v5 = vadd.f32 %v3168_v8, %v1147_v54  ;;  %v2373_v6 = vpop.f32.mrb[50].mxu0  ;;  %v1317_v11 = vadd.f32 1.0, %v2631_v47  ;;  %v3273_v17 = vmul.f32 %v1316_v55, %v1220_v37 }
 0x2f2   :  { %1414 = vadd.xlane.f32.xlu0 %v1376_v51  ;;  %v1260_v7 = vmul.f32 0.70710677, %v3250_v34  ;;  %v3261_v56 = vadd.f32 %v2373_v6, %v3168_v8  ;;  %v1150_v12 = vpop.f32.mrb[51].mxu0  ;;  %v3263_v52 = vmul.f32 %v1314_v27, %v1218_v35  ;;  %v1315_v57 = vadd.f32 1.0, %v2633_v53 }
 0x2f3   :  { %v1258_v10 = vmul.f32 0.70710677, %v3255_v5  ;;  %v3268_v61 = vadd.f32 %v3168_v8, %v1150_v12  ;;  %v3278_v16 = vmul.f32 %v1317_v11, %v1221_v63  ;;  %v1380_v28 = vmul.f32 %v3273_v17, %v3273_v17 }
 0x2f4   :  { %2642 = verf.f32 %v1260_v7  ;;  %v1261_v60 = vmul.f32 0.70710677, %v3261_v56  ;;  %1416 = vadd.xlane.f32.xlu1 %v1377_v62  ;;  %v1378_v59 = vmul.f32 %v3263_v52, %v3263_v52  ;;  %v3276_v18 = vmul.f32 %v1315_v57, %v1219_v50 }
 0x2f5   :  { %2644 = verf.f32 %v1258_v10  ;;  %v1259_v1 = vmul.f32 0.70710677, %v3268_v61  ;;  %v1381_v24 = vmul.f32 %v3278_v16, %v3278_v16  ;;  %v1225_v35 = vmul.f32 0.5, %v3228_v40 }
 0x2f6   :  { %v2635_v13 = vpop.eup %2634  ;;  %2646 = verf.f32 %v1261_v60  ;;  %1418 = vadd.xlane.f32.xlu0 %v1378_v59  ;;  %v1379_v21 = vmul.f32 %v3276_v18, %v3276_v18  ;;  %v1226_v37 = vmul.f32 0.5, %v3255_v5  ;;  %v1228_v5 = vmul.f32 0.5, %v3250_v34 }
 0x2f7   :  { %v2637_v19 = vpop.eup %2636  ;;  %2648 = verf.f32 %v1259_v1  ;;  %v2376_v4 = vpop.f32.mrb[52].mxu0  ;;  %v1320_v33 = vadd.f32 1.0, %v2635_v13  ;;  %v1229_v60 = vmul.f32 0.5, %v3261_v56  ;;  %v1227_v59 = vmul.f32 0.5, %v3268_v61 }
 0x2f8   :  { %v2639_v9 = vpop.eup %2638  ;;  %v3284_v23 = vadd.f32 %v2376_v4, %v3168_v8  ;;  %v1163_v22 = vpop.f32.mrb[53].mxu0  ;;  %v1318_v31 = vadd.f32 1.0, %v2637_v19  ;;  %1420 = vadd.xlane.f32.xlu1 %v1379_v21 }
 0x2f9   :  { %v2641_v36 = vpop.eup %2640  ;;  %v3291_v39 = vadd.f32 %v3168_v8, %v1163_v22  ;;  %v2377_v14 = vpop.f32.mrb[54].mxu0  ;;  %v1321_v41 = vadd.f32 1.0, %v2639_v9  ;;  %v3308_v47 = vmul.f32 %v1320_v33, %v1224_v38 }
 0x2fa   :  { %v1264_v42 = vmul.f32 0.70710677, %v3284_v23  ;;  %v3295_v44 = vadd.f32 %v2377_v14, %v3168_v8  ;;  %v1166_v29 = vpop.f32.mrb[55].mxu0  ;;  %1422 = vadd.xlane.f32.xlu0 %v1380_v28  ;;  %v3299_v48 = vmul.f32 %v1318_v31, %v1222_v2  ;;  %v1319_v49 = vadd.f32 1.0, %v2641_v36 }
 0x2fb   :  { %v1262_v20 = vmul.f32 0.70710677, %v3291_v39  ;;  %v3303_v43 = vadd.f32 %v3168_v8, %v1166_v29  ;;  %v3317_v62 = vmul.f32 %v1321_v41, %v1225_v35  ;;  %v1384_v11 = vmul.f32 %v3308_v47, %v3308_v47 }
 0x2fc   :  { %2650 = verf.f32 %v1264_v42  ;;  %v1265_v45 = vmul.f32 0.70710677, %v3295_v44  ;;  %v1382_v51 = vmul.f32 %v3299_v48, %v3299_v48  ;;  %1424 = vadd.xlane.f32.xlu1 %v1381_v24  ;;  %v3312_v27 = vmul.f32 %v1319_v49, %v1223_v26 }
 0x2fd   :  { %2652 = verf.f32 %v1262_v20  ;;  %v1263_v54 = vmul.f32 0.70710677, %v3303_v43  ;;  %v1385_v61 = vmul.f32 %v3317_v62, %v3317_v62  ;;  %v1230_v29 = vmul.f32 0.5, %v3291_v39 }
 0x2fe   :  { %v2643_v55 = vpop.eup %2642  ;;  %2654 = verf.f32 %v1265_v45  ;;  %1426 = vadd.xlane.f32.xlu0 %v1382_v51  ;;  %v1383_v6 = vmul.f32 %v3312_v27, %v3312_v27 }
 0x2ff   :  { %v2645_v53 = vpop.eup %2644  ;;  %2656 = verf.f32 %v1263_v54  ;;  %v2380_v63 = vpop.f32.mrb[56].mxu0  ;;  %v1324_v10 = vadd.f32 1.0, %v2643_v55  ;;  %v2478_v55 = vld [vmem:[%s3920_s7 + $0x20] sm:$0xff]  }
 0x300   :  { %v2647_v40 = vpop.eup %2646  ;;  %v3320_v7 = vadd.f32 %v2380_v63, %v3168_v8  ;;  %v1179_v12 = vpop.f32.mrb[57].mxu0  ;;  %v1322_v50 = vadd.f32 1.0, %v2645_v53  ;;  %1428 = vadd.xlane.f32.xlu1 %v1383_v6  ;;  %v1232_v53 = vmul.f32 0.5, %v3284_v23  ;;  %2394 = vmatprep.subr.bf16.mxu1 %v2478_v55 }
 0x301   :  { %v2649_v57 = vpop.eup %2648  ;;  %v3328_v1 = vadd.f32 %v3168_v8, %v1179_v12  ;;  %v2381_v13 = vpop.f32.mrb[58].mxu0  ;;  %v1325_v9 = vadd.f32 1.0, %v2647_v40  ;;  %v3345_v33 = vmul.f32 %v1324_v10, %v1228_v5  ;;  %2395 = vmatpush3.bf16.msra.mxu1 %v2478_v55 }
 0x302   :  { %v1268_v19 = vmul.f32 0.70710677, %v3320_v7  ;;  %v3332_v2 = vadd.f32 %v2381_v13, %v3168_v8  ;;  %v1182_v4 = vpop.f32.mrb[59].mxu0  ;;  %1430 = vadd.xlane.f32.xlu0 %v1384_v11  ;;  %v3334_v21 = vmul.f32 %v1322_v50, %v1226_v37  ;;  %v1323_v22 = vadd.f32 1.0, %v2649_v57 }
 0x303   :  { %v1266_v34 = vmul.f32 0.70710677, %v3328_v1  ;;  %v3338_v56 = vadd.f32 %v3168_v8, %v1182_v4  ;;  %v3350_v14 = vmul.f32 %v1325_v9, %v1229_v60  ;;  %v1388_v51 = vmul.f32 %v3345_v33, %v3345_v33 }
 0x304   :  { %2658 = verf.f32 %v1268_v19  ;;  %v1269_v28 = vmul.f32 0.70710677, %v3332_v2  ;;  %v1386_v31 = vmul.f32 %v3334_v21, %v3334_v21  ;;  %1432 = vadd.xlane.f32.xlu1 %v1385_v61  ;;  %v3348_v38 = vmul.f32 %v1323_v22, %v1227_v59 }
 0x305   :  { %2660 = verf.f32 %v1266_v34  ;;  %v1267_v36 = vmul.f32 0.70710677, %v3338_v56  ;;  %v1231_v37 = vmul.f32 0.5, %v3303_v43  ;;  %v1389_v50 = vmul.f32 %v3350_v14, %v3350_v14 }
 0x306   :  { %v2651_v26 = vpop.eup %2650  ;;  %2662 = verf.f32 %v1269_v28  ;;  %1434 = vadd.xlane.f32.xlu0 %v1386_v31  ;;  %v1387_v20 = vmul.f32 %v3348_v38, %v3348_v38  ;;  %v1233_v19 = vmul.f32 0.5, %v3295_v44  ;;  %v1234_v31 = vmul.f32 0.5, %v3328_v1  ;;  %v2480_v1 = vld [vmem:[%s3920_s7 + $0x30] sm:$0xff]  }
 0x307   :  { %v2653_v42 = vpop.eup %2652  ;;  %2664 = verf.f32 %v1267_v36  ;;  %v2384_v24 = vpop.f32.mrb[60].mxu0  ;;  %v1328_v54 = vadd.f32 1.0, %v2651_v26 }
 0x308   :  { %v2655_v49 = vpop.eup %2654  ;;  %v3356_v41 = vadd.f32 %v2384_v24, %v3168_v8  ;;  %v1195_v45 = vpop.f32.mrb[61].mxu0  ;;  %v1326_v35 = vadd.f32 1.0, %v2653_v42  ;;  %1436 = vadd.xlane.f32.xlu1 %v1387_v20  ;;  %v1236_v24 = vmul.f32 0.5, %v3320_v7  ;;  %v1235_v20 = vmul.f32 0.5, %v3338_v56 }
 0x309   :  { %v2657_v39 = vpop.eup %2656  ;;  %v1196_v63 = vadd.f32 %v3168_v8, %v1195_v45  ;;  %v2385_v6 = vpop.f32.mrb[62].mxu0  ;;  %v1329_v5 = vadd.f32 1.0, %v2655_v49  ;;  %v3378_v13 = vmul.f32 %v1328_v54, %v1232_v53  ;;  %v1237_v56 = vmul.f32 0.5, %v3332_v2 }
 0x30a   :  { %v1272_v40 = vmul.f32 0.70710677, %v3356_v41  ;;  %v3368_v12 = vadd.f32 %v2385_v6, %v3168_v8  ;;  %v1198_v11 = vpop.f32.mrb[63].mxu0  ;;  %1438 = vadd.xlane.f32.xlu0 %v1388_v51  ;;  %v3372_v10 = vmul.f32 %v1326_v35, %v1230_v29  ;;  %v1327_v57 = vadd.f32 1.0, %v2657_v39 }
 0x30b   :  { %v1270_v23 = vmul.f32 0.70710677, %v1196_v63  ;;  %v1199_v43 = vadd.f32 %v3168_v8, %v1198_v11  ;;  %v2479_v8 = vld [vmem:[%s3920_s7 + $0x28] sm:$0xff]   ;;  %v3388_v28 = vmul.f32 %v1329_v5, %v1233_v19  ;;  %v1392_v36 = vmul.f32 %v3378_v13, %v3378_v13 }
 0x30c   :  { %2666 = verf.f32 %v1272_v40  ;;  %v1273_v60 = vmul.f32 0.70710677, %v3368_v12  ;;  %v1390_v59 = vmul.f32 %v3372_v10, %v3372_v10  ;;  %1440 = vadd.xlane.f32.xlu1 %v1389_v50  ;;  %v3381_v9 = vmul.f32 %v1327_v57, %v1231_v37  ;;  %2396 = vmatprep.subr.bf16.mxu1 %v2479_v8  ;;  %v2481_v37 = vld [vmem:[%s3920_s7 + $0x38] sm:$0xff]  }
 0x30d   :  { %2668 = verf.f32 %v1270_v23  ;;  %v1271_v4 = vmul.f32 0.70710677, %v1199_v43  ;;  %2397 = vmatpush3.bf16.msra.mxu1 %v2479_v8  ;;  %v1393_v51 = vmul.f32 %v3388_v28, %v3388_v28  ;;  %v1238_v50 = vmul.f32 0.5, %v1196_v63 }
 0x30e   :  { %v2659_v34 = vpop.eup %2658  ;;  %2670 = verf.f32 %v1273_v60  ;;  %1442 = vadd.xlane.f32.xlu0 %v1390_v59  ;;  %v1391_v22 = vmul.f32 %v3381_v9, %v3381_v9  ;;  %2398 = vmatprep.subr.bf16.mxu1 %v2480_v1  ;;  %v1240_v60 = vmul.f32 0.5, %v3356_v41  ;;  %v1239_v59 = vmul.f32 0.5, %v1199_v43 }
 0x30f   :  { %v2661_v61 = vpop.eup %2660  ;;  %2672 = verf.f32 %v1271_v4  ;;  %v1332_v42 = vadd.f32 1.0, %v2659_v34 }
 0x310   :  { %v2663_v44 = vpop.eup %2662  ;;  %v1330_v26 = vadd.f32 1.0, %v2661_v61  ;;  %1444 = vadd.xlane.f32.xlu1 %v1391_v22 }
 0x311   :  { %v2665_v29 = vpop.eup %2664  ;;  %v1333_v35 = vadd.f32 1.0, %v2663_v44  ;;  %v3406_v7 = vmul.f32 %v1332_v42, %v1236_v24  ;;  %2399 = vmatpush3.bf16.msra.mxu1 %v2480_v1  ;;  %v1241_v44 = vmul.f32 0.5, %v3368_v12 }
 0x312   :  { %1446 = vadd.xlane.f32.xlu0 %v1392_v36  ;;  %v3395_v49 = vmul.f32 %v1330_v26, %v1234_v31  ;;  %v1331_v45 = vadd.f32 1.0, %v2665_v29  ;;  %2400 = vmatprep.subr.bf16.mxu1 %v2481_v37 }
 0x313   :  { %v3414_v40 = vmul.f32 %v1333_v35, %v1237_v56  ;;  %v1396_v23 = vmul.f32 %v3406_v7, %v3406_v7 }
 0x314   :  { %v1394_v54 = vmul.f32 %v3395_v49, %v3395_v49  ;;  %v3404_v55 = vmul.f32 %v1331_v45, %v1235_v20  ;;  %1448 = vadd.xlane.f32.xlu1 %v1393_v51 }
 0x315   :  { %2401 = vmatpush3.bf16.msra.mxu1 %v2481_v37  ;;  %v1397_v34 = vmul.f32 %v3414_v40, %v3414_v40 }
 0x316   :  { %v2667_v39 = vpop.eup %2666  ;;  %1450 = vadd.xlane.f32.xlu0 %v1394_v54  ;;  %v1395_v53 = vmul.f32 %v3404_v55, %v3404_v55 }
 0x317   :  { %v2669_v6 = vpop.eup %2668  ;;  %v1336_v57 = vadd.f32 1.0, %v2667_v39 }
 0x318   :  { %v2671_v11 = vpop.eup %2670  ;;  %v1334_v2 = vadd.f32 1.0, %v2669_v6  ;;  %1452 = vadd.xlane.f32.xlu1 %v1395_v53 }
 0x319   :  { %v2673_v5 = vpop.eup %2672  ;;  %v1337_v63 = vadd.f32 1.0, %v2671_v11  ;;  %v3427_v22 = vmul.f32 %v1336_v57, %v1240_v60 }
 0x31a   :  { %1454 = vadd.xlane.f32.xlu0 %v1396_v23  ;;  %v3419_v19 = vmul.f32 %v1334_v2, %v1238_v50  ;;  %v1335_v4 = vadd.f32 1.0, %v2673_v5 }
 0x31b   :  { %v3432_v43 = vmul.f32 %v1337_v63, %v1241_v44  ;;  %v1400_v31 = vmul.f32 %v3427_v22, %v3427_v22 }
 0x31c   :  { %v1398_v8 = vmul.f32 %v3419_v19, %v3419_v19  ;;  %v3425_v61 = vmul.f32 %v1335_v4, %v1239_v59  ;;  %1456 = vadd.xlane.f32.xlu1 %v1397_v34 }
 0x31d   :  { %v1401_v36 = vmul.f32 %v3432_v43, %v3432_v43 }
 0x31e   :  { %1458 = vadd.xlane.f32.xlu0 %v1398_v8  ;;  %v1399_v41 = vmul.f32 %v3425_v61, %v3425_v61 }
 0x320   :  { %1460 = vadd.xlane.f32.xlu1 %v1399_v41 }
 0x322   :  { %1462 = vadd.xlane.f32.xlu0 %v1400_v31 }
 0x324   :  { %1464 = vadd.xlane.f32.xlu1 %v1401_v36 }
 0x372   :  { %v1407_v26 = vpop.xlane.xlu1 %1406 }
 0x373   :  { %2674 = vrsqrt.f32 %v1407_v26  ;;  %v1403_v42 = vpop.xlane.xlu0 %1402  ;;  %vm1482_vm0 = vcmp.eq.f32.partialorder %v1407_v26, inf  ;;  %vm1484_vm1 = vcmp.eq.f32.partialorder %v1407_v26, 0.0  ;;  %v1485_v35 = vand.u32 2147483648, %v1407_v26 }
 0x374   :  { %2676 = vrsqrt.f32 %v1403_v42  ;;  %vm1468_vm2 = vcmp.eq.f32.partialorder %v1403_v42, inf  ;;  %v1471_v53 = vand.u32 2147483648, %v1403_v42  ;;  %vm1470_vm3 = vcmp.eq.f32.partialorder %v1403_v42, 0.0 }
 0x376   :  { %v1409_v12 = vpop.xlane.xlu1 %1408 }
 0x377   :  { %2678 = vrsqrt.f32 %v1409_v12  ;;  %v1405_v29 = vpop.xlane.xlu0 %1404  ;;  %vm1489_vm4 = vcmp.eq.f32.partialorder %v1409_v12, inf  ;;  %vm1491_vm5 = vcmp.eq.f32.partialorder %v1409_v12, 0.0  ;;  %v1492_v4 = vand.u32 2147483648, %v1409_v12 }
 0x378   :  { %2680 = vrsqrt.f32 %v1405_v29  ;;  %vm1475_vm6 = vcmp.eq.f32.partialorder %v1405_v29, inf  ;;  %vm1477_vm7 = vcmp.eq.f32.partialorder %v1405_v29, 0.0  ;;  %v1478_v44 = vand.u32 2147483648, %v1405_v29 }
 0x37b   :  { %v1411_v24 = vpop.xlane.xlu0 %1410 }
 0x37c   :  { %2682 = vrsqrt.f32 %v1411_v24  ;;  %vm1496_vm8 = vcmp.eq.f32.partialorder %v1411_v24, inf  ;;  %vm1498_vm9 = vcmp.eq.f32.partialorder %v1411_v24, 0.0 }
 0x37d   :  { %v2675_v20 = vpop.eup %2674  ;;  %v3438_v51 = vpop.xlane.xlu1 %1412 }
 0x37e   :  { %v2677_v45 = vpop.eup %2676  ;;  %v1481_v1 = vmul.f32 %v2675_v20, %v1407_v26  ;;  %2684 = vrsqrt.f32 %v3438_v51  ;;  %vm1503_vm10 = vcmp.eq.f32.partialorder %v3438_v51, inf  ;;  %vm1505_vm11 = vcmp.eq.f32.partialorder %v3438_v51, 0.0 }
 0x37f   :  { %v1467_v54 = vmul.f32 %v2677_v45, %v1403_v42  ;;  %v3441_v56 = vpop.xlane.xlu0 %1414  ;;  %v1506_v20 = vand.u32 2147483648, %v3438_v51 }
 0x380   :  { %v1483_v39 = vsel %vm1482_vm0, %v1407_v26, %v1481_v1  ;;  %2686 = vrsqrt.f32 %v3441_v56  ;;  %v1499_v26 = vand.u32 2147483648, %v1411_v24  ;;  %vm1510_vm12 = vcmp.eq.f32.partialorder %v3441_v56, inf }
 0x381   :  { %v2679_v37 = vpop.eup %2678  ;;  %v1486_v6 = vsel %vm1484_vm1, %v1485_v35, %v1483_v39  ;;  %v1469_v11 = vsel %vm1468_vm2, %v1403_v42, %v1467_v54  ;;  %v3444_v57 = vpop.xlane.xlu1 %1416  ;;  %vm1512_vm13 = vcmp.eq.f32.partialorder %v3441_v56, 0.0 }
 0x382   :  { %v2681_v50 = vpop.eup %2680  ;;  %v1472_v23 = vsel %vm1470_vm3, %v1471_v53, %v1469_v11  ;;  %v1488_v2 = vmul.f32 %v2679_v37, %v1409_v12  ;;  %2688 = vrsqrt.f32 %v3444_v57  ;;  %v1692_v60 = vmax.f32 %v1486_v6, 1e-12 }
 0x383   :  { %v1474_v5 = vmul.f32 %v2681_v50, %v1405_v29  ;;  %v3447_v34 = vpop.xlane.xlu0 %1418  ;;  %v1690_v63 = vmax.f32 %v1472_v23, 1e-12  ;;  %v1513_v37 = vand.u32 2147483648, %v3441_v56  ;;  %vm1517_vm14 = vcmp.eq.f32.partialorder %v3444_v57, inf }
 0x384   :  { %v1490_v59 = vsel %vm1489_vm4, %v1409_v12, %v1488_v2  ;;  %2690 = vrsqrt.f32 %v3447_v34  ;;  %vm1519_vm15 = vcmp.eq.f32.partialorder %v3444_v57, 0.0  ;;  %vm1524_vm0 = vcmp.eq.f32.partialorder %v3447_v34, inf }
 0x385   :  { %v1476_v8 = vsel %vm1475_vm6, %v1405_v29, %v1474_v5  ;;  %v1493_v31 = vsel %vm1491_vm5, %v1492_v4, %v1490_v59  ;;  %v3452_v42 = vpop.xlane.xlu1 %1420  ;;  %2692 = vrcp.f32 %v1692_v60  ;;  %v1520_v4 = vand.u32 2147483648, %v3444_v57 }
 0x386   :  { %v2683_v41 = vpop.eup %2682  ;;  %v1479_v12 = vsel %vm1477_vm7, %v1478_v44, %v1476_v8  ;;  %2694 = vrcp.f32 %v1690_v63  ;;  %v1693_v1 = vmax.f32 %v1493_v31, 1e-12  ;;  %vm1526_vm1 = vcmp.eq.f32.partialorder %v3447_v34, 0.0 }
 0x387   :  { %v1495_v36 = vmul.f32 %v2683_v41, %v1411_v24  ;;  %v3456_v29 = vpop.xlane.xlu0 %1422  ;;  %2696 = vrsqrt.f32 %v3452_v42  ;;  %v1691_v6 = vmax.f32 %v1479_v12, 1e-12  ;;  %vm1531_vm2 = vcmp.eq.f32.partialorder %v3452_v42, inf }
 0x388   :  { %v2685_v45 = vpop.eup %2684  ;;  %2698 = vrsqrt.f32 %v3456_v29  ;;  %vm1533_vm3 = vcmp.eq.f32.partialorder %v3452_v42, 0.0  ;;  %vm1538_vm4 = vcmp.eq.f32.partialorder %v3456_v29, inf  ;;  %vm1540_vm5 = vcmp.eq.f32.partialorder %v3456_v29, 0.0 }
 0x389   :  { %v1497_v35 = vsel %vm1496_vm8, %v1411_v24, %v1495_v36  ;;  %v1502_v53 = vmul.f32 %v2685_v45, %v3438_v51  ;;  %v3467_v50 = vpop.xlane.xlu1 %1424 }
 0x38a   :  { %v2687_v54 = vpop.eup %2686  ;;  %v1500_v39 = vsel %vm1498_vm9, %v1499_v26, %v1497_v35  ;;  %2700 = vrsqrt.f32 %v3467_v50  ;;  %vm1545_vm6 = vcmp.eq.f32.partialorder %v3467_v50, inf  ;;  %vm1547_vm7 = vcmp.eq.f32.partialorder %v3467_v50, 0.0 }
 0x38b   :  { %v1509_v11 = vmul.f32 %v2687_v54, %v3441_v56  ;;  %v1694_v23 = vmax.f32 %v1500_v39, 1e-12  ;;  %v1504_v24 = vsel %vm1503_vm10, %v3438_v51, %v1502_v53  ;;  %v3474_v2 = vpop.xlane.xlu0 %1426  ;;  %2702 = vrcp.f32 %v1693_v1 }
 0x38c   :  { %v2689_v5 = vpop.eup %2688  ;;  %v1507_v60 = vsel %vm1505_vm11, %v1506_v20, %v1504_v24  ;;  %2704 = vrsqrt.f32 %v3474_v2  ;;  %v1527_v51 = vand.u32 2147483648, %v3447_v34  ;;  %v1534_v20 = vand.u32 2147483648, %v3452_v42 }
 0x38d   :  { %v1511_v59 = vsel %vm1510_vm12, %v3441_v56, %v1509_v11  ;;  %v1695_v63 = vmax.f32 %v1507_v60, 1e-12  ;;  %v1516_v44 = vmul.f32 %v2689_v5, %v3444_v57  ;;  %2706 = vrcp.f32 %v1691_v6  ;;  %v3489_v41 = vpop.xlane.xlu1 %1428 }
 0x38e   :  { %v1514_v8 = vsel %vm1512_vm13, %v1513_v37, %v1511_v59  ;;  %v2691_v31 = vpop.eup %2690  ;;  %2708 = vrcp.f32 %v1694_v23  ;;  %v1541_v1 = vand.u32 2147483648, %v3456_v29  ;;  %v1548_v6 = vand.u32 2147483648, %v3467_v50 }
 0x38f   :  { %v1696_v36 = vmax.f32 %v1514_v8, 1e-12  ;;  %v3493_v56 = vpop.xlane.xlu0 %1430  ;;  %2710 = vrcp.f32 %v1695_v63  ;;  %v1518_v26 = vsel %vm1517_vm14, %v3444_v57, %v1516_v44  ;;  %v1523_v12 = vmul.f32 %v2691_v31, %v3447_v34  ;;  %v3500_v45 = vpop.eup %2692 }
 0x390   :  { %2712 = vrsqrt.f32 %v3489_v41  ;;  %v2695_v35 = vpop.eup %2694  ;;  %v1521_v37 = vsel %vm1519_vm15, %v1520_v4, %v1518_v26  ;;  %vm1552_vm8 = vcmp.eq.f32.partialorder %v3474_v2, inf  ;;  %vm1554_vm9 = vcmp.eq.f32.partialorder %v3474_v2, 0.0 }
 0x391   :  { %v1525_v54 = vsel %vm1524_vm0, %v3447_v34, %v1523_v12  ;;  %2714 = vrsqrt.f32 %v3493_v56  ;;  %v3512_v39 = vpop.xlane.xlu1 %1432  ;;  %v2697_v53 = vpop.eup %2696  ;;  %v1555_v59 = vand.u32 2147483648, %v3474_v2  ;;  %vm1559_vm10 = vcmp.eq.f32.partialorder %v3489_v41, inf }
 0x392   :  { %2716 = vrcp.f32 %v1696_v36  ;;  %v2699_v23 = vpop.eup %2698  ;;  %v1528_v24 = vsel %vm1526_vm1, %v1527_v51, %v1525_v54  ;;  %v1530_v5 = vmul.f32 %v2697_v53, %v3452_v42  ;;  %v1697_v63 = vmax.f32 %v1521_v37, 1e-12 }
 0x393   :  { %v3518_v11 = vpop.xlane.xlu0 %1434  ;;  %2718 = vrsqrt.f32 %v3512_v39  ;;  %v1537_v57 = vmul.f32 %v2699_v23, %v3456_v29  ;;  %vm1561_vm11 = vcmp.eq.f32.partialorder %v3489_v41, 0.0  ;;  %v1562_v44 = vand.u32 2147483648, %v3489_v41 }
 0x394   :  { %v2701_v60 = vpop.eup %2700  ;;  %2720 = vrsqrt.f32 %v3518_v11  ;;  %v1532_v34 = vsel %vm1531_vm2, %v3452_v42, %v1530_v5  ;;  %v1698_v36 = vmax.f32 %v1528_v24, 1e-12  ;;  %vm1566_vm12 = vcmp.eq.f32.partialorder %v3493_v56, inf }
 0x395   :  { %v3529_v4 = vpop.eup %2702  ;;  %v1544_v8 = vmul.f32 %v2701_v60, %v3467_v50  ;;  %v3537_v51 = vpop.xlane.xlu1 %1436  ;;  %v1535_v26 = vsel %vm1533_vm3, %v1534_v20, %v1532_v34  ;;  %v1539_v12 = vsel %vm1538_vm4, %v3456_v29, %v1537_v57  ;;  %vm1568_vm13 = vcmp.eq.f32.partialorder %v3493_v56, 0.0 }
 0x396   :  { %v2705_v31 = vpop.eup %2704  ;;  %2722 = vrsqrt.f32 %v3537_v51  ;;  %v1699_v37 = vmax.f32 %v1535_v26, 1e-12  ;;  %v1542_v23 = vsel %vm1540_vm5, %v1541_v1, %v1539_v12  ;;  %v1569_v5 = vand.u32 2147483648, %v3493_v56 }
 0x397   :  { %v3545_v54 = vpop.xlane.xlu0 %1438  ;;  %v2707_v53 = vpop.eup %2706  ;;  %v1546_v24 = vsel %vm1545_vm6, %v3467_v50, %v1544_v8  ;;  %v1551_v42 = vmul.f32 %v2705_v31, %v3474_v2  ;;  %v1723_v60 = vmul.f32 %v2695_v35, %v3192_v0  ;;  %2724 = vrcp.f32 %v1697_v63 }
 0x398   :  { %v3553_v20 = vpop.eup %2708  ;;  %v1700_v29 = vmax.f32 %v1542_v23, 1e-12  ;;  %vm1573_vm14 = vcmp.eq.f32.partialorder %v3512_v39, inf  ;;  %2726 = vrcp.f32 %v1698_v36  ;;  %v1549_v31 = vsel %vm1547_vm7, %v1548_v6, %v1546_v24 }
 0x399   :  { %v3559_v57 = vpop.eup %2710  ;;  %v1553_v1 = vsel %vm1552_vm8, %v3474_v2, %v1551_v42  ;;  %v3565_v34 = vpop.xlane.xlu1 %1440  ;;  %vm1575_vm15 = vcmp.eq.f32.partialorder %v3512_v39, 0.0  ;;  %v1576_v0 = vand.u32 2147483648, %v3512_v39  ;;  %2728 = vrcp.f32 %v1699_v37 }
 0x39a   :  { %v2713_v8 = vpop.eup %2712  ;;  %vm1580_vm0 = vcmp.eq.f32.partialorder %v3518_v11, inf  ;;  %v1725_v12 = vmul.f32 %v2707_v53, %v3210_v3  ;;  %v1556_v50 = vsel %vm1554_vm9, %v1555_v59, %v1553_v1  ;;  %vm1582_vm1 = vcmp.eq.f32.partialorder %v3518_v11, 0.0 }
 0x39b   :  { %v3571_v35 = vpop.xlane.xlu0 %1442  ;;  %v2715_v63 = vpop.eup %2714  ;;  %v1558_v26 = vmul.f32 %v2713_v8, %v3489_v41  ;;  %2730 = vrsqrt.f32 %v3545_v54  ;;  %v1701_v37 = vmax.f32 %v1549_v31, 1e-12  ;;  %v1702_v8 = vmax.f32 %v1556_v50, 1e-12 }
 0x39c   :  { %v3576_v23 = vpop.eup %2716  ;;  %v1565_v6 = vmul.f32 %v2715_v63, %v3493_v56  ;;  %2732 = vrcp.f32 %v1700_v29  ;;  %v1786_v42 = vpack.c.bf16 %v1725_v12, %v1723_v60  ;;  %v1729_v12 = vmul.f32 %v3529_v4, %v3207_v15 }
 0x39d   :  { %v2719_v36 = vpop.eup %2718  ;;  %v1560_v24 = vsel %vm1559_vm10, %v3489_v41, %v1558_v26  ;;  %v3586_v3 = vpop.xlane.xlu1 %1444  ;;  %2734 = vrsqrt.f32 %v3565_v34  ;;  %v1727_v26 = vmul.f32 %v3500_v45, %v3187_v58  ;;  %v1583_v58 = vand.u32 2147483648, %v3518_v11 }
 0x39e   :  { %v2721_v53 = vpop.eup %2720  ;;  %v1563_v2 = vsel %vm1561_vm11, %v1562_v44, %v1560_v24  ;;  %v1567_v59 = vsel %vm1566_vm12, %v3493_v56, %v1565_v6  ;;  %v1572_v1 = vmul.f32 %v2719_v36, %v3512_v39  ;;  %2402 = vmatprep.mubr.bf16.mxu1 %v1786_v42  ;;  %2736 = vrsqrt.f32 %v3571_v35 }
 0x39f   :  { %v3595_v29 = vpop.xlane.xlu0 %1446  ;;  %v1703_v31 = vmax.f32 %v1563_v2, 1e-12  ;;  %v1570_v60 = vsel %vm1568_vm13, %v1569_v5, %v1567_v59  ;;  %v1579_v63 = vmul.f32 %v2721_v53, %v3518_v11  ;;  %2738 = vrcp.f32 %v1701_v37 }
 0x3a0   :  { %v2723_v41 = vpop.eup %2722  ;;  %v1574_v44 = vsel %vm1573_vm14, %v3512_v39, %v1572_v1  ;;  %v1704_v50 = vmax.f32 %v1570_v60, 1e-12  ;;  %vm1587_vm2 = vcmp.eq.f32.partialorder %v3537_v51, inf  ;;  %v1787_v15 = vpack.c.bf16 %v1729_v12, %v1727_v26 }
 0x3a1   :  { %v1577_v56 = vsel %vm1575_vm15, %v1576_v0, %v1574_v44  ;;  %v1581_v5 = vsel %vm1580_vm0, %v3518_v11, %v1579_v63  ;;  %v1586_v6 = vmul.f32 %v2723_v41, %v3537_v51  ;;  %v3614_v36 = vpop.xlane.xlu1 %1448  ;;  %v2725_v45 = vpop.eup %2724  ;;  %2740 = vrcp.f32 %v1702_v8 }
 0x3a2   :  { %v1705_v4 = vmax.f32 %v1577_v56, 1e-12  ;;  %vm1589_vm3 = vcmp.eq.f32.partialorder %v3537_v51, 0.0  ;;  %v3620_v0 = vpop.eup %2726  ;;  %2742 = vrcp.f32 %v1703_v31  ;;  %v1584_v24 = vsel %vm1582_vm1, %v1583_v58, %v1581_v5  ;;  %2403 = vmatmul.mubr.bf16.vlgmr.msra.gmra.mrb[32].mxu1 %v1787_v15 }
 0x3a3   :  { %v1588_v39 = vsel %vm1587_vm2, %v3537_v51, %v1586_v6  ;;  %v1590_v37 = vand.u32 2147483648, %v3537_v51  ;;  %vm1594_vm4 = vcmp.eq.f32.partialorder %v3545_v54, inf  ;;  %v3626_v42 = vpop.xlane.xlu0 %1450  ;;  %v2729_v53 = vpop.eup %2728  ;;  %2744 = vrcp.f32 %v1704_v50 }
 0x3a4   :  { %vm1596_vm5 = vcmp.eq.f32.partialorder %v3545_v54, 0.0  ;;  %v1597_v2 = vand.u32 2147483648, %v3545_v54  ;;  %vm1601_vm6 = vcmp.eq.f32.partialorder %v3565_v34, inf  ;;  %2746 = vrsqrt.f32 %v3586_v3 }
 0x3a5   :  { %v2731_v59 = vpop.eup %2730  ;;  %v1591_v1 = vsel %vm1589_vm3, %v1590_v37, %v1588_v39  ;;  %v1731_v11 = vmul.f32 %v3553_v20, %v3222_v30  ;;  %v1733_v51 = vmul.f32 %v3559_v57, %v3239_v25  ;;  %2748 = vrcp.f32 %v1705_v4  ;;  %v3640_v63 = vpop.xlane.xlu1 %1452 }
 0x3a6   :  { %v3636_v8 = vpop.eup %2732  ;;  %v1706_v31 = vmax.f32 %v1584_v24, 1e-12  ;;  %v1593_v60 = vmul.f32 %v2731_v59, %v3545_v54  ;;  %vm1603_vm7 = vcmp.eq.f32.partialorder %v3565_v34, 0.0  ;;  %v1604_v44 = vand.u32 2147483648, %v3565_v34 }
 0x3a7   :  { %v2735_v41 = vpop.eup %2734  ;;  %vm1608_vm8 = vcmp.eq.f32.partialorder %v3571_v35, inf  ;;  %v1788_v26 = vpack.c.bf16 %v1733_v51, %v1731_v11  ;;  %2750 = vrsqrt.f32 %v3595_v29  ;;  %v1707_v30 = vmax.f32 %v1591_v1, 1e-12  ;;  %v3655_v56 = vpop.xlane.xlu0 %1454 }
 0x3a8   :  { %v1600_v25 = vmul.f32 %v2735_v41, %v3565_v34  ;;  %vm1610_vm9 = vcmp.eq.f32.partialorder %v3571_v35, 0.0  ;;  %2752 = vrsqrt.f32 %v3614_v36  ;;  %v2737_v20 = vpop.eup %2736  ;;  %v1595_v57 = vsel %vm1594_vm4, %v3545_v54, %v1593_v60 }
 0x3a9   :  { %2406 = vmatprep.mubr.bf16.mxu1 %v1788_v26  ;;  %v1735_v12 = vmul.f32 %v3576_v23, %v3236_v32  ;;  %v1737_v50 = vmul.f32 %v2725_v45, %v3242_v46  ;;  %2754 = vrsqrt.f32 %v3626_v42  ;;  %v1607_v5 = vmul.f32 %v2737_v20, %v3571_v35  ;;  %v2739_v58 = vpop.eup %2738  ;;  %v3671_v4 = vpop.xlane.xlu1 %1456 }
 0x3aa   :  { %2756 = vrcp.f32 %v1706_v31  ;;  %v1611_v6 = vand.u32 2147483648, %v3571_v35  ;;  %vm1615_vm10 = vcmp.eq.f32.partialorder %v3586_v3, inf  ;;  %v1602_v15 = vsel %vm1601_vm6, %v3565_v34, %v1600_v25 }
 0x3ab   :  { %vm1617_vm11 = vcmp.eq.f32.partialorder %v3586_v3, 0.0  ;;  %v1618_v32 = vand.u32 2147483648, %v3586_v3  ;;  %v1789_v46 = vpack.c.bf16 %v1737_v50, %v1735_v12  ;;  %v3665_v23 = vpop.eup %2740  ;;  %2758 = vrcp.f32 %v1707_v30  ;;  %v3692_v60 = vpop.xlane.xlu0 %1458 }
 0x3ac   :  { %v1598_v45 = vsel %vm1596_vm5, %v1597_v2, %v1595_v57  ;;  %vm1622_vm12 = vcmp.eq.f32.partialorder %v3595_v29, inf  ;;  %vm1624_vm13 = vcmp.eq.f32.partialorder %v3595_v29, 0.0  ;;  %v3673_v39 = vpop.eup %2742  ;;  %v1609_v24 = vsel %vm1608_vm8, %v3571_v35, %v1607_v5 }
 0x3ad   :  { %v1625_v37 = vand.u32 2147483648, %v3595_v29  ;;  %vm1629_vm14 = vcmp.eq.f32.partialorder %v3614_v36, inf  ;;  %2407 = vmatmul.mubr.bf16.gmra.mrb[36].mxu1 %v1789_v46  ;;  %2760 = vrsqrt.f32 %v3640_v63  ;;  %v3681_v54 = vpop.eup %2744  ;;  %v1605_v2 = vsel %vm1603_vm7, %v1604_v44, %v1602_v15  ;;  %v3710_v57 = vpop.xlane.xlu1 %1460 }
 0x3ae   :  { %vm1631_vm15 = vcmp.eq.f32.partialorder %v3614_v36, 0.0  ;;  %v1739_v59 = vmul.f32 %v3620_v0, %v3263_v52  ;;  %v1741_v1 = vmul.f32 %v2729_v53, %v3276_v18  ;;  %v2747_v11 = vpop.eup %2746  ;;  %v1708_v51 = vmax.f32 %v1598_v45, 1e-12 }
 0x3af   :  { %v1632_v31 = vand.u32 2147483648, %v3614_v36  ;;  %vm1636_vm0 = vcmp.eq.f32.partialorder %v3626_v42, inf  ;;  %2762 = vrsqrt.f32 %v3655_v56  ;;  %v3694_v41 = vpop.eup %2748  ;;  %v1612_v34 = vsel %vm1610_vm9, %v1611_v6, %v1609_v24 }
 0x3b0   :  { %v1614_v44 = vmul.f32 %v2747_v11, %v3586_v3  ;;  %vm1638_vm1 = vcmp.eq.f32.partialorder %v3626_v42, 0.0  ;;  %v1790_v52 = vpack.c.bf16 %v1741_v1, %v1739_v59  ;;  %v1709_v0 = vmax.f32 %v1605_v2, 1e-12  ;;  %v3740_v1 = vpop.xlane.xlu0 %1462 }
 0x3b1   :  { %v2751_v18 = vpop.eup %2750  ;;  %v1639_v53 = vand.u32 2147483648, %v3626_v42  ;;  %2764 = vrsqrt.f32 %v3671_v4  ;;  %v1743_v26 = vmul.f32 %v3636_v8, %v3273_v17  ;;  %v1745_v20 = vmul.f32 %v2739_v58, %v3278_v16 }
 0x3b2   :  { %v2753_v30 = vpop.eup %2752  ;;  %v1616_v35 = vsel %vm1615_vm10, %v3586_v3, %v1614_v44  ;;  %v1621_v25 = vmul.f32 %v2751_v18, %v3595_v29  ;;  %2410 = vmatprep.mubr.bf16.mxu1 %v1790_v52  ;;  %2766 = vrsqrt.f32 %v3692_v60  ;;  %v1710_v50 = vmax.f32 %v1612_v34, 1e-12  ;;  %v3748_v52 = vpop.xlane.xlu1 %1464 }
 0x3b3   :  { %v2755_v12 = vpop.eup %2754  ;;  %2768 = vrcp.f32 %v1708_v51  ;;  %v1619_v17 = vsel %vm1617_vm11, %v1618_v32, %v1616_v35  ;;  %v1628_v8 = vmul.f32 %v2753_v30, %v3614_v36  ;;  %v1791_v58 = vpack.c.bf16 %v1745_v20, %v1743_v26 }
 0x3b4   :  { %v3715_v5 = vpop.eup %2756  ;;  %v1711_v6 = vmax.f32 %v1619_v17, 1e-12  ;;  %v1623_v15 = vsel %vm1622_vm12, %v3595_v29, %v1621_v25  ;;  %v1635_v16 = vmul.f32 %v2755_v12, %v3626_v42  ;;  %vm1643_vm2 = vcmp.eq.f32.partialorder %v3640_v63, inf }
 0x3b5   :  { %v1626_v46 = vsel %vm1624_vm13, %v1625_v37, %v1623_v15  ;;  %v1630_v3 = vsel %vm1629_vm14, %v3614_v36, %v1628_v8  ;;  %2770 = vrsqrt.f32 %v3710_v57  ;;  %v2759_v32 = vpop.eup %2758  ;;  %2411 = vmatmul.mubr.bf16.gmra.mrb[40].mxu1 %v1791_v58  ;;  %vm1645_vm3 = vcmp.eq.f32.partialorder %v3640_v63, 0.0 }
 0x3b6   :  { %2772 = vrcp.f32 %v1709_v0  ;;  %v1712_v45 = vmax.f32 %v1626_v46, 1e-12  ;;  %v1633_v24 = vsel %vm1631_vm15, %v1632_v31, %v1630_v3  ;;  %v1637_v2 = vsel %vm1636_vm0, %v3626_v42, %v1635_v16 }
 0x3b7   :  { %v2761_v29 = vpop.eup %2760  ;;  %2774 = vrcp.f32 %v1711_v6  ;;  %v1646_v37 = vand.u32 2147483648, %v3640_v63  ;;  %vm1650_vm4 = vcmp.eq.f32.partialorder %v3655_v56, inf  ;;  %vm1652_vm5 = vcmp.eq.f32.partialorder %v3655_v56, 0.0 }
 0x3b8   :  { %2776 = vrcp.f32 %v1710_v50  ;;  %v1642_v59 = vmul.f32 %v2761_v29, %v3640_v63  ;;  %v1653_v36 = vand.u32 2147483648, %v3655_v56  ;;  %vm1657_vm6 = vcmp.eq.f32.partialorder %v3671_v4, inf }
 0x3b9   :  { %v2763_v11 = vpop.eup %2762  ;;  %v1713_v51 = vmax.f32 %v1633_v24, 1e-12  ;;  %v1640_v31 = vsel %vm1638_vm1, %v1639_v53, %v1637_v2  ;;  %v1747_v34 = vmul.f32 %v3665_v23, %v3299_v48  ;;  %v1749_v44 = vmul.f32 %v3673_v39, %v3312_v27 }
 0x3ba   :  { %2778 = vrcp.f32 %v1712_v45  ;;  %v1644_v18 = vsel %vm1643_vm2, %v3640_v63, %v1642_v59  ;;  %v1649_v0 = vmul.f32 %v2763_v11, %v3655_v56  ;;  %vm1659_vm7 = vcmp.eq.f32.partialorder %v3671_v4, 0.0 }
 0x3bb   :  { %v2765_v26 = vpop.eup %2764  ;;  %v1647_v42 = vsel %vm1645_vm3, %v1646_v37, %v1644_v18  ;;  %v1660_v48 = vand.u32 2147483648, %v3671_v4  ;;  %v1792_v23 = vpack.c.bf16 %v1749_v44, %v1747_v34  ;;  %2780 = vrsqrt.f32 %v3740_v1 }
 0x3bc   :  { %v2767_v27 = vpop.eup %2766  ;;  %v1714_v39 = vmax.f32 %v1640_v31, 1e-12  ;;  %v1715_v53 = vmax.f32 %v1647_v42, 1e-12  ;;  %v1656_v30 = vmul.f32 %v2765_v26, %v3671_v4  ;;  %2782 = vrsqrt.f32 %v3748_v52 }
 0x3bd   :  { %v2769_v35 = vpop.eup %2768  ;;  %2784 = vrcp.f32 %v1713_v51  ;;  %v1663_v25 = vmul.f32 %v2767_v27, %v3692_v60  ;;  %vm1664_vm8 = vcmp.eq.f32.partialorder %v3692_v60, inf  ;;  %vm1666_vm9 = vcmp.eq.f32.partialorder %v3692_v60, 0.0  ;;  %2414 = vmatprep.mubr.bf16.mxu1 %v1792_v23 }
 0x3be   :  { %2786 = vrcp.f32 %v1715_v53  ;;  %v1651_v63 = vsel %vm1650_vm4, %v3655_v56, %v1649_v0  ;;  %v1658_v20 = vsel %vm1657_vm6, %v3671_v4, %v1656_v30  ;;  %v1667_v12 = vand.u32 2147483648, %v3692_v60 }
 0x3bf   :  { %v2771_v50 = vpop.eup %2770  ;;  %v1661_v17 = vsel %vm1659_vm7, %v1660_v48, %v1658_v20  ;;  %v1665_v8 = vsel %vm1664_vm8, %v3692_v60, %v1663_v25  ;;  %v1751_v6 = vmul.f32 %v3681_v54, %v3308_v47  ;;  %v1753_v15 = vmul.f32 %v3694_v41, %v3317_v62 }
 0x3c0   :  { %v2773_v16 = vpop.eup %2772  ;;  %2788 = vrcp.f32 %v1714_v39  ;;  %v1670_v58 = vmul.f32 %v2771_v50, %v3710_v57  ;;  %vm1671_vm10 = vcmp.eq.f32.partialorder %v3710_v57, inf  ;;  %v1674_v46 = vand.u32 2147483648, %v3710_v57 }
 0x3c1   :  { %v2775_v3 = vpop.eup %2774  ;;  %v1654_v4 = vsel %vm1652_vm5, %v1653_v36, %v1651_v63  ;;  %v1793_v45 = vpack.c.bf16 %v1753_v15, %v1751_v6  ;;  %v1755_v24 = vmul.f32 %v3715_v5, %v3334_v21  ;;  %v1757_v47 = vmul.f32 %v2759_v32, %v3348_v38 }
 0x3c2   :  { %v2777_v54 = vpop.eup %2776  ;;  %v1717_v62 = vmax.f32 %v1661_v17, 1e-12  ;;  %v1668_v41 = vsel %vm1666_vm9, %v1667_v12, %v1665_v8  ;;  %v1672_v2 = vsel %vm1671_vm10, %v3710_v57, %v1670_v58  ;;  %vm1673_vm11 = vcmp.eq.f32.partialorder %v3710_v57, 0.0 }
 0x3c3   :  { %v1675_v29 = vsel %vm1673_vm11, %v1674_v46, %v1672_v2  ;;  %2415 = vmatmul.mubr.bf16.gmra.mrb[44].mxu1 %v1793_v45  ;;  %v1794_v37 = vpack.c.bf16 %v1757_v47, %v1755_v24  ;;  %v1761_v56 = vmul.f32 %v2773_v16, %v3350_v14  ;;  %v1716_v36 = vmax.f32 %v1654_v4, 1e-12 }
 0x3c4   :  { %v2779_v59 = vpop.eup %2778  ;;  %v1719_v11 = vmax.f32 %v1675_v29, 1e-12  ;;  %v1765_v21 = vmul.f32 %v2775_v3, %v3381_v9  ;;  %v1718_v5 = vmax.f32 %v1668_v41, 1e-12  ;;  %vm1678_vm12 = vcmp.eq.f32.partialorder %v3740_v1, inf }
 0x3c5   :  { %v2781_v38 = vpop.eup %2780  ;;  %vm1680_vm13 = vcmp.eq.f32.partialorder %v3740_v1, 0.0  ;;  %2418 = vmatprep.mubr.bf16.mxu1 %v1794_v37  ;;  %v1759_v60 = vmul.f32 %v2769_v35, %v3345_v33  ;;  %2790 = vrcp.f32 %v1717_v62  ;;  %v1681_v14 = vand.u32 2147483648, %v3740_v1 }
 0x3c6   :  { %v2783_v57 = vpop.eup %2782  ;;  %v1677_v32 = vmul.f32 %v2781_v38, %v3740_v1  ;;  %v1763_v51 = vmul.f32 %v2777_v54, %v3372_v10  ;;  %2792 = vrcp.f32 %v1719_v11  ;;  %vm1685_vm14 = vcmp.eq.f32.partialorder %v3748_v52, inf }
 0x3c7   :  { %v2785_v31 = vpop.eup %2784  ;;  %v1684_v9 = vmul.f32 %v2783_v57, %v3748_v52  ;;  %v1795_v34 = vpack.c.bf16 %v1761_v56, %v1759_v60  ;;  %2794 = vrcp.f32 %v1716_v36  ;;  %v1688_v18 = vand.u32 2147483648, %v3748_v52 }
 0x3c8   :  { %v2787_v44 = vpop.eup %2786  ;;  %v1679_v33 = vsel %vm1678_vm12, %v3740_v1, %v1677_v32  ;;  %v1796_v0 = vpack.c.bf16 %v1765_v21, %v1763_v51  ;;  %2796 = vrcp.f32 %v1718_v5  ;;  %vm1687_vm15 = vcmp.eq.f32.partialorder %v3748_v52, 0.0 }
 0x3c9   :  { %v1682_v10 = vsel %vm1680_vm13, %v1681_v14, %v1679_v33  ;;  %v1686_v26 = vsel %vm1685_vm14, %v3748_v52, %v1684_v9  ;;  %v1769_v27 = vmul.f32 %v2785_v31, %v3388_v28  ;;  %v1773_v53 = vmul.f32 %v2787_v44, %v3404_v55 }
 0x3ca   :  { %v2789_v42 = vpop.eup %2788  ;;  %v1689_v48 = vsel %vm1687_vm15, %v1688_v18, %v1686_v26  ;;  %v1720_v39 = vmax.f32 %v1682_v10, 1e-12  ;;  %v1767_v30 = vmul.f32 %v2779_v59, %v3378_v13 }
 0x3cb   :  { %v1721_v23 = vmax.f32 %v1689_v48, 1e-12  ;;  %2419 = vmatmul.mubr.bf16.gmra.mrb[48].mxu1 %v1795_v34  ;;  %v1771_v1 = vmul.f32 %v2789_v42, %v3395_v49 }
 0x3cc   :  { %2422 = vmatprep.mubr.bf16.mxu1 %v1796_v0  ;;  %v1797_v35 = vpack.c.bf16 %v1769_v27, %v1767_v30 }
 0x3cd   :  { %2798 = vrcp.f32 %v1721_v23  ;;  %v1798_v63 = vpack.c.bf16 %v1773_v53, %v1771_v1 }
 0x3ce   :  { %2800 = vrcp.f32 %v1720_v39 }
 0x3cf   :  { %v2791_v25 = vpop.eup %2790 }
 0x3d0   :  { %v2793_v52 = vpop.eup %2792  ;;  %v1777_v50 = vmul.f32 %v2791_v25, %v3414_v40 }
 0x3d1   :  { %v2795_v20 = vpop.eup %2794  ;;  %v1781_v28 = vmul.f32 %v2793_v52, %v3425_v61 }
 0x3d2   :  { %v2797_v12 = vpop.eup %2796  ;;  %v1775_v55 = vmul.f32 %v2795_v20, %v3406_v7 }
 0x3d3   :  { %2423 = vmatmul.mubr.bf16.gmra.mrb[52].mxu1 %v1797_v35  ;;  %v1779_v13 = vmul.f32 %v2797_v12, %v3419_v19 }
 0x3d4   :  { %2426 = vmatprep.mubr.bf16.mxu1 %v1798_v63  ;;  %v1799_v17 = vpack.c.bf16 %v1777_v50, %v1775_v55 }
 0x3d5   :  { %v1800_v49 = vpack.c.bf16 %v1781_v28, %v1779_v13 }
 0x3d7   :  { %v2799_v8 = vpop.eup %2798 }
 0x3d8   :  { %v2801_v6 = vpop.eup %2800  ;;  %v1785_v15 = vmul.f32 %v2799_v8, %v3432_v43 }
 0x3d9   :  { %v1783_v16 = vmul.f32 %v2801_v6, %v3427_v22 }
 0x3db   :  { %2427 = vmatmul.mubr.bf16.gmra.mrb[56].mxu1 %v1799_v17  ;;  %v1801_v58 = vpack.c.bf16 %v1785_v15, %v1783_v16 }
 0x3dc   :  { %2430 = vmatprep.mubr.bf16.mxu1 %v1800_v49 }
 0x3e3   :  { %2431 = vmatmul.mubr.bf16.gmra.mrb[60].mxu1 %v1801_v58 }
 0x475   :  { %v2404_v40 = vpop.f32.mrb[32].mxu1 }
 0x476   :  { %2061 = vst [vmem:[%s3922_s8 + $0x10] sm:$0xff] %v2404_v40  ;;  %v1932_v7 = vpop.f32.mrb[33].mxu1 }
 0x477   :  { %2059 = vst [vmem:[%s3922_s8] sm:$0xff] %v1932_v7  ;;  %v2405_v19 = vpop.f32.mrb[34].mxu1 }
 0x478   :  { %2062 = vst [vmem:[%s3922_s8 + $0x18] sm:$0xff] %v2405_v19  ;;  %v1935_v61 = vpop.f32.mrb[35].mxu1 }
 0x479   :  { %2060 = vst [vmem:[%s3922_s8 + $0x8] sm:$0xff] %v1935_v61 }
 0x480   :  { %v2408_v22 = vpop.f32.mrb[36].mxu1 }
 0x481   :  { %2065 = vst [vmem:[%s3922_s8 + $0x30] sm:$0xff] %v2408_v22  ;;  %v1948_v43 = vpop.f32.mrb[37].mxu1 }
 0x482   :  { %2063 = vst [vmem:[%s3922_s8 + $0x20] sm:$0xff] %v1948_v43  ;;  %v2409_v46 = vpop.f32.mrb[38].mxu1 }
 0x483   :  { %2066 = vst [vmem:[%s3922_s8 + $0x38] sm:$0xff] %v2409_v46  ;;  %v1951_v3 = vpop.f32.mrb[39].mxu1 }
 0x484   :  { %2064 = vst [vmem:[%s3922_s8 + $0x28] sm:$0xff] %v1951_v3 }
 0x488   :  { %v2412_v4 = vpop.f32.mrb[40].mxu1 }
 0x489   :  { %2069 = vst [vmem:[%s3922_s8 + $0x50] sm:$0xff] %v2412_v4  ;;  %v1964_v45 = vpop.f32.mrb[41].mxu1 }
 0x48a   :  { %2067 = vst [vmem:[%s3922_s8 + $0x40] sm:$0xff] %v1964_v45  ;;  %v2413_v24 = vpop.f32.mrb[42].mxu1 }
 0x48b   :  { %2070 = vst [vmem:[%s3922_s8 + $0x58] sm:$0xff] %v2413_v24  ;;  %v1967_v47 = vpop.f32.mrb[43].mxu1 }
 0x48c   :  { %2068 = vst [vmem:[%s3922_s8 + $0x48] sm:$0xff] %v1967_v47 }
 0x496   :  { %v2416_v54 = vpop.f32.mrb[44].mxu1 }
 0x497   :  { %2073 = vst [vmem:[%s3922_s8 + $0x70] sm:$0xff] %v2416_v54  ;;  %v1980_v62 = vpop.f32.mrb[45].mxu1 }
 0x498   :  { %2071 = vst [vmem:[%s3922_s8 + $0x60] sm:$0xff] %v1980_v62  ;;  %v2417_v41 = vpop.f32.mrb[46].mxu1 }
 0x499   :  { %2074 = vst [vmem:[%s3922_s8 + $0x78] sm:$0xff] %v2417_v41  ;;  %v1983_v2 = vpop.f32.mrb[47].mxu1 }
 0x49a   :  { %2072 = vst [vmem:[%s3922_s8 + $0x68] sm:$0xff] %v1983_v2 }
 0x49e   :  { %v2420_v29 = vpop.f32.mrb[48].mxu1 }
 0x49f   :  { %2077 = vst [vmem:[%s3922_s8 + $0x90] sm:$0xff] %v2420_v29  ;;  %v1996_v37 = vpop.f32.mrb[49].mxu1 }
 0x4a0   :  { %2075 = vst [vmem:[%s3922_s8 + $0x80] sm:$0xff] %v1996_v37  ;;  %v2421_v56 = vpop.f32.mrb[50].mxu1 }
 0x4a1   :  { %2078 = vst [vmem:[%s3922_s8 + $0x98] sm:$0xff] %v2421_v56  ;;  %v1999_v59 = vpop.f32.mrb[51].mxu1 }
 0x4a2   :  { %2076 = vst [vmem:[%s3922_s8 + $0x88] sm:$0xff] %v1999_v59 }
 0x4a6   :  { %v2424_v36 = vpop.f32.mrb[52].mxu1 }
 0x4a7   :  { %2081 = vst [vmem:[%s3922_s8 + $0xb0] sm:$0xff] %v2424_v36  ;;  %v2012_v11 = vpop.f32.mrb[53].mxu1 }
 0x4a8   :  { %2079 = vst [vmem:[%s3922_s8 + $0xa0] sm:$0xff] %v2012_v11  ;;  %v2425_v21 = vpop.f32.mrb[54].mxu1 }
 0x4a9   :  { %2082 = vst [vmem:[%s3922_s8 + $0xb8] sm:$0xff] %v2425_v21  ;;  %v2015_v38 = vpop.f32.mrb[55].mxu1 }
 0x4aa   :  { %2080 = vst [vmem:[%s3922_s8 + $0xa8] sm:$0xff] %v2015_v38 }
 0x4ae   :  { %v2428_v5 = vpop.f32.mrb[56].mxu1 }
 0x4af   :  { %2085 = vst [vmem:[%s3922_s8 + $0xd0] sm:$0xff] %v2428_v5  ;;  %v2028_v60 = vpop.f32.mrb[57].mxu1 }
 0x4b0   :  { %2083 = vst [vmem:[%s3922_s8 + $0xc0] sm:$0xff] %v2028_v60  ;;  %v2429_v57 = vpop.f32.mrb[58].mxu1 }
 0x4b1   :  { %2086 = vst [vmem:[%s3922_s8 + $0xd8] sm:$0xff] %v2429_v57  ;;  %v2031_v32 = vpop.f32.mrb[59].mxu1 }
 0x4b2   :  { %2084 = vst [vmem:[%s3922_s8 + $0xc8] sm:$0xff] %v2031_v32 }
 0x4b6   :  { %v2432_v14 = vpop.f32.mrb[60].mxu1 }
 0x4b7   :  { %2089 = vst [vmem:[%s3922_s8 + $0xf0] sm:$0xff] %v2432_v14  ;;  %v2044_v51 = vpop.f32.mrb[61].mxu1 }
 0x4b8   :  { %2087 = vst [vmem:[%s3922_s8 + $0xe0] sm:$0xff] %v2044_v51  ;;  %v2433_v31 = vpop.f32.mrb[62].mxu1 }
 0x4b9   :  { %2090 = vst [vmem:[%s3922_s8 + $0xf8] sm:$0xff] %v2433_v31  ;;  %v2047_v9 = vpop.f32.mrb[63].mxu1 }
 0x4ba   :  { %2088 = vst [vmem:[%s3922_s8 + $0xe8] sm:$0xff] %v2047_v9 }

// kernel: dino_projector.1
= control target key start
LH: loop header
LB: loop body
LE: loop exit
PB: predicated region body
PF: predicated region fallthrough
CT: control target
= control target key end

     0   :  { %s3914_s1 = inlined_call_operand.vmem [shape: bf16[128,128], index: 1, kind: input, shape index: {}]   ;;  %s3915_s0 = inlined_call_operand.vmem [shape: bf16[256,128], index: 0, kind: input, shape index: {}]   ;;  %s3916_s3 = inlined_call_operand.vmem [shape: bf16[128,128], index: 3, kind: input, shape index: {}]   ;;  %s3917_s5 = inlined_call_operand.vmem [shape: bf16[128,128], index: 5, kind: input, shape index: {}]   ;;  %s3918_s2 = inlined_call_operand.vmem [shape: f32[1,128], index: 2, kind: input, shape index: {}]   ;;  %s3919_s4 = inlined_call_operand.vmem [shape: f32[1,128], index: 4, kind: input, shape index: {}]   ;;  %s3920_s7 = inlined_call_operand.vmem [shape: bf16[128,128], index: 7, kind: input, shape index: {}]   ;;  %s3921_s6 = inlined_call_operand.vmem [shape: f32[1,128], index: 6, kind: input, shape index: {}]   ;;  %s3922_s8 = inlined_call_operand.vmem [shape: f32[256,128], index: 8, kind: output, shape index: {}]  }
   0x1   :  { %v2434_v0 = vld [vmem:[%s3914_s1] sm:$0xff]   ;;  %v2435_v1 = vld [vmem:[%s3914_s1 + $0x8] sm:$0xff]   ;;  %v2436_v2 = vld [vmem:[%s3914_s1 + $0x10] sm:$0xff]  }
   0x2   :  { %2242 = vmatprep.subr.bf16.mxu0 %v2434_v0  ;;  %v2437_v3 = vld [vmem:[%s3914_s1 + $0x18] sm:$0xff]   ;;  %v2442_v4 = vld [vmem:[%s3915_s0] sm:$0xff]   ;;  %v2439_v6 = vld [vmem:[%s3914_s1 + $0x28] sm:$0xff]  }
   0x3   :  { %2243 = vmatpush3.bf16.msra.mxu0 %v2434_v0  ;;  %2258 = vmatprep.mubr.bf16.mxu0 %v2442_v4  ;;  %v2438_v5 = vld [vmem:[%s3914_s1 + $0x20] sm:$0xff]   ;;  %v2440_v7 = vld [vmem:[%s3914_s1 + $0x30] sm:$0xff]   ;;  %v2441_v8 = vld [vmem:[%s3914_s1 + $0x38] sm:$0xff]  }
   0x4   :  { %2244 = vmatprep.subr.bf16.mxu0 %v2435_v1  ;;  %v2458_v9 = vld [vmem:[%s3916_s3] sm:$0xff]   ;;  %v2459_v10 = vld [vmem:[%s3916_s3 + $0x8] sm:$0xff]   ;;  %v2444_v12 = vld [vmem:[%s3915_s0 + $0x10] sm:$0xff]  }
   0x5   :  { %2290 = vmatprep.subr.bf16.mxu1 %v2458_v9  ;;  %v2443_v11 = vld [vmem:[%s3915_s0 + $0x8] sm:$0xff]   ;;  %v2445_v13 = vld [vmem:[%s3915_s0 + $0x18] sm:$0xff]   ;;  %v2446_v14 = vld [vmem:[%s3915_s0 + $0x20] sm:$0xff]  }
   0x6   :  { %2291 = vmatpush3.bf16.msra.mxu1 %v2458_v9  ;;  %v2447_v15 = vld [vmem:[%s3915_s0 + $0x28] sm:$0xff]   ;;  %v2448_v16 = vld [vmem:[%s3915_s0 + $0x30] sm:$0xff]   ;;  %v2449_v17 = vld [vmem:[%s3915_s0 + $0x38] sm:$0xff]  }
   0x7   :  { %2245 = vmatpush3.bf16.msra.mxu0 %v2435_v1  ;;  %2292 = vmatprep.subr.bf16.mxu1 %v2459_v10  ;;  %v2450_v18 = vld [vmem:[%s3915_s0 + $0x40] sm:$0xff]   ;;  %v2451_v19 = vld [vmem:[%s3915_s0 + $0x48] sm:$0xff]   ;;  %v2452_v20 = vld [vmem:[%s3915_s0 + $0x50] sm:$0xff]  }
   0x8   :  { %2246 = vmatprep.subr.bf16.mxu0 %v2436_v2  ;;  %v2453_v21 = vld [vmem:[%s3915_s0 + $0x58] sm:$0xff]   ;;  %v2454_v22 = vld [vmem:[%s3915_s0 + $0x60] sm:$0xff]   ;;  %v2455_v23 = vld [vmem:[%s3915_s0 + $0x68] sm:$0xff]  }
   0x9   :  { %v2456_v24 = vld [vmem:[%s3915_s0 + $0x70] sm:$0xff]   ;;  %v2457_v25 = vld [vmem:[%s3915_s0 + $0x78] sm:$0xff]   ;;  %v2462_v28 = vld [vmem:[%s3916_s3 + $0x20] sm:$0xff]  }
   0xa   :  { %2293 = vmatpush3.bf16.msra.mxu1 %v2459_v10  ;;  %v2460_v26 = vld [vmem:[%s3916_s3 + $0x10] sm:$0xff]   ;;  %v2461_v27 = vld [vmem:[%s3916_s3 + $0x18] sm:$0xff]   ;;  %v2463_v29 = vld [vmem:[%s3916_s3 + $0x28] sm:$0xff]  }
   0xb   :  { %2247 = vmatpush3.bf16.msra.mxu0 %v2436_v2  ;;  %2294 = vmatprep.subr.bf16.mxu1 %v2460_v26  ;;  %v2464_v30 = vld [vmem:[%s3916_s3 + $0x30] sm:$0xff]   ;;  %v2465_v31 = vld [vmem:[%s3916_s3 + $0x38] sm:$0xff]   ;;  %v2466_v32 = vld [vmem:[%s3917_s5] sm:$0xff]  }
   0xc   :  { %2248 = vmatprep.subr.bf16.mxu0 %v2437_v3  ;;  %v2467_v33 = vld [vmem:[%s3917_s5 + $0x8] sm:$0xff]   ;;  %v2468_v34 = vld [vmem:[%s3917_s5 + $0x10] sm:$0xff]   ;;  %v2469_v35 = vld [vmem:[%s3917_s5 + $0x18] sm:$0xff]  }
   0xd   :  { %v2470_v36 = vld [vmem:[%s3917_s5 + $0x20] sm:$0xff]  }
   0xe   :  { %2295 = vmatpush3.bf16.msra.mxu1 %v2460_v26  ;;  %v2961_v37 = vld [vmem:[%s3918_s2] ss:$0 sm:$0xff] }
   0xf   :  { %2249 = vmatpush3.bf16.msra.mxu0 %v2437_v3  ;;  %2296 = vmatprep.subr.bf16.mxu1 %v2461_v27 }
  0x10   :  { %2250 = vmatprep.subr.bf16.mxu0 %v2438_v5 }
  0x12   :  { %2297 = vmatpush3.bf16.msra.mxu1 %v2461_v27 }
  0x13   :  { %2251 = vmatpush3.bf16.msra.mxu0 %v2438_v5  ;;  %2298 = vmatprep.subr.bf16.mxu1 %v2462_v28 }
  0x14   :  { %2252 = vmatprep.subr.bf16.mxu0 %v2439_v6 }
  0x16   :  { %2299 = vmatpush3.bf16.msra.mxu1 %v2462_v28 }
  0x17   :  { %2253 = vmatpush3.bf16.msra.mxu0 %v2439_v6  ;;  %2300 = vmatprep.subr.bf16.mxu1 %v2463_v29 }
  0x18   :  { %2254 = vmatprep.subr.bf16.mxu0 %v2440_v7 }
  0x1a   :  { %2301 = vmatpush3.bf16.msra.mxu1 %v2463_v29 }
  0x1b   :  { %2255 = vmatpush3.bf16.msra.mxu0 %v2440_v7  ;;  %2302 = vmatprep.subr.bf16.mxu1 %v2464_v30 }
  0x1c   :  { %2256 = vmatprep.subr.bf16.mxu0 %v2441_v8 }
  0x1e   :  { %2303 = vmatpush3.bf16.msra.mxu1 %v2464_v30 }
  0x1f   :  { %2257 = vmatpush3.bf16.msra.mxu0 %v2441_v8  ;;  %2304 = vmatprep.subr.bf16.mxu1 %v2465_v31 }
  0x20   :  { %2338 = vmatprep.subr.bf16.mxu0 %v2466_v32 }
  0x22   :  { %2259 = vmatmul.mubr.bf16.vlgmr.msra.gmra.mrb[0].mxu0 %v2443_v11  ;;  %2305 = vmatpush3.bf16.msra.mxu1 %v2465_v31 }
  0x23   :  { %2262 = vmatprep.mubr.bf16.mxu0 %v2444_v12  ;;  %2339 = vmatpush3.bf16.msra.mxu0 %v2466_v32 }
  0x24   :  { %2340 = vmatprep.subr.bf16.mxu0 %v2467_v33 }
  0x27   :  { %2341 = vmatpush3.bf16.msra.mxu0 %v2467_v33 }
  0x28   :  { %2342 = vmatprep.subr.bf16.mxu0 %v2468_v34 }
  0x2a   :  { %2263 = vmatmul.mubr.bf16.gmra.mrb[4].mxu0 %v2445_v13 }
  0x2b   :  { %2266 = vmatprep.mubr.bf16.mxu0 %v2446_v14  ;;  %2343 = vmatpush3.bf16.msra.mxu0 %v2468_v34 }
  0x2c   :  { %2344 = vmatprep.subr.bf16.mxu0 %v2469_v35 }
  0x2f   :  { %2345 = vmatpush3.bf16.msra.mxu0 %v2469_v35 }
  0x30   :  { %2346 = vmatprep.subr.bf16.mxu0 %v2470_v36 }
  0x32   :  { %2267 = vmatmul.mubr.bf16.gmra.mrb[8].mxu0 %v2447_v15 }
  0x33   :  { %2270 = vmatprep.mubr.bf16.mxu0 %v2448_v16  ;;  %2347 = vmatpush3.bf16.msra.mxu0 %v2470_v36 }
  0x3a   :  { %2271 = vmatmul.mubr.bf16.gmra.mrb[12].mxu0 %v2449_v17 }
  0x3b   :  { %2274 = vmatprep.mubr.bf16.mxu0 %v2450_v18 }
  0x42   :  { %2275 = vmatmul.mubr.bf16.gmra.mrb[16].mxu0 %v2451_v19 }
  0x43   :  { %2278 = vmatprep.mubr.bf16.mxu0 %v2452_v20 }
  0x4a   :  { %2279 = vmatmul.mubr.bf16.gmra.mrb[20].mxu0 %v2453_v21 }
  0x4b   :  { %2282 = vmatprep.mubr.bf16.mxu0 %v2454_v22 }
  0x52   :  { %2283 = vmatmul.mubr.bf16.gmra.mrb[24].mxu0 %v2455_v23 }
  0x53   :  { %2286 = vmatprep.mubr.bf16.mxu0 %v2456_v24 }
  0x5a   :  { %2287 = vmatmul.mubr.bf16.gmra.mrb[28].mxu0 %v2457_v25 }
  0xf5   :  { %v2260_v38 = vpop.f32.mrb[0].mxu0 }
  0xf6   :  { %v276_v39 = vadd.f32 %v2260_v38, %v2961_v37  ;;  %v267_v40 = vpop.f32.mrb[1].mxu0 }
  0xf7   :  { %v268_v41 = vadd.f32 %v2961_v37, %v267_v40  ;;  %v2261_v42 = vpop.f32.mrb[2].mxu0 }
  0xf8   :  { %v428_v43 = vmul.f32 0.70710677, %v276_v39  ;;  %v279_v44 = vadd.f32 %v2261_v42, %v2961_v37  ;;  %v270_v45 = vpop.f32.mrb[3].mxu0  ;;  %v396_v2 = vmul.f32 0.5, %v276_v39 }
  0xf9   :  { %v426_v46 = vmul.f32 0.70710677, %v268_v41  ;;  %v271_v47 = vadd.f32 %v2961_v37, %v270_v45  ;;  %v394_v12 = vmul.f32 0.5, %v268_v41 }
  0xfa   :  { %2482 = verf.f32 %v428_v43  ;;  %v429_v48 = vmul.f32 0.70710677, %v279_v44  ;;  %v397_v7 = vmul.f32 0.5, %v279_v44 }
  0xfb   :  { %2484 = verf.f32 %v426_v46  ;;  %v427_v49 = vmul.f32 0.70710677, %v271_v47  ;;  %v395_v18 = vmul.f32 0.5, %v271_v47 }
  0xfc   :  { %2486 = verf.f32 %v429_v48 }
  0xfd   :  { %2488 = verf.f32 %v427_v49  ;;  %v2264_v50 = vpop.f32.mrb[4].mxu0 }
  0xfe   :  { %v292_v51 = vadd.f32 %v2264_v50, %v2961_v37  ;;  %v283_v52 = vpop.f32.mrb[5].mxu0 }
  0xff   :  { %v284_v53 = vadd.f32 %v2961_v37, %v283_v52  ;;  %v2265_v54 = vpop.f32.mrb[6].mxu0 }
 0x100   :  { %v432_v55 = vmul.f32 0.70710677, %v292_v51  ;;  %v295_v56 = vadd.f32 %v2265_v54, %v2961_v37  ;;  %v286_v57 = vpop.f32.mrb[7].mxu0  ;;  %v400_v38 = vmul.f32 0.5, %v292_v51 }
 0x101   :  { %v430_v58 = vmul.f32 0.70710677, %v284_v53  ;;  %v287_v59 = vadd.f32 %v2961_v37, %v286_v57  ;;  %v398_v43 = vmul.f32 0.5, %v284_v53 }
 0x102   :  { %2490 = verf.f32 %v432_v55  ;;  %v433_v60 = vmul.f32 0.70710677, %v295_v56  ;;  %v401_v39 = vmul.f32 0.5, %v295_v56 }
 0x103   :  { %2492 = verf.f32 %v430_v58  ;;  %v431_v61 = vmul.f32 0.70710677, %v287_v59  ;;  %v399_v44 = vmul.f32 0.5, %v287_v59 }
 0x104   :  { %v2483_v62 = vpop.eup %2482  ;;  %2494 = verf.f32 %v433_v60 }
 0x105   :  { %v2485_v63 = vpop.eup %2484  ;;  %2496 = verf.f32 %v431_v61  ;;  %v2268_v0 = vpop.f32.mrb[8].mxu0  ;;  %v492_v3 = vadd.f32 1.0, %v2483_v62 }
 0x106   :  { %v2487_v1 = vpop.eup %2486  ;;  %v2972_v4 = vadd.f32 %v2268_v0, %v2961_v37  ;;  %v299_v5 = vpop.f32.mrb[9].mxu0  ;;  %v490_v11 = vadd.f32 1.0, %v2485_v63 }
 0x107   :  { %v2489_v6 = vpop.eup %2488  ;;  %v493_v8 = vadd.f32 1.0, %v2487_v1  ;;  %v2975_v9 = vadd.f32 %v2961_v37, %v299_v5  ;;  %v2269_v10 = vpop.f32.mrb[10].mxu0  ;;  %v524_v21 = vmul.f32 %v492_v3, %v396_v2 }
 0x108   :  { %v436_v13 = vmul.f32 0.70710677, %v2972_v4  ;;  %v2979_v14 = vadd.f32 %v2269_v10, %v2961_v37  ;;  %v302_v15 = vpop.f32.mrb[11].mxu0  ;;  %v491_v16 = vadd.f32 1.0, %v2489_v6  ;;  %v522_v24 = vmul.f32 %v490_v11, %v394_v12 }
 0x109   :  { %v525_v17 = vmul.f32 %v493_v8, %v397_v7  ;;  %v434_v19 = vmul.f32 0.70710677, %v2975_v9  ;;  %v2983_v20 = vadd.f32 %v2961_v37, %v302_v15  ;;  %v404_v5 = vmul.f32 0.5, %v2972_v4 }
 0x10a   :  { %2498 = verf.f32 %v436_v13  ;;  %v437_v22 = vmul.f32 0.70710677, %v2979_v14  ;;  %v523_v25 = vmul.f32 %v491_v16, %v395_v18  ;;  %v405_v6 = vmul.f32 0.5, %v2979_v14 }
 0x10b   :  { %2500 = verf.f32 %v434_v19  ;;  %v435_v23 = vmul.f32 0.70710677, %v2983_v20  ;;  %v555_v27 = vpack.c.bf16 %v525_v17, %v524_v21  ;;  %v402_v11 = vmul.f32 0.5, %v2975_v9 }
 0x10c   :  { %v2491_v26 = vpop.eup %2490  ;;  %2502 = verf.f32 %v437_v22  ;;  %v554_v31 = vpack.c.bf16 %v523_v25, %v522_v24  ;;  %v403_v12 = vmul.f32 0.5, %v2983_v20 }
 0x10d   :  { %v2493_v28 = vpop.eup %2492  ;;  %v496_v29 = vadd.f32 1.0, %v2491_v26  ;;  %2504 = verf.f32 %v435_v23  ;;  %v2272_v30 = vpop.f32.mrb[12].mxu0 }
 0x10e   :  { %v2495_v32 = vpop.eup %2494  ;;  %v494_v33 = vadd.f32 1.0, %v2493_v28  ;;  %v2988_v34 = vadd.f32 %v2272_v30, %v2961_v37  ;;  %v315_v35 = vpop.f32.mrb[13].mxu0  ;;  %2306 = vmatprep.mubr.bf16.mxu1 %v554_v31 }
 0x10f   :  { %v2497_v36 = vpop.eup %2496  ;;  %v497_v40 = vadd.f32 1.0, %v2495_v32  ;;  %v2991_v41 = vadd.f32 %v2961_v37, %v315_v35  ;;  %v2273_v42 = vpop.f32.mrb[14].mxu0  ;;  %2307 = vmatmul.mubr.bf16.vlgmr.msra.gmra.mrb[0].mxu1 %v555_v27  ;;  %v528_v48 = vmul.f32 %v496_v29, %v400_v38 }
 0x110   :  { %v495_v45 = vadd.f32 1.0, %v2497_v36  ;;  %v440_v46 = vmul.f32 0.70710677, %v2988_v34  ;;  %v318_v47 = vpop.f32.mrb[15].mxu0  ;;  %v327_v51 = vadd.f32 %v2273_v42, %v2961_v37  ;;  %v526_v52 = vmul.f32 %v494_v33, %v398_v43 }
 0x111   :  { %v529_v49 = vmul.f32 %v497_v40, %v401_v39  ;;  %v438_v50 = vmul.f32 0.70710677, %v2991_v41  ;;  %v319_v55 = vadd.f32 %v2961_v37, %v318_v47  ;;  %v408_v32 = vmul.f32 0.5, %v2988_v34 }
 0x112   :  { %v527_v54 = vmul.f32 %v495_v45, %v399_v44  ;;  %2506 = verf.f32 %v440_v46  ;;  %v441_v56 = vmul.f32 0.70710677, %v327_v51  ;;  %v406_v39 = vmul.f32 0.5, %v2991_v41 }
 0x113   :  { %2508 = verf.f32 %v438_v50  ;;  %v557_v53 = vpack.c.bf16 %v529_v49, %v528_v48  ;;  %v439_v58 = vmul.f32 0.70710677, %v319_v55  ;;  %v409_v40 = vmul.f32 0.5, %v327_v51 }
 0x114   :  { %v2499_v57 = vpop.eup %2498  ;;  %v556_v59 = vpack.c.bf16 %v527_v54, %v526_v52  ;;  %2510 = verf.f32 %v441_v56  ;;  %v407_v45 = vmul.f32 0.5, %v319_v55 }
 0x115   :  { %v2501_v60 = vpop.eup %2500  ;;  %v500_v61 = vadd.f32 1.0, %v2499_v57  ;;  %v2276_v62 = vpop.f32.mrb[16].mxu0  ;;  %2512 = verf.f32 %v439_v58 }
 0x116   :  { %v2503_v63 = vpop.eup %2502  ;;  %v498_v0 = vadd.f32 1.0, %v2501_v60  ;;  %v2998_v1 = vadd.f32 %v2276_v62, %v2961_v37  ;;  %v331_v2 = vpop.f32.mrb[17].mxu0  ;;  %2310 = vmatprep.mubr.bf16.mxu1 %v556_v59 }
 0x117   :  { %v2505_v3 = vpop.eup %2504  ;;  %v501_v7 = vadd.f32 1.0, %v2503_v63  ;;  %v3003_v8 = vadd.f32 %v2961_v37, %v331_v2  ;;  %v2277_v10 = vpop.f32.mrb[18].mxu0  ;;  %2311 = vmatmul.mubr.bf16.gmra.mrb[4].mxu1 %v557_v53  ;;  %v532_v17 = vmul.f32 %v500_v61, %v404_v5 }
 0x118   :  { %v499_v13 = vadd.f32 1.0, %v2505_v3  ;;  %v444_v15 = vmul.f32 0.70710677, %v2998_v1  ;;  %v334_v16 = vpop.f32.mrb[19].mxu0  ;;  %v343_v14 = vadd.f32 %v2277_v10, %v2961_v37  ;;  %v530_v19 = vmul.f32 %v498_v0, %v402_v11 }
 0x119   :  { %v533_v18 = vmul.f32 %v501_v7, %v405_v6  ;;  %v442_v4 = vmul.f32 0.70710677, %v3003_v8  ;;  %v335_v22 = vadd.f32 %v2961_v37, %v334_v16  ;;  %v412_v63 = vmul.f32 0.5, %v2998_v1 }
 0x11a   :  { %v531_v21 = vmul.f32 %v499_v13, %v403_v12  ;;  %2514 = verf.f32 %v444_v15  ;;  %v445_v9 = vmul.f32 0.70710677, %v343_v14  ;;  %v410_v6 = vmul.f32 0.5, %v3003_v8 }
 0x11b   :  { %2516 = verf.f32 %v442_v4  ;;  %v559_v23 = vpack.c.bf16 %v533_v18, %v532_v17  ;;  %v443_v24 = vmul.f32 0.70710677, %v335_v22  ;;  %v413_v7 = vmul.f32 0.5, %v343_v14 }
 0x11c   :  { %v2507_v20 = vpop.eup %2506  ;;  %v558_v25 = vpack.c.bf16 %v531_v21, %v530_v19  ;;  %2518 = verf.f32 %v445_v9  ;;  %v411_v13 = vmul.f32 0.5, %v335_v22 }
 0x11d   :  { %v2509_v26 = vpop.eup %2508  ;;  %v2280_v27 = vpop.f32.mrb[20].mxu0  ;;  %v504_v28 = vadd.f32 1.0, %v2507_v20  ;;  %2520 = verf.f32 %v443_v24 }
 0x11e   :  { %v3012_v29 = vadd.f32 %v2280_v27, %v2961_v37  ;;  %v347_v30 = vpop.f32.mrb[21].mxu0  ;;  %2314 = vmatprep.mubr.bf16.mxu1 %v558_v25  ;;  %v2511_v31 = vpop.eup %2510  ;;  %v502_v33 = vadd.f32 1.0, %v2509_v26 }
 0x11f   :  { %v3016_v35 = vadd.f32 %v2961_v37, %v347_v30  ;;  %v2281_v36 = vpop.f32.mrb[22].mxu0  ;;  %v2513_v38 = vpop.eup %2512  ;;  %v505_v42 = vadd.f32 1.0, %v2511_v31  ;;  %2315 = vmatmul.mubr.bf16.gmra.mrb[8].mxu1 %v559_v23  ;;  %v536_v48 = vmul.f32 %v504_v28, %v408_v32 }
 0x120   :  { %v448_v43 = vmul.f32 0.70710677, %v3012_v29  ;;  %v350_v44 = vpop.f32.mrb[23].mxu0  ;;  %v503_v46 = vadd.f32 1.0, %v2513_v38  ;;  %v3022_v34 = vadd.f32 %v2281_v36, %v2961_v37  ;;  %v534_v41 = vmul.f32 %v502_v33, %v406_v39 }
 0x121   :  { %v446_v47 = vmul.f32 0.70710677, %v3016_v35  ;;  %v537_v49 = vmul.f32 %v505_v42, %v409_v40  ;;  %v3025_v50 = vadd.f32 %v2961_v37, %v350_v44  ;;  %v416_v30 = vmul.f32 0.5, %v3012_v29 }
 0x122   :  { %2522 = verf.f32 %v448_v43  ;;  %v535_v51 = vmul.f32 %v503_v46, %v407_v45  ;;  %v449_v52 = vmul.f32 0.70710677, %v3022_v34  ;;  %v414_v38 = vmul.f32 0.5, %v3016_v35 }
 0x123   :  { %2524 = verf.f32 %v446_v47  ;;  %v447_v55 = vmul.f32 0.70710677, %v3025_v50  ;;  %v561_v56 = vpack.c.bf16 %v537_v49, %v536_v48  ;;  %v417_v39 = vmul.f32 0.5, %v3022_v34 }
 0x124   :  { %v2515_v54 = vpop.eup %2514  ;;  %2526 = verf.f32 %v449_v52  ;;  %v560_v58 = vpack.c.bf16 %v535_v51, %v534_v41  ;;  %v415_v44 = vmul.f32 0.5, %v3025_v50 }
 0x125   :  { %v2517_v53 = vpop.eup %2516  ;;  %v2284_v57 = vpop.f32.mrb[24].mxu0  ;;  %v508_v59 = vadd.f32 1.0, %v2515_v54  ;;  %2528 = verf.f32 %v447_v55 }
 0x126   :  { %v3030_v60 = vadd.f32 %v2284_v57, %v2961_v37  ;;  %v363_v61 = vpop.f32.mrb[25].mxu0  ;;  %v2519_v62 = vpop.eup %2518  ;;  %v506_v0 = vadd.f32 1.0, %v2517_v53  ;;  %2318 = vmatprep.mubr.bf16.mxu1 %v560_v58 }
 0x127   :  { %v3034_v2 = vadd.f32 %v2961_v37, %v363_v61  ;;  %v2285_v3 = vpop.f32.mrb[26].mxu0  ;;  %v2521_v5 = vpop.eup %2520  ;;  %v509_v10 = vadd.f32 1.0, %v2519_v62  ;;  %2319 = vmatmul.mubr.bf16.gmra.mrb[12].mxu1 %v561_v56  ;;  %v540_v17 = vmul.f32 %v508_v59, %v412_v63 }
 0x128   :  { %v452_v11 = vmul.f32 0.70710677, %v3030_v60  ;;  %v366_v12 = vpop.f32.mrb[27].mxu0  ;;  %v507_v15 = vadd.f32 1.0, %v2521_v5  ;;  %v375_v1 = vadd.f32 %v2285_v3, %v2961_v37  ;;  %v538_v19 = vmul.f32 %v506_v0, %v410_v6 }
 0x129   :  { %v450_v16 = vmul.f32 0.70710677, %v3034_v2  ;;  %v541_v18 = vmul.f32 %v509_v10, %v413_v7  ;;  %v367_v4 = vadd.f32 %v2961_v37, %v366_v12  ;;  %v420_v59 = vmul.f32 0.5, %v3030_v60 }
 0x12a   :  { %2530 = verf.f32 %v452_v11  ;;  %v539_v21 = vmul.f32 %v507_v15, %v411_v13  ;;  %v453_v8 = vmul.f32 0.70710677, %v375_v1  ;;  %v421_v61 = vmul.f32 0.5, %v375_v1 }
 0x12b   :  { %2532 = verf.f32 %v450_v16  ;;  %v451_v9 = vmul.f32 0.70710677, %v367_v4  ;;  %v563_v23 = vpack.c.bf16 %v541_v18, %v540_v17  ;;  %v418_v62 = vmul.f32 0.5, %v3034_v2 }
 0x12c   :  { %v2523_v14 = vpop.eup %2522  ;;  %2534 = verf.f32 %v453_v8  ;;  %v562_v24 = vpack.c.bf16 %v539_v21, %v538_v19  ;;  %v419_v63 = vmul.f32 0.5, %v367_v4 }
 0x12d   :  { %v2525_v20 = vpop.eup %2524  ;;  %v2288_v22 = vpop.f32.mrb[28].mxu0  ;;  %v512_v25 = vadd.f32 1.0, %v2523_v14  ;;  %2536 = verf.f32 %v451_v9 }
 0x12e   :  { %v388_v26 = vadd.f32 %v2288_v22, %v2961_v37  ;;  %v379_v27 = vpop.f32.mrb[29].mxu0  ;;  %v2527_v28 = vpop.eup %2526  ;;  %v510_v31 = vadd.f32 1.0, %v2525_v20  ;;  %2322 = vmatprep.mubr.bf16.mxu1 %v562_v24  ;;  %v2471_v24 = vld [vmem:[%s3917_s5 + $0x28] sm:$0xff]  }
 0x12f   :  { %v380_v32 = vadd.f32 %v2961_v37, %v379_v27  ;;  %v2289_v33 = vpop.f32.mrb[30].mxu0  ;;  %v2529_v36 = vpop.eup %2528  ;;  %v513_v40 = vadd.f32 1.0, %v2527_v28  ;;  %2323 = vmatmul.mubr.bf16.gmra.mrb[16].mxu1 %v563_v23  ;;  %v544_v47 = vmul.f32 %v512_v25, %v416_v30  ;;  %2348 = vmatprep.subr.bf16.mxu0 %v2471_v24  ;;  %v2472_v25 = vld [vmem:[%s3917_s5 + $0x30] sm:$0xff]   ;;  %v3063_v27 = vld [vmem:[%s3919_s4] ss:$0 sm:$0xff] }
 0x130   :  { %v456_v42 = vmul.f32 0.70710677, %v388_v26  ;;  %v382_v43 = vpop.f32.mrb[31].mxu0  ;;  %v511_v45 = vadd.f32 1.0, %v2529_v36  ;;  %v391_v29 = vadd.f32 %v2289_v33, %v2961_v37  ;;  %v542_v41 = vmul.f32 %v510_v31, %v414_v38  ;;  %2349 = vmatpush3.bf16.msra.mxu0 %v2471_v24 }
 0x131   :  { %v454_v46 = vmul.f32 0.70710677, %v380_v32  ;;  %v545_v48 = vmul.f32 %v513_v40, %v417_v39  ;;  %v383_v49 = vadd.f32 %v2961_v37, %v382_v43  ;;  %v424_v1 = vmul.f32 0.5, %v388_v26  ;;  %2350 = vmatprep.subr.bf16.mxu0 %v2472_v25  ;;  %v2473_v26 = vld [vmem:[%s3917_s5 + $0x38] sm:$0xff]  }
 0x132   :  { %2538 = verf.f32 %v456_v42  ;;  %v543_v51 = vmul.f32 %v511_v45, %v415_v44  ;;  %v457_v35 = vmul.f32 0.70710677, %v391_v29  ;;  %v425_v18 = vmul.f32 0.5, %v391_v29 }
 0x133   :  { %2540 = verf.f32 %v454_v46  ;;  %v455_v52 = vmul.f32 0.70710677, %v383_v49  ;;  %v565_v54 = vpack.c.bf16 %v545_v48, %v544_v47  ;;  %v422_v2 = vmul.f32 0.5, %v380_v32 }
 0x134   :  { %v2531_v34 = vpop.eup %2530  ;;  %2542 = verf.f32 %v457_v35  ;;  %v564_v56 = vpack.c.bf16 %v543_v51, %v542_v41  ;;  %v423_v4 = vmul.f32 0.5, %v383_v49  ;;  %2351 = vmatpush3.bf16.msra.mxu0 %v2472_v25 }
 0x135   :  { %v2533_v55 = vpop.eup %2532  ;;  %v516_v50 = vadd.f32 1.0, %v2531_v34  ;;  %2544 = verf.f32 %v455_v52  ;;  %2352 = vmatprep.subr.bf16.mxu0 %v2473_v26 }
 0x136   :  { %v2535_v53 = vpop.eup %2534  ;;  %v514_v57 = vadd.f32 1.0, %v2533_v55  ;;  %2326 = vmatprep.mubr.bf16.mxu1 %v564_v56 }
 0x137   :  { %v2537_v58 = vpop.eup %2536  ;;  %v517_v37 = vadd.f32 1.0, %v2535_v53  ;;  %2327 = vmatmul.mubr.bf16.gmra.mrb[20].mxu1 %v565_v54  ;;  %v548_v3 = vmul.f32 %v516_v50, %v420_v59 }
 0x138   :  { %v515_v0 = vadd.f32 1.0, %v2537_v58  ;;  %v546_v6 = vmul.f32 %v514_v57, %v418_v62  ;;  %2353 = vmatpush3.bf16.msra.mxu0 %v2473_v26 }
 0x139   :  { %v549_v5 = vmul.f32 %v517_v37, %v421_v61 }
 0x13a   :  { %v547_v7 = vmul.f32 %v515_v0, %v419_v63 }
 0x13b   :  { %v567_v11 = vpack.c.bf16 %v549_v5, %v548_v3 }
 0x13c   :  { %v2539_v10 = vpop.eup %2538  ;;  %v566_v13 = vpack.c.bf16 %v547_v7, %v546_v6 }
 0x13d   :  { %v2541_v12 = vpop.eup %2540  ;;  %v520_v15 = vadd.f32 1.0, %v2539_v10 }
 0x13e   :  { %v2543_v16 = vpop.eup %2542  ;;  %v518_v17 = vadd.f32 1.0, %v2541_v12  ;;  %2330 = vmatprep.mubr.bf16.mxu1 %v566_v13 }
 0x13f   :  { %v2545_v60 = vpop.eup %2544  ;;  %v521_v19 = vadd.f32 1.0, %v2543_v16  ;;  %2331 = vmatmul.mubr.bf16.gmra.mrb[24].mxu1 %v567_v11  ;;  %v552_v8 = vmul.f32 %v520_v15, %v424_v1 }
 0x140   :  { %v519_v21 = vadd.f32 1.0, %v2545_v60  ;;  %v550_v9 = vmul.f32 %v518_v17, %v422_v2 }
 0x141   :  { %v553_v14 = vmul.f32 %v521_v19, %v425_v18 }
 0x142   :  { %v551_v23 = vmul.f32 %v519_v21, %v423_v4 }
 0x143   :  { %v569_v20 = vpack.c.bf16 %v553_v14, %v552_v8 }
 0x144   :  { %v568_v22 = vpack.c.bf16 %v551_v23, %v550_v9 }
 0x146   :  { %2334 = vmatprep.mubr.bf16.mxu1 %v568_v22 }
 0x147   :  { %2335 = vmatmul.mubr.bf16.gmra.mrb[28].mxu1 %v569_v20 }
 0x1e2   :  { %v2308_v28 = vpop.f32.mrb[0].mxu1 }
 0x1e3   :  { %v684_v30 = vadd.f32 %v2308_v28, %v3063_v27  ;;  %v675_v31 = vpop.f32.mrb[1].mxu1 }
 0x1e4   :  { %v676_v32 = vadd.f32 %v3063_v27, %v675_v31  ;;  %v2309_v33 = vpop.f32.mrb[2].mxu1 }
 0x1e5   :  { %v836_v36 = vmul.f32 0.70710677, %v684_v30  ;;  %v687_v38 = vadd.f32 %v2309_v33, %v3063_v27  ;;  %v678_v39 = vpop.f32.mrb[3].mxu1  ;;  %v804_v62 = vmul.f32 0.5, %v684_v30 }
 0x1e6   :  { %v834_v40 = vmul.f32 0.70710677, %v676_v32  ;;  %v679_v42 = vadd.f32 %v3063_v27, %v678_v39  ;;  %v802_v6 = vmul.f32 0.5, %v676_v32 }
 0x1e7   :  { %2546 = verf.f32 %v836_v36  ;;  %v837_v43 = vmul.f32 0.70710677, %v687_v38  ;;  %v805_v63 = vmul.f32 0.5, %v687_v38 }
 0x1e8   :  { %2548 = verf.f32 %v834_v40  ;;  %v835_v44 = vmul.f32 0.70710677, %v679_v42  ;;  %v803_v7 = vmul.f32 0.5, %v679_v42 }
 0x1e9   :  { %2550 = verf.f32 %v837_v43 }
 0x1ea   :  { %2552 = verf.f32 %v835_v44  ;;  %v2312_v45 = vpop.f32.mrb[4].mxu1 }
 0x1eb   :  { %v700_v46 = vadd.f32 %v2312_v45, %v3063_v27  ;;  %v691_v29 = vpop.f32.mrb[5].mxu1 }
 0x1ec   :  { %v692_v47 = vadd.f32 %v3063_v27, %v691_v29  ;;  %v2313_v48 = vpop.f32.mrb[6].mxu1 }
 0x1ed   :  { %v840_v49 = vmul.f32 0.70710677, %v700_v46  ;;  %v703_v41 = vadd.f32 %v2313_v48, %v3063_v27  ;;  %v694_v51 = vpop.f32.mrb[7].mxu1  ;;  %v808_v28 = vmul.f32 0.5, %v700_v46 }
 0x1ee   :  { %v838_v35 = vmul.f32 0.70710677, %v692_v47  ;;  %v695_v34 = vadd.f32 %v3063_v27, %v694_v51  ;;  %v806_v36 = vmul.f32 0.5, %v692_v47 }
 0x1ef   :  { %2554 = verf.f32 %v840_v49  ;;  %v841_v52 = vmul.f32 0.70710677, %v703_v41  ;;  %v809_v30 = vmul.f32 0.5, %v703_v41 }
 0x1f0   :  { %2556 = verf.f32 %v838_v35  ;;  %v839_v54 = vmul.f32 0.70710677, %v695_v34  ;;  %v807_v38 = vmul.f32 0.5, %v695_v34 }
 0x1f1   :  { %v2547_v55 = vpop.eup %2546  ;;  %2558 = verf.f32 %v841_v52 }
 0x1f2   :  { %v2549_v56 = vpop.eup %2548  ;;  %v900_v50 = vadd.f32 1.0, %v2547_v55  ;;  %2560 = verf.f32 %v839_v54  ;;  %v2316_v53 = vpop.f32.mrb[8].mxu1 }
 0x1f3   :  { %v2551_v57 = vpop.eup %2550  ;;  %v898_v58 = vadd.f32 1.0, %v2549_v56  ;;  %v3074_v59 = vadd.f32 %v2316_v53, %v3063_v27  ;;  %v707_v61 = vpop.f32.mrb[9].mxu1 }
 0x1f4   :  { %v2553_v37 = vpop.eup %2552  ;;  %v901_v0 = vadd.f32 1.0, %v2551_v57  ;;  %v3077_v3 = vadd.f32 %v3063_v27, %v707_v61  ;;  %v2317_v5 = vpop.f32.mrb[10].mxu1  ;;  %v932_v13 = vmul.f32 %v900_v50, %v804_v62 }
 0x1f5   :  { %v899_v10 = vadd.f32 1.0, %v2553_v37  ;;  %v844_v11 = vmul.f32 0.70710677, %v3074_v59  ;;  %v710_v12 = vpop.f32.mrb[11].mxu1  ;;  %v719_v17 = vadd.f32 %v2317_v5, %v3063_v27  ;;  %v930_v60 = vmul.f32 %v898_v58, %v802_v6 }
 0x1f6   :  { %v933_v15 = vmul.f32 %v901_v0, %v805_v63  ;;  %v842_v16 = vmul.f32 0.70710677, %v3077_v3  ;;  %v711_v18 = vadd.f32 %v3063_v27, %v710_v12  ;;  %v812_v57 = vmul.f32 0.5, %v3074_v59 }
 0x1f7   :  { %v931_v1 = vmul.f32 %v899_v10, %v803_v7  ;;  %2562 = verf.f32 %v844_v11  ;;  %v845_v2 = vmul.f32 0.70710677, %v719_v17  ;;  %v810_v63 = vmul.f32 0.5, %v3077_v3 }
 0x1f8   :  { %v963_v19 = vpack.c.bf16 %v933_v15, %v932_v13  ;;  %2564 = verf.f32 %v842_v16  ;;  %v843_v21 = vmul.f32 0.70710677, %v711_v18  ;;  %v813_v0 = vmul.f32 0.5, %v719_v17 }
 0x1f9   :  { %v2555_v4 = vpop.eup %2554  ;;  %v962_v8 = vpack.c.bf16 %v931_v1, %v930_v60  ;;  %2566 = verf.f32 %v845_v2  ;;  %v811_v10 = vmul.f32 0.5, %v711_v18 }
 0x1fa   :  { %v2557_v14 = vpop.eup %2556  ;;  %v904_v9 = vadd.f32 1.0, %v2555_v4  ;;  %v2320_v23 = vpop.f32.mrb[12].mxu1  ;;  %2568 = verf.f32 %v843_v21 }
 0x1fb   :  { %v2559_v20 = vpop.eup %2558  ;;  %v902_v22 = vadd.f32 1.0, %v2557_v14  ;;  %v3084_v24 = vadd.f32 %v2320_v23, %v3063_v27  ;;  %v723_v25 = vpop.f32.mrb[13].mxu1  ;;  %2354 = vmatprep.mubr.bf16.mxu0 %v962_v8 }
 0x1fc   :  { %v2561_v26 = vpop.eup %2560  ;;  %v905_v31 = vadd.f32 1.0, %v2559_v20  ;;  %v3087_v32 = vadd.f32 %v3063_v27, %v723_v25  ;;  %v2321_v33 = vpop.f32.mrb[14].mxu1  ;;  %2355 = vmatmul.mubr.bf16.vlgmr.msra.gmra.mrb[32].mxu0 %v963_v19  ;;  %v936_v43 = vmul.f32 %v904_v9, %v808_v28 }
 0x1fd   :  { %v903_v39 = vadd.f32 1.0, %v2561_v26  ;;  %v848_v40 = vmul.f32 0.70710677, %v3084_v24  ;;  %v726_v42 = vpop.f32.mrb[15].mxu1  ;;  %v735_v29 = vadd.f32 %v2321_v33, %v3063_v27  ;;  %v934_v46 = vmul.f32 %v902_v22, %v806_v36 }
 0x1fe   :  { %v937_v44 = vmul.f32 %v905_v31, %v809_v30  ;;  %v846_v45 = vmul.f32 0.70710677, %v3087_v32  ;;  %v727_v49 = vadd.f32 %v3063_v27, %v726_v42  ;;  %v816_v20 = vmul.f32 0.5, %v3084_v24 }
 0x1ff   :  { %v935_v48 = vmul.f32 %v903_v39, %v807_v38  ;;  %2570 = verf.f32 %v848_v40  ;;  %v849_v41 = vmul.f32 0.70710677, %v735_v29  ;;  %v814_v30 = vmul.f32 0.5, %v3087_v32 }
 0x200   :  { %2572 = verf.f32 %v846_v45  ;;  %v965_v51 = vpack.c.bf16 %v937_v44, %v936_v43  ;;  %v847_v35 = vmul.f32 0.70710677, %v727_v49  ;;  %v817_v31 = vmul.f32 0.5, %v735_v29 }
 0x201   :  { %v2563_v47 = vpop.eup %2562  ;;  %v964_v34 = vpack.c.bf16 %v935_v48, %v934_v46  ;;  %2574 = verf.f32 %v849_v41  ;;  %v815_v39 = vmul.f32 0.5, %v727_v49 }
 0x202   :  { %v2565_v52 = vpop.eup %2564  ;;  %v2324_v54 = vpop.f32.mrb[16].mxu1  ;;  %v908_v55 = vadd.f32 1.0, %v2563_v47  ;;  %2576 = verf.f32 %v847_v35 }
 0x203   :  { %v3094_v56 = vadd.f32 %v2324_v54, %v3063_v27  ;;  %v739_v50 = vpop.f32.mrb[17].mxu1  ;;  %2358 = vmatprep.mubr.bf16.mxu0 %v964_v34  ;;  %v2567_v53 = vpop.eup %2566  ;;  %v906_v58 = vadd.f32 1.0, %v2565_v52 }
 0x204   :  { %v3098_v61 = vadd.f32 %v3063_v27, %v739_v50  ;;  %v2325_v37 = vpop.f32.mrb[18].mxu1  ;;  %2359 = vmatmul.mubr.bf16.gmra.mrb[36].mxu0 %v965_v51  ;;  %v2569_v62 = vpop.eup %2568  ;;  %v909_v5 = vadd.f32 1.0, %v2567_v53  ;;  %v940_v13 = vmul.f32 %v908_v55, %v812_v57 }
 0x205   :  { %v852_v6 = vmul.f32 0.70710677, %v3094_v56  ;;  %v742_v7 = vpop.f32.mrb[19].mxu1  ;;  %v907_v11 = vadd.f32 1.0, %v2569_v62  ;;  %v3104_v59 = vadd.f32 %v2325_v37, %v3063_v27  ;;  %v938_v60 = vmul.f32 %v906_v58, %v810_v63 }
 0x206   :  { %v850_v12 = vmul.f32 0.70710677, %v3098_v61  ;;  %v941_v15 = vmul.f32 %v909_v5, %v813_v0  ;;  %v3107_v16 = vadd.f32 %v3063_v27, %v742_v7  ;;  %v820_v50 = vmul.f32 0.5, %v3094_v56 }
 0x207   :  { %2578 = verf.f32 %v852_v6  ;;  %v939_v3 = vmul.f32 %v907_v11, %v811_v10  ;;  %v853_v17 = vmul.f32 0.70710677, %v3104_v59  ;;  %v818_v62 = vmul.f32 0.5, %v3098_v61 }
 0x208   :  { %2580 = verf.f32 %v850_v12  ;;  %v851_v18 = vmul.f32 0.70710677, %v3107_v16  ;;  %v967_v19 = vpack.c.bf16 %v941_v15, %v940_v13  ;;  %v821_v63 = vmul.f32 0.5, %v3104_v59 }
 0x209   :  { %v2571_v1 = vpop.eup %2570  ;;  %2582 = verf.f32 %v853_v17  ;;  %v966_v21 = vpack.c.bf16 %v939_v3, %v938_v60  ;;  %v819_v7 = vmul.f32 0.5, %v3107_v16 }
 0x20a   :  { %v2573_v2 = vpop.eup %2572  ;;  %v2328_v4 = vpop.f32.mrb[20].mxu1  ;;  %v912_v8 = vadd.f32 1.0, %v2571_v1  ;;  %2584 = verf.f32 %v851_v18 }
 0x20b   :  { %v3112_v14 = vadd.f32 %v2328_v4, %v3063_v27  ;;  %v755_v9 = vpop.f32.mrb[21].mxu1  ;;  %v2575_v23 = vpop.eup %2574  ;;  %v910_v22 = vadd.f32 1.0, %v2573_v2  ;;  %2362 = vmatprep.mubr.bf16.mxu0 %v966_v21 }
 0x20c   :  { %v3116_v25 = vadd.f32 %v3063_v27, %v755_v9  ;;  %v2329_v26 = vpop.f32.mrb[22].mxu1  ;;  %v2577_v28 = vpop.eup %2576  ;;  %v913_v33 = vadd.f32 1.0, %v2575_v23  ;;  %2363 = vmatmul.mubr.bf16.gmra.mrb[40].mxu0 %v967_v19  ;;  %v944_v43 = vmul.f32 %v912_v8, %v816_v20 }
 0x20d   :  { %v856_v36 = vmul.f32 0.70710677, %v3112_v14  ;;  %v758_v38 = vpop.f32.mrb[23].mxu1  ;;  %v911_v40 = vadd.f32 1.0, %v2577_v28  ;;  %v3122_v24 = vadd.f32 %v2329_v26, %v3063_v27  ;;  %v942_v32 = vmul.f32 %v910_v22, %v814_v30 }
 0x20e   :  { %v854_v42 = vmul.f32 0.70710677, %v3116_v25  ;;  %v945_v44 = vmul.f32 %v913_v33, %v817_v31  ;;  %v3125_v45 = vadd.f32 %v3063_v27, %v758_v38  ;;  %v824_v9 = vmul.f32 0.5, %v3112_v14 }
 0x20f   :  { %2586 = verf.f32 %v856_v36  ;;  %v943_v29 = vmul.f32 %v911_v40, %v815_v39  ;;  %v857_v46 = vmul.f32 0.70710677, %v3122_v24  ;;  %v822_v28 = vmul.f32 0.5, %v3116_v25 }
 0x210   :  { %2588 = verf.f32 %v854_v42  ;;  %v855_v49 = vmul.f32 0.70710677, %v3125_v45  ;;  %v969_v41 = vpack.c.bf16 %v945_v44, %v944_v43  ;;  %v825_v30 = vmul.f32 0.5, %v3122_v24 }
 0x211   :  { %v2579_v48 = vpop.eup %2578  ;;  %2590 = verf.f32 %v857_v46  ;;  %v968_v35 = vpack.c.bf16 %v943_v29, %v942_v32  ;;  %v823_v38 = vmul.f32 0.5, %v3125_v45 }
 0x212   :  { %v2581_v51 = vpop.eup %2580  ;;  %v2332_v47 = vpop.f32.mrb[24].mxu1  ;;  %v916_v34 = vadd.f32 1.0, %v2579_v48  ;;  %2592 = verf.f32 %v855_v49 }
 0x213   :  { %v3130_v52 = vadd.f32 %v2332_v47, %v3063_v27  ;;  %v771_v54 = vpop.f32.mrb[25].mxu1  ;;  %v2583_v55 = vpop.eup %2582  ;;  %v914_v53 = vadd.f32 1.0, %v2581_v51  ;;  %2366 = vmatprep.mubr.bf16.mxu0 %v968_v35 }
 0x214   :  { %v3134_v57 = vadd.f32 %v3063_v27, %v771_v54  ;;  %v2333_v58 = vpop.f32.mrb[26].mxu1  ;;  %v2585_v37 = vpop.eup %2584  ;;  %v917_v0 = vadd.f32 1.0, %v2583_v55  ;;  %2367 = vmatmul.mubr.bf16.gmra.mrb[44].mxu0 %v969_v41  ;;  %v948_v12 = vmul.f32 %v916_v34, %v820_v50 }
 0x215   :  { %v860_v5 = vmul.f32 0.70710677, %v3130_v52  ;;  %v774_v6 = vpop.f32.mrb[27].mxu1  ;;  %v915_v10 = vadd.f32 1.0, %v2585_v37  ;;  %v783_v11 = vadd.f32 %v2333_v58, %v3063_v27  ;;  %v946_v61 = vmul.f32 %v914_v53, %v818_v62 }
 0x216   :  { %v858_v56 = vmul.f32 0.70710677, %v3134_v57  ;;  %v949_v13 = vmul.f32 %v917_v0, %v821_v63  ;;  %v775_v15 = vadd.f32 %v3063_v27, %v774_v6  ;;  %v828_v34 = vmul.f32 0.5, %v3130_v52 }
 0x217   :  { %2594 = verf.f32 %v860_v5  ;;  %v947_v60 = vmul.f32 %v915_v10, %v819_v7  ;;  %v861_v59 = vmul.f32 0.70710677, %v783_v11  ;;  %v829_v54 = vmul.f32 0.5, %v783_v11 }
 0x218   :  { %2596 = verf.f32 %v858_v56  ;;  %v859_v17 = vmul.f32 0.70710677, %v775_v15  ;;  %v971_v1 = vpack.c.bf16 %v949_v13, %v948_v12  ;;  %v826_v55 = vmul.f32 0.5, %v3134_v57 }
 0x219   :  { %v2587_v3 = vpop.eup %2586  ;;  %2598 = verf.f32 %v861_v59  ;;  %v970_v19 = vpack.c.bf16 %v947_v60, %v946_v61  ;;  %v827_v50 = vmul.f32 0.5, %v775_v15 }
 0x21a   :  { %v2589_v18 = vpop.eup %2588  ;;  %v2336_v16 = vpop.f32.mrb[28].mxu1  ;;  %v920_v2 = vadd.f32 1.0, %v2587_v3  ;;  %2600 = verf.f32 %v859_v17 }
 0x21b   :  { %v796_v4 = vadd.f32 %v2336_v16, %v3063_v27  ;;  %v787_v21 = vpop.f32.mrb[29].mxu1  ;;  %v2591_v8 = vpop.eup %2590  ;;  %v918_v23 = vadd.f32 1.0, %v2589_v18  ;;  %2370 = vmatprep.mubr.bf16.mxu0 %v970_v19  ;;  %v2474_v19 = vld [vmem:[%s3920_s7] sm:$0xff]  }
 0x21c   :  { %v788_v20 = vadd.f32 %v3063_v27, %v787_v21  ;;  %v2337_v22 = vpop.f32.mrb[30].mxu1  ;;  %v2593_v26 = vpop.eup %2592  ;;  %v921_v31 = vadd.f32 1.0, %v2591_v8  ;;  %2371 = vmatmul.mubr.bf16.gmra.mrb[48].mxu0 %v971_v1  ;;  %v952_v42 = vmul.f32 %v920_v2, %v824_v9  ;;  %v2475_v2 = vld [vmem:[%s3920_s7 + $0x8] sm:$0xff]   ;;  %2386 = vmatprep.subr.bf16.mxu1 %v2474_v19  ;;  %v2477_v21 = vld [vmem:[%s3920_s7 + $0x18] sm:$0xff]   ;;  %v3168_v8 = vld [vmem:[%s3921_s6] ss:$0 sm:$0xff] }
 0x21d   :  { %v864_v33 = vmul.f32 0.70710677, %v796_v4  ;;  %v790_v36 = vpop.f32.mrb[31].mxu1  ;;  %v919_v39 = vadd.f32 1.0, %v2593_v26  ;;  %v799_v14 = vadd.f32 %v2337_v22, %v3063_v27  ;;  %v950_v32 = vmul.f32 %v918_v23, %v822_v28  ;;  %2387 = vmatpush3.bf16.msra.mxu1 %v2474_v19 }
 0x21e   :  { %v862_v40 = vmul.f32 0.70710677, %v788_v20  ;;  %v953_v43 = vmul.f32 %v921_v31, %v825_v30  ;;  %v791_v44 = vadd.f32 %v3063_v27, %v790_v36  ;;  %v832_v11 = vmul.f32 0.5, %v796_v4  ;;  %v2476_v4 = vld [vmem:[%s3920_s7 + $0x10] sm:$0xff]   ;;  %2388 = vmatprep.subr.bf16.mxu1 %v2475_v2 }
 0x21f   :  { %2602 = verf.f32 %v864_v33  ;;  %v951_v29 = vmul.f32 %v919_v39, %v823_v38  ;;  %v865_v25 = vmul.f32 0.70710677, %v799_v14  ;;  %v833_v13 = vmul.f32 0.5, %v799_v14 }
 0x220   :  { %2604 = verf.f32 %v862_v40  ;;  %v863_v46 = vmul.f32 0.70710677, %v791_v44  ;;  %v973_v48 = vpack.c.bf16 %v953_v43, %v952_v42  ;;  %v830_v57 = vmul.f32 0.5, %v788_v20 }
 0x221   :  { %v2595_v24 = vpop.eup %2594  ;;  %2606 = verf.f32 %v865_v25  ;;  %v972_v41 = vpack.c.bf16 %v951_v29, %v950_v32  ;;  %v831_v15 = vmul.f32 0.5, %v791_v44  ;;  %2389 = vmatpush3.bf16.msra.mxu1 %v2475_v2 }
 0x222   :  { %v2597_v49 = vpop.eup %2596  ;;  %v924_v45 = vadd.f32 1.0, %v2595_v24  ;;  %2608 = verf.f32 %v863_v46  ;;  %2390 = vmatprep.subr.bf16.mxu1 %v2476_v4 }
 0x223   :  { %v2599_v51 = vpop.eup %2598  ;;  %v922_v47 = vadd.f32 1.0, %v2597_v49  ;;  %2374 = vmatprep.mubr.bf16.mxu0 %v972_v41 }
 0x224   :  { %v2601_v35 = vpop.eup %2600  ;;  %v925_v27 = vadd.f32 1.0, %v2599_v51  ;;  %2375 = vmatmul.mubr.bf16.gmra.mrb[52].mxu0 %v973_v48  ;;  %v956_v58 = vmul.f32 %v924_v45, %v828_v34 }
 0x225   :  { %v923_v53 = vadd.f32 1.0, %v2601_v35  ;;  %v954_v62 = vmul.f32 %v922_v47, %v826_v55  ;;  %2391 = vmatpush3.bf16.msra.mxu1 %v2476_v4 }
 0x226   :  { %v957_v37 = vmul.f32 %v925_v27, %v829_v54  ;;  %2392 = vmatprep.subr.bf16.mxu1 %v2477_v21 }
 0x227   :  { %v955_v63 = vmul.f32 %v923_v53, %v827_v50 }
 0x228   :  { %v975_v5 = vpack.c.bf16 %v957_v37, %v956_v58 }
 0x229   :  { %v2603_v0 = vpop.eup %2602  ;;  %v974_v7 = vpack.c.bf16 %v955_v63, %v954_v62  ;;  %2393 = vmatpush3.bf16.msra.mxu1 %v2477_v21 }
 0x22a   :  { %v2605_v6 = vpop.eup %2604  ;;  %v928_v10 = vadd.f32 1.0, %v2603_v0 }
 0x22b   :  { %v2607_v56 = vpop.eup %2606  ;;  %v926_v12 = vadd.f32 1.0, %v2605_v6  ;;  %2378 = vmatprep.mubr.bf16.mxu0 %v974_v7 }
 0x22c   :  { %v2609_v52 = vpop.eup %2608  ;;  %v929_v61 = vadd.f32 1.0, %v2607_v56  ;;  %2379 = vmatmul.mubr.bf16.gmra.mrb[56].mxu0 %v975_v5  ;;  %v960_v59 = vmul.f32 %v928_v10, %v832_v11 }
 0x22d   :  { %v927_v60 = vadd.f32 1.0, %v2609_v52  ;;  %v958_v17 = vmul.f32 %v926_v12, %v830_v57 }
 0x22e   :  { %v961_v3 = vmul.f32 %v929_v61, %v833_v13 }
 0x22f   :  { %v959_v1 = vmul.f32 %v927_v60, %v831_v15 }
 0x230   :  { %v977_v18 = vpack.c.bf16 %v961_v3, %v960_v59 }
 0x231   :  { %v976_v16 = vpack.c.bf16 %v959_v1, %v958_v17 }
 0x233   :  { %2382 = vmatprep.mubr.bf16.mxu0 %v976_v16 }
 0x234   :  { %2383 = vmatmul.mubr.bf16.gmra.mrb[60].mxu0 %v977_v18 }
 0x2cf   :  { %v2356_v9 = vpop.f32.mrb[32].mxu0 }
 0x2d0   :  { %v1092_v23 = vadd.f32 %v2356_v9, %v3168_v8  ;;  %v1083_v20 = vpop.f32.mrb[33].mxu0 }
 0x2d1   :  { %v1084_v22 = vadd.f32 %v3168_v8, %v1083_v20  ;;  %v2357_v26 = vpop.f32.mrb[34].mxu0 }
 0x2d2   :  { %v1244_v28 = vmul.f32 0.70710677, %v1092_v23  ;;  %v1095_v30 = vadd.f32 %v2357_v26, %v3168_v8  ;;  %v1086_v31 = vpop.f32.mrb[35].mxu0  ;;  %v1212_v51 = vmul.f32 0.5, %v1092_v23 }
 0x2d3   :  { %v1242_v33 = vmul.f32 0.70710677, %v1084_v22  ;;  %v1087_v36 = vadd.f32 %v3168_v8, %v1086_v31  ;;  %v1210_v34 = vmul.f32 0.5, %v1084_v22 }
 0x2d4   :  { %2610 = verf.f32 %v1244_v28  ;;  %v1245_v38 = vmul.f32 0.70710677, %v1095_v30  ;;  %v1213_v6 = vmul.f32 0.5, %v1095_v30 }
 0x2d5   :  { %2612 = verf.f32 %v1242_v33  ;;  %v1243_v39 = vmul.f32 0.70710677, %v1087_v36  ;;  %v1211_v52 = vmul.f32 0.5, %v1087_v36 }
 0x2d6   :  { %2614 = verf.f32 %v1245_v38 }
 0x2d7   :  { %2616 = verf.f32 %v1243_v39  ;;  %v2360_v40 = vpop.f32.mrb[36].mxu0 }
 0x2d8   :  { %v1108_v14 = vadd.f32 %v2360_v40, %v3168_v8  ;;  %v1099_v42 = vpop.f32.mrb[37].mxu0 }
 0x2d9   :  { %v1100_v43 = vadd.f32 %v3168_v8, %v1099_v42  ;;  %v2361_v44 = vpop.f32.mrb[38].mxu0 }
 0x2da   :  { %v1248_v32 = vmul.f32 0.70710677, %v1108_v14  ;;  %v3177_v29 = vadd.f32 %v2361_v44, %v3168_v8  ;;  %v1102_v25 = vpop.f32.mrb[39].mxu0  ;;  %v1216_v23 = vmul.f32 0.5, %v1108_v14 }
 0x2db   :  { %v1246_v24 = vmul.f32 0.70710677, %v1100_v43  ;;  %v3180_v46 = vadd.f32 %v3168_v8, %v1102_v25  ;;  %v1214_v1 = vmul.f32 0.5, %v1100_v43 }
 0x2dc   :  { %2618 = verf.f32 %v1248_v32  ;;  %v1249_v48 = vmul.f32 0.70710677, %v3177_v29  ;;  %v1217_v36 = vmul.f32 0.5, %v3177_v29 }
 0x2dd   :  { %2620 = verf.f32 %v1246_v24  ;;  %v1247_v49 = vmul.f32 0.70710677, %v3180_v46  ;;  %v1215_v38 = vmul.f32 0.5, %v3180_v46 }
 0x2de   :  { %v2611_v41 = vpop.eup %2610  ;;  %2622 = verf.f32 %v1249_v48 }
 0x2df   :  { %v2613_v45 = vpop.eup %2612  ;;  %2624 = verf.f32 %v1247_v49  ;;  %v1308_v47 = vadd.f32 1.0, %v2611_v41  ;;  %v2364_v54 = vpop.f32.mrb[40].mxu0 }
 0x2e0   :  { %v2615_v35 = vpop.eup %2614  ;;  %v1306_v27 = vadd.f32 1.0, %v2613_v45  ;;  %v3185_v50 = vadd.f32 %v2364_v54, %v3168_v8  ;;  %v1115_v53 = vpop.f32.mrb[41].mxu0 }
 0x2e1   :  { %v2617_v55 = vpop.eup %2616  ;;  %v3187_v58 = vmul.f32 %v1308_v47, %v1212_v51  ;;  %v1309_v37 = vadd.f32 1.0, %v2615_v35  ;;  %v3190_v62 = vadd.f32 %v3168_v8, %v1115_v53  ;;  %v2365_v63 = vpop.f32.mrb[42].mxu0 }
 0x2e2   :  { %v3192_v0 = vmul.f32 %v1306_v27, %v1210_v34  ;;  %v1307_v5 = vadd.f32 1.0, %v2617_v55  ;;  %v1252_v7 = vmul.f32 0.70710677, %v3185_v50  ;;  %v3196_v10 = vadd.f32 %v2365_v63, %v3168_v8  ;;  %v1118_v56 = vpop.f32.mrb[43].mxu0 }
 0x2e3   :  { %v1372_v12 = vmul.f32 %v3187_v58, %v3187_v58  ;;  %v1250_v11 = vmul.f32 0.70710677, %v3190_v62  ;;  %v3202_v13 = vadd.f32 %v3168_v8, %v1118_v56  ;;  %v3207_v15 = vmul.f32 %v1309_v37, %v1213_v6 }
 0x2e4   :  { %v1370_v61 = vmul.f32 %v3192_v0, %v3192_v0  ;;  %2626 = verf.f32 %v1252_v7  ;;  %v1253_v57 = vmul.f32 0.70710677, %v3196_v10  ;;  %v3210_v3 = vmul.f32 %v1307_v5, %v1211_v52 }
 0x2e5   :  { %1406 = vadd.xlane.f32.xlu1 %v1372_v12  ;;  %2628 = verf.f32 %v1250_v11  ;;  %v1251_v59 = vmul.f32 0.70710677, %v3202_v13  ;;  %v1373_v18 = vmul.f32 %v3207_v15, %v3207_v15  ;;  %v1218_v35 = vmul.f32 0.5, %v3190_v62 }
 0x2e6   :  { %v2619_v60 = vpop.eup %2618  ;;  %1402 = vadd.xlane.f32.xlu0 %v1370_v61  ;;  %2630 = verf.f32 %v1253_v57  ;;  %v1371_v2 = vmul.f32 %v3210_v3, %v3210_v3  ;;  %v1220_v37 = vmul.f32 0.5, %v3185_v50  ;;  %v1221_v63 = vmul.f32 0.5, %v3196_v10 }
 0x2e7   :  { %v2621_v17 = vpop.eup %2620  ;;  %2632 = verf.f32 %v1251_v59  ;;  %v2368_v19 = vpop.f32.mrb[44].mxu0  ;;  %v1312_v21 = vadd.f32 1.0, %v2619_v60  ;;  %v1219_v50 = vmul.f32 0.5, %v3202_v13 }
 0x2e8   :  { %v2623_v16 = vpop.eup %2622  ;;  %v1310_v4 = vadd.f32 1.0, %v2621_v17  ;;  %v3217_v20 = vadd.f32 %v2368_v19, %v3168_v8  ;;  %v1131_v22 = vpop.f32.mrb[45].mxu0 }
 0x2e9   :  { %v2625_v9 = vpop.eup %2624  ;;  %1408 = vadd.xlane.f32.xlu1 %v1373_v18  ;;  %v3220_v26 = vadd.f32 %v3168_v8, %v1131_v22  ;;  %v2369_v28 = vpop.f32.mrb[46].mxu0  ;;  %v1313_v33 = vadd.f32 1.0, %v2623_v16  ;;  %v3236_v32 = vmul.f32 %v1312_v21, %v1216_v23 }
 0x2ea   :  { %1404 = vadd.xlane.f32.xlu0 %v1371_v2  ;;  %v3222_v30 = vmul.f32 %v1310_v4, %v1214_v1  ;;  %v1311_v31 = vadd.f32 1.0, %v2625_v9  ;;  %v1256_v39 = vmul.f32 0.70710677, %v3217_v20  ;;  %v3228_v40 = vadd.f32 %v2369_v28, %v3168_v8  ;;  %v1134_v14 = vpop.f32.mrb[47].mxu0 }
 0x2eb   :  { %v1254_v42 = vmul.f32 0.70710677, %v3220_v26  ;;  %v3232_v43 = vadd.f32 %v3168_v8, %v1134_v14  ;;  %v3242_v46 = vmul.f32 %v1313_v33, %v1217_v36  ;;  %v1376_v51 = vmul.f32 %v3236_v32, %v3236_v32 }
 0x2ec   :  { %v1374_v44 = vmul.f32 %v3222_v30, %v3222_v30  ;;  %2634 = verf.f32 %v1256_v39  ;;  %v1257_v29 = vmul.f32 0.70710677, %v3228_v40  ;;  %v3239_v25 = vmul.f32 %v1311_v31, %v1215_v38 }
 0x2ed   :  { %2636 = verf.f32 %v1254_v42  ;;  %v1255_v24 = vmul.f32 0.70710677, %v3232_v43  ;;  %v1377_v62 = vmul.f32 %v3242_v46, %v3242_v46  ;;  %v1222_v2 = vmul.f32 0.5, %v3220_v26 }
 0x2ee   :  { %1410 = vadd.xlane.f32.xlu0 %v1374_v44  ;;  %v2627_v48 = vpop.eup %2626  ;;  %2638 = verf.f32 %v1257_v29  ;;  %v1375_v49 = vmul.f32 %v3239_v25, %v3239_v25  ;;  %v1224_v38 = vmul.f32 0.5, %v3217_v20  ;;  %v1223_v26 = vmul.f32 0.5, %v3232_v43 }
 0x2ef   :  { %v2629_v41 = vpop.eup %2628  ;;  %2640 = verf.f32 %v1255_v24  ;;  %v2372_v45 = vpop.f32.mrb[48].mxu0  ;;  %v1316_v55 = vadd.f32 1.0, %v2627_v48 }
 0x2f0   :  { %v2631_v47 = vpop.eup %2630  ;;  %v3250_v34 = vadd.f32 %v2372_v45, %v3168_v8  ;;  %v1147_v54 = vpop.f32.mrb[49].mxu0  ;;  %1412 = vadd.xlane.f32.xlu1 %v1375_v49  ;;  %v1314_v27 = vadd.f32 1.0, %v2629_v41 }
 0x2f1   :  { %v2633_v53 = vpop.eup %2632  ;;  %v3255_v5 = vadd.f32 %v3168_v8, %v1147_v54  ;;  %v2373_v6 = vpop.f32.mrb[50].mxu0  ;;  %v1317_v11 = vadd.f32 1.0, %v2631_v47  ;;  %v3273_v17 = vmul.f32 %v1316_v55, %v1220_v37 }
 0x2f2   :  { %1414 = vadd.xlane.f32.xlu0 %v1376_v51  ;;  %v1260_v7 = vmul.f32 0.70710677, %v3250_v34  ;;  %v3261_v56 = vadd.f32 %v2373_v6, %v3168_v8  ;;  %v1150_v12 = vpop.f32.mrb[51].mxu0  ;;  %v3263_v52 = vmul.f32 %v1314_v27, %v1218_v35  ;;  %v1315_v57 = vadd.f32 1.0, %v2633_v53 }
 0x2f3   :  { %v1258_v10 = vmul.f32 0.70710677, %v3255_v5  ;;  %v3268_v61 = vadd.f32 %v3168_v8, %v1150_v12  ;;  %v3278_v16 = vmul.f32 %v1317_v11, %v1221_v63  ;;  %v1380_v28 = vmul.f32 %v3273_v17, %v3273_v17 }
 0x2f4   :  { %2642 = verf.f32 %v1260_v7  ;;  %v1261_v60 = vmul.f32 0.70710677, %v3261_v56  ;;  %1416 = vadd.xlane.f32.xlu1 %v1377_v62  ;;  %v1378_v59 = vmul.f32 %v3263_v52, %v3263_v52  ;;  %v3276_v18 = vmul.f32 %v1315_v57, %v1219_v50 }
 0x2f5   :  { %2644 = verf.f32 %v1258_v10  ;;  %v1259_v1 = vmul.f32 0.70710677, %v3268_v61  ;;  %v1381_v24 = vmul.f32 %v3278_v16, %v3278_v16  ;;  %v1225_v35 = vmul.f32 0.5, %v3228_v40 }
 0x2f6   :  { %v2635_v13 = vpop.eup %2634  ;;  %2646 = verf.f32 %v1261_v60  ;;  %1418 = vadd.xlane.f32.xlu0 %v1378_v59  ;;  %v1379_v21 = vmul.f32 %v3276_v18, %v3276_v18  ;;  %v1226_v37 = vmul.f32 0.5, %v3255_v5  ;;  %v1228_v5 = vmul.f32 0.5, %v3250_v34 }
 0x2f7   :  { %v2637_v19 = vpop.eup %2636  ;;  %2648 = verf.f32 %v1259_v1  ;;  %v2376_v4 = vpop.f32.mrb[52].mxu0  ;;  %v1320_v33 = vadd.f32 1.0, %v2635_v13  ;;  %v1229_v60 = vmul.f32 0.5, %v3261_v56  ;;  %v1227_v59 = vmul.f32 0.5, %v3268_v61 }
 0x2f8   :  { %v2639_v9 = vpop.eup %2638  ;;  %v3284_v23 = vadd.f32 %v2376_v4, %v3168_v8  ;;  %v1163_v22 = vpop.f32.mrb[53].mxu0  ;;  %v1318_v31 = vadd.f32 1.0, %v2637_v19  ;;  %1420 = vadd.xlane.f32.xlu1 %v1379_v21 }
 0x2f9   :  { %v2641_v36 = vpop.eup %2640  ;;  %v3291_v39 = vadd.f32 %v3168_v8, %v1163_v22  ;;  %v2377_v14 = vpop.f32.mrb[54].mxu0  ;;  %v1321_v41 = vadd.f32 1.0, %v2639_v9  ;;  %v3308_v47 = vmul.f32 %v1320_v33, %v1224_v38 }
 0x2fa   :  { %v1264_v42 = vmul.f32 0.70710677, %v3284_v23  ;;  %v3295_v44 = vadd.f32 %v2377_v14, %v3168_v8  ;;  %v1166_v29 = vpop.f32.mrb[55].mxu0  ;;  %1422 = vadd.xlane.f32.xlu0 %v1380_v28  ;;  %v3299_v48 = vmul.f32 %v1318_v31, %v1222_v2  ;;  %v1319_v49 = vadd.f32 1.0, %v2641_v36 }
 0x2fb   :  { %v1262_v20 = vmul.f32 0.70710677, %v3291_v39  ;;  %v3303_v43 = vadd.f32 %v3168_v8, %v1166_v29  ;;  %v3317_v62 = vmul.f32 %v1321_v41, %v1225_v35  ;;  %v1384_v11 = vmul.f32 %v3308_v47, %v3308_v47 }
 0x2fc   :  { %2650 = verf.f32 %v1264_v42  ;;  %v1265_v45 = vmul.f32 0.70710677, %v3295_v44  ;;  %v1382_v51 = vmul.f32 %v3299_v48, %v3299_v48  ;;  %1424 = vadd.xlane.f32.xlu1 %v1381_v24  ;;  %v3312_v27 = vmul.f32 %v1319_v49, %v1223_v26 }
 0x2fd   :  { %2652 = verf.f32 %v1262_v20  ;;  %v1263_v54 = vmul.f32 0.70710677, %v3303_v43  ;;  %v1385_v61 = vmul.f32 %v3317_v62, %v3317_v62  ;;  %v1230_v29 = vmul.f32 0.5, %v3291_v39 }
 0x2fe   :  { %v2643_v55 = vpop.eup %2642  ;;  %2654 = verf.f32 %v1265_v45  ;;  %1426 = vadd.xlane.f32.xlu0 %v1382_v51  ;;  %v1383_v6 = vmul.f32 %v3312_v27, %v3312_v27 }
 0x2ff   :  { %v2645_v53 = vpop.eup %2644  ;;  %2656 = verf.f32 %v1263_v54  ;;  %v2380_v63 = vpop.f32.mrb[56].mxu0  ;;  %v1324_v10 = vadd.f32 1.0, %v2643_v55  ;;  %v2478_v55 = vld [vmem:[%s3920_s7 + $0x20] sm:$0xff]  }
 0x300   :  { %v2647_v40 = vpop.eup %2646  ;;  %v3320_v7 = vadd.f32 %v2380_v63, %v3168_v8  ;;  %v1179_v12 = vpop.f32.mrb[57].mxu0  ;;  %v1322_v50 = vadd.f32 1.0, %v2645_v53  ;;  %1428 = vadd.xlane.f32.xlu1 %v1383_v6  ;;  %v1232_v53 = vmul.f32 0.5, %v3284_v23  ;;  %2394 = vmatprep.subr.bf16.mxu1 %v2478_v55 }
 0x301   :  { %v2649_v57 = vpop.eup %2648  ;;  %v3328_v1 = vadd.f32 %v3168_v8, %v1179_v12  ;;  %v2381_v13 = vpop.f32.mrb[58].mxu0  ;;  %v1325_v9 = vadd.f32 1.0, %v2647_v40  ;;  %v3345_v33 = vmul.f32 %v1324_v10, %v1228_v5  ;;  %2395 = vmatpush3.bf16.msra.mxu1 %v2478_v55 }
 0x302   :  { %v1268_v19 = vmul.f32 0.70710677, %v3320_v7  ;;  %v3332_v2 = vadd.f32 %v2381_v13, %v3168_v8  ;;  %v1182_v4 = vpop.f32.mrb[59].mxu0  ;;  %1430 = vadd.xlane.f32.xlu0 %v1384_v11  ;;  %v3334_v21 = vmul.f32 %v1322_v50, %v1226_v37  ;;  %v1323_v22 = vadd.f32 1.0, %v2649_v57 }
 0x303   :  { %v1266_v34 = vmul.f32 0.70710677, %v3328_v1  ;;  %v3338_v56 = vadd.f32 %v3168_v8, %v1182_v4  ;;  %v3350_v14 = vmul.f32 %v1325_v9, %v1229_v60  ;;  %v1388_v51 = vmul.f32 %v3345_v33, %v3345_v33 }
 0x304   :  { %2658 = verf.f32 %v1268_v19  ;;  %v1269_v28 = vmul.f32 0.70710677, %v3332_v2  ;;  %v1386_v31 = vmul.f32 %v3334_v21, %v3334_v21  ;;  %1432 = vadd.xlane.f32.xlu1 %v1385_v61  ;;  %v3348_v38 = vmul.f32 %v1323_v22, %v1227_v59 }
 0x305   :  { %2660 = verf.f32 %v1266_v34  ;;  %v1267_v36 = vmul.f32 0.70710677, %v3338_v56  ;;  %v1231_v37 = vmul.f32 0.5, %v3303_v43  ;;  %v1389_v50 = vmul.f32 %v3350_v14, %v3350_v14 }
 0x306   :  { %v2651_v26 = vpop.eup %2650  ;;  %2662 = verf.f32 %v1269_v28  ;;  %1434 = vadd.xlane.f32.xlu0 %v1386_v31  ;;  %v1387_v20 = vmul.f32 %v3348_v38, %v3348_v38  ;;  %v1233_v19 = vmul.f32 0.5, %v3295_v44  ;;  %v1234_v31 = vmul.f32 0.5, %v3328_v1  ;;  %v2480_v1 = vld [vmem:[%s3920_s7 + $0x30] sm:$0xff]  }
 0x307   :  { %v2653_v42 = vpop.eup %2652  ;;  %2664 = verf.f32 %v1267_v36  ;;  %v2384_v24 = vpop.f32.mrb[60].mxu0  ;;  %v1328_v54 = vadd.f32 1.0, %v2651_v26 }
 0x308   :  { %v2655_v49 = vpop.eup %2654  ;;  %v3356_v41 = vadd.f32 %v2384_v24, %v3168_v8  ;;  %v1195_v45 = vpop.f32.mrb[61].mxu0  ;;  %v1326_v35 = vadd.f32 1.0, %v2653_v42  ;;  %1436 = vadd.xlane.f32.xlu1 %v1387_v20  ;;  %v1236_v24 = vmul.f32 0.5, %v3320_v7  ;;  %v1235_v20 = vmul.f32 0.5, %v3338_v56 }
 0x309   :  { %v2657_v39 = vpop.eup %2656  ;;  %v1196_v63 = vadd.f32 %v3168_v8, %v1195_v45  ;;  %v2385_v6 = vpop.f32.mrb[62].mxu0  ;;  %v1329_v5 = vadd.f32 1.0, %v2655_v49  ;;  %v3378_v13 = vmul.f32 %v1328_v54, %v1232_v53  ;;  %v1237_v56 = vmul.f32 0.5, %v3332_v2 }
 0x30a   :  { %v1272_v40 = vmul.f32 0.70710677, %v3356_v41  ;;  %v3368_v12 = vadd.f32 %v2385_v6, %v3168_v8  ;;  %v1198_v11 = vpop.f32.mrb[63].mxu0  ;;  %1438 = vadd.xlane.f32.xlu0 %v1388_v51  ;;  %v3372_v10 = vmul.f32 %v1326_v35, %v1230_v29  ;;  %v1327_v57 = vadd.f32 1.0, %v2657_v39 }
 0x30b   :  { %v1270_v23 = vmul.f32 0.70710677, %v1196_v63  ;;  %v1199_v43 = vadd.f32 %v3168_v8, %v1198_v11  ;;  %v2479_v8 = vld [vmem:[%s3920_s7 + $0x28] sm:$0xff]   ;;  %v3388_v28 = vmul.f32 %v1329_v5, %v1233_v19  ;;  %v1392_v36 = vmul.f32 %v3378_v13, %v3378_v13 }
 0x30c   :  { %2666 = verf.f32 %v1272_v40  ;;  %v1273_v60 = vmul.f32 0.70710677, %v3368_v12  ;;  %v1390_v59 = vmul.f32 %v3372_v10, %v3372_v10  ;;  %1440 = vadd.xlane.f32.xlu1 %v1389_v50  ;;  %v3381_v9 = vmul.f32 %v1327_v57, %v1231_v37  ;;  %2396 = vmatprep.subr.bf16.mxu1 %v2479_v8  ;;  %v2481_v37 = vld [vmem:[%s3920_s7 + $0x38] sm:$0xff]  }
 0x30d   :  { %2668 = verf.f32 %v1270_v23  ;;  %v1271_v4 = vmul.f32 0.70710677, %v1199_v43  ;;  %2397 = vmatpush3.bf16.msra.mxu1 %v2479_v8  ;;  %v1393_v51 = vmul.f32 %v3388_v28, %v3388_v28  ;;  %v1238_v50 = vmul.f32 0.5, %v1196_v63 }
 0x30e   :  { %v2659_v34 = vpop.eup %2658  ;;  %2670 = verf.f32 %v1273_v60  ;;  %1442 = vadd.xlane.f32.xlu0 %v1390_v59  ;;  %v1391_v22 = vmul.f32 %v3381_v9, %v3381_v9  ;;  %2398 = vmatprep.subr.bf16.mxu1 %v2480_v1  ;;  %v1240_v60 = vmul.f32 0.5, %v3356_v41  ;;  %v1239_v59 = vmul.f32 0.5, %v1199_v43 }
 0x30f   :  { %v2661_v61 = vpop.eup %2660  ;;  %2672 = verf.f32 %v1271_v4  ;;  %v1332_v42 = vadd.f32 1.0, %v2659_v34 }
 0x310   :  { %v2663_v44 = vpop.eup %2662  ;;  %v1330_v26 = vadd.f32 1.0, %v2661_v61  ;;  %1444 = vadd.xlane.f32.xlu1 %v1391_v22 }
 0x311   :  { %v2665_v29 = vpop.eup %2664  ;;  %v1333_v35 = vadd.f32 1.0, %v2663_v44  ;;  %v3406_v7 = vmul.f32 %v1332_v42, %v1236_v24  ;;  %2399 = vmatpush3.bf16.msra.mxu1 %v2480_v1  ;;  %v1241_v44 = vmul.f32 0.5, %v3368_v12 }
 0x312   :  { %1446 = vadd.xlane.f32.xlu0 %v1392_v36  ;;  %v3395_v49 = vmul.f32 %v1330_v26, %v1234_v31  ;;  %v1331_v45 = vadd.f32 1.0, %v2665_v29  ;;  %2400 = vmatprep.subr.bf16.mxu1 %v2481_v37 }
 0x313   :  { %v3414_v40 = vmul.f32 %v1333_v35, %v1237_v56  ;;  %v1396_v23 = vmul.f32 %v3406_v7, %v3406_v7 }
 0x314   :  { %v1394_v54 = vmul.f32 %v3395_v49, %v3395_v49  ;;  %v3404_v55 = vmul.f32 %v1331_v45, %v1235_v20  ;;  %1448 = vadd.xlane.f32.xlu1 %v1393_v51 }
 0x315   :  { %2401 = vmatpush3.bf16.msra.mxu1 %v2481_v37  ;;  %v1397_v34 = vmul.f32 %v3414_v40, %v3414_v40 }
 0x316   :  { %v2667_v39 = vpop.eup %2666  ;;  %1450 = vadd.xlane.f32.xlu0 %v1394_v54  ;;  %v1395_v53 = vmul.f32 %v3404_v55, %v3404_v55 }
 0x317   :  { %v2669_v6 = vpop.eup %2668  ;;  %v1336_v57 = vadd.f32 1.0, %v2667_v39 }
 0x318   :  { %v2671_v11 = vpop.eup %2670  ;;  %v1334_v2 = vadd.f32 1.0, %v2669_v6  ;;  %1452 = vadd.xlane.f32.xlu1 %v1395_v53 }
 0x319   :  { %v2673_v5 = vpop.eup %2672  ;;  %v1337_v63 = vadd.f32 1.0, %v2671_v11  ;;  %v3427_v22 = vmul.f32 %v1336_v57, %v1240_v60 }
 0x31a   :  { %1454 = vadd.xlane.f32.xlu0 %v1396_v23  ;;  %v3419_v19 = vmul.f32 %v1334_v2, %v1238_v50  ;;  %v1335_v4 = vadd.f32 1.0, %v2673_v5 }
 0x31b   :  { %v3432_v43 = vmul.f32 %v1337_v63, %v1241_v44  ;;  %v1400_v31 = vmul.f32 %v3427_v22, %v3427_v22 }
 0x31c   :  { %v1398_v8 = vmul.f32 %v3419_v19, %v3419_v19  ;;  %v3425_v61 = vmul.f32 %v1335_v4, %v1239_v59  ;;  %1456 = vadd.xlane.f32.xlu1 %v1397_v34 }
 0x31d   :  { %v1401_v36 = vmul.f32 %v3432_v43, %v3432_v43 }
 0x31e   :  { %1458 = vadd.xlane.f32.xlu0 %v1398_v8  ;;  %v1399_v41 = vmul.f32 %v3425_v61, %v3425_v61 }
 0x320   :  { %1460 = vadd.xlane.f32.xlu1 %v1399_v41 }
 0x322   :  { %1462 = vadd.xlane.f32.xlu0 %v1400_v31 }
 0x324   :  { %1464 = vadd.xlane.f32.xlu1 %v1401_v36 }
 0x372   :  { %v1407_v26 = vpop.xlane.xlu1 %1406 }
 0x373   :  { %2674 = vrsqrt.f32 %v1407_v26  ;;  %v1403_v42 = vpop.xlane.xlu0 %1402  ;;  %vm1482_vm0 = vcmp.eq.f32.partialorder %v1407_v26, inf  ;;  %vm1484_vm1 = vcmp.eq.f32.partialorder %v1407_v26, 0.0  ;;  %v1485_v35 = vand.u32 2147483648, %v1407_v26 }
 0x374   :  { %2676 = vrsqrt.f32 %v1403_v42  ;;  %vm1468_vm2 = vcmp.eq.f32.partialorder %v1403_v42, inf  ;;  %v1471_v53 = vand.u32 2147483648, %v1403_v42  ;;  %vm1470_vm3 = vcmp.eq.f32.partialorder %v1403_v42, 0.0 }
 0x376   :  { %v1409_v12 = vpop.xlane.xlu1 %1408 }
 0x377   :  { %2678 = vrsqrt.f32 %v1409_v12  ;;  %v1405_v29 = vpop.xlane.xlu0 %1404  ;;  %vm1489_vm4 = vcmp.eq.f32.partialorder %v1409_v12, inf  ;;  %vm1491_vm5 = vcmp.eq.f32.partialorder %v1409_v12, 0.0  ;;  %v1492_v4 = vand.u32 2147483648, %v1409_v12 }
 0x378   :  { %2680 = vrsqrt.f32 %v1405_v29  ;;  %vm1475_vm6 = vcmp.eq.f32.partialorder %v1405_v29, inf  ;;  %vm1477_vm7 = vcmp.eq.f32.partialorder %v1405_v29, 0.0  ;;  %v1478_v44 = vand.u32 2147483648, %v1405_v29 }
 0x37b   :  { %v1411_v24 = vpop.xlane.xlu0 %1410 }
 0x37c   :  { %2682 = vrsqrt.f32 %v1411_v24  ;;  %vm1496_vm8 = vcmp.eq.f32.partialorder %v1411_v24, inf  ;;  %vm1498_vm9 = vcmp.eq.f32.partialorder %v1411_v24, 0.0 }
 0x37d   :  { %v2675_v20 = vpop.eup %2674  ;;  %v3438_v51 = vpop.xlane.xlu1 %1412 }
 0x37e   :  { %v2677_v45 = vpop.eup %2676  ;;  %v1481_v1 = vmul.f32 %v2675_v20, %v1407_v26  ;;  %2684 = vrsqrt.f32 %v3438_v51  ;;  %vm1503_vm10 = vcmp.eq.f32.partialorder %v3438_v51, inf  ;;  %vm1505_vm11 = vcmp.eq.f32.partialorder %v3438_v51, 0.0 }
 0x37f   :  { %v1467_v54 = vmul.f32 %v2677_v45, %v1403_v42  ;;  %v3441_v56 = vpop.xlane.xlu0 %1414  ;;  %v1506_v20 = vand.u32 2147483648, %v3438_v51 }
 0x380   :  { %v1483_v39 = vsel %vm1482_vm0, %v1407_v26, %v1481_v1  ;;  %2686 = vrsqrt.f32 %v3441_v56  ;;  %v1499_v26 = vand.u32 2147483648, %v1411_v24  ;;  %vm1510_vm12 = vcmp.eq.f32.partialorder %v3441_v56, inf }
 0x381   :  { %v2679_v37 = vpop.eup %2678  ;;  %v1486_v6 = vsel %vm1484_vm1, %v1485_v35, %v1483_v39  ;;  %v1469_v11 = vsel %vm1468_vm2, %v1403_v42, %v1467_v54  ;;  %v3444_v57 = vpop.xlane.xlu1 %1416  ;;  %vm1512_vm13 = vcmp.eq.f32.partialorder %v3441_v56, 0.0 }
 0x382   :  { %v2681_v50 = vpop.eup %2680  ;;  %v1472_v23 = vsel %vm1470_vm3, %v1471_v53, %v1469_v11  ;;  %v1488_v2 = vmul.f32 %v2679_v37, %v1409_v12  ;;  %2688 = vrsqrt.f32 %v3444_v57  ;;  %v1692_v60 = vmax.f32 %v1486_v6, 1e-12 }
 0x383   :  { %v1474_v5 = vmul.f32 %v2681_v50, %v1405_v29  ;;  %v3447_v34 = vpop.xlane.xlu0 %1418  ;;  %v1690_v63 = vmax.f32 %v1472_v23, 1e-12  ;;  %v1513_v37 = vand.u32 2147483648, %v3441_v56  ;;  %vm1517_vm14 = vcmp.eq.f32.partialorder %v3444_v57, inf }
 0x384   :  { %v1490_v59 = vsel %vm1489_vm4, %v1409_v12, %v1488_v2  ;;  %2690 = vrsqrt.f32 %v3447_v34  ;;  %vm1519_vm15 = vcmp.eq.f32.partialorder %v3444_v57, 0.0  ;;  %vm1524_vm0 = vcmp.eq.f32.partialorder %v3447_v34, inf }
 0x385   :  { %v1476_v8 = vsel %vm1475_vm6, %v1405_v29, %v1474_v5  ;;  %v1493_v31 = vsel %vm1491_vm5, %v1492_v4, %v1490_v59  ;;  %v3452_v42 = vpop.xlane.xlu1 %1420  ;;  %2692 = vrcp.f32 %v1692_v60  ;;  %v1520_v4 = vand.u32 2147483648, %v3444_v57 }
 0x386   :  { %v2683_v41 = vpop.eup %2682  ;;  %v1479_v12 = vsel %vm1477_vm7, %v1478_v44, %v1476_v8  ;;  %2694 = vrcp.f32 %v1690_v63  ;;  %v1693_v1 = vmax.f32 %v1493_v31, 1e-12  ;;  %vm1526_vm1 = vcmp.eq.f32.partialorder %v3447_v34, 0.0 }
 0x387   :  { %v1495_v36 = vmul.f32 %v2683_v41, %v1411_v24  ;;  %v3456_v29 = vpop.xlane.xlu0 %1422  ;;  %2696 = vrsqrt.f32 %v3452_v42  ;;  %v1691_v6 = vmax.f32 %v1479_v12, 1e-12  ;;  %vm1531_vm2 = vcmp.eq.f32.partialorder %v3452_v42, inf }
 0x388   :  { %v2685_v45 = vpop.eup %2684  ;;  %2698 = vrsqrt.f32 %v3456_v29  ;;  %vm1533_vm3 = vcmp.eq.f32.partialorder %v3452_v42, 0.0  ;;  %vm1538_vm4 = vcmp.eq.f32.partialorder %v3456_v29, inf  ;;  %vm1540_vm5 = vcmp.eq.f32.partialorder %v3456_v29, 0.0 }
 0x389   :  { %v1497_v35 = vsel %vm1496_vm8, %v1411_v24, %v1495_v36  ;;  %v1502_v53 = vmul.f32 %v2685_v45, %v3438_v51  ;;  %v3467_v50 = vpop.xlane.xlu1 %1424 }
 0x38a   :  { %v2687_v54 = vpop.eup %2686  ;;  %v1500_v39 = vsel %vm1498_vm9, %v1499_v26, %v1497_v35  ;;  %2700 = vrsqrt.f32 %v3467_v50  ;;  %vm1545_vm6 = vcmp.eq.f32.partialorder %v3467_v50, inf  ;;  %vm1547_vm7 = vcmp.eq.f32.partialorder %v3467_v50, 0.0 }
 0x38b   :  { %v1509_v11 = vmul.f32 %v2687_v54, %v3441_v56  ;;  %v1694_v23 = vmax.f32 %v1500_v39, 1e-12  ;;  %v1504_v24 = vsel %vm1503_vm10, %v3438_v51, %v1502_v53  ;;  %v3474_v2 = vpop.xlane.xlu0 %1426  ;;  %2702 = vrcp.f32 %v1693_v1 }
 0x38c   :  { %v2689_v5 = vpop.eup %2688  ;;  %v1507_v60 = vsel %vm1505_vm11, %v1506_v20, %v1504_v24  ;;  %2704 = vrsqrt.f32 %v3474_v2  ;;  %v1527_v51 = vand.u32 2147483648, %v3447_v34  ;;  %v1534_v20 = vand.u32 2147483648, %v3452_v42 }
 0x38d   :  { %v1511_v59 = vsel %vm1510_vm12, %v3441_v56, %v1509_v11  ;;  %v1695_v63 = vmax.f32 %v1507_v60, 1e-12  ;;  %v1516_v44 = vmul.f32 %v2689_v5, %v3444_v57  ;;  %2706 = vrcp.f32 %v1691_v6  ;;  %v3489_v41 = vpop.xlane.xlu1 %1428 }
 0x38e   :  { %v1514_v8 = vsel %vm1512_vm13, %v1513_v37, %v1511_v59  ;;  %v2691_v31 = vpop.eup %2690  ;;  %2708 = vrcp.f32 %v1694_v23  ;;  %v1541_v1 = vand.u32 2147483648, %v3456_v29  ;;  %v1548_v6 = vand.u32 2147483648, %v3467_v50 }
 0x38f   :  { %v1696_v36 = vmax.f32 %v1514_v8, 1e-12  ;;  %v3493_v56 = vpop.xlane.xlu0 %1430  ;;  %2710 = vrcp.f32 %v1695_v63  ;;  %v1518_v26 = vsel %vm1517_vm14, %v3444_v57, %v1516_v44  ;;  %v1523_v12 = vmul.f32 %v2691_v31, %v3447_v34  ;;  %v3500_v45 = vpop.eup %2692 }
 0x390   :  { %2712 = vrsqrt.f32 %v3489_v41  ;;  %v2695_v35 = vpop.eup %2694  ;;  %v1521_v37 = vsel %vm1519_vm15, %v1520_v4, %v1518_v26  ;;  %vm1552_vm8 = vcmp.eq.f32.partialorder %v3474_v2, inf  ;;  %vm1554_vm9 = vcmp.eq.f32.partialorder %v3474_v2, 0.0 }
 0x391   :  { %v1525_v54 = vsel %vm1524_vm0, %v3447_v34, %v1523_v12  ;;  %2714 = vrsqrt.f32 %v3493_v56  ;;  %v3512_v39 = vpop.xlane.xlu1 %1432  ;;  %v2697_v53 = vpop.eup %2696  ;;  %v1555_v59 = vand.u32 2147483648, %v3474_v2  ;;  %vm1559_vm10 = vcmp.eq.f32.partialorder %v3489_v41, inf }
 0x392   :  { %2716 = vrcp.f32 %v1696_v36  ;;  %v2699_v23 = vpop.eup %2698  ;;  %v1528_v24 = vsel %vm1526_vm1, %v1527_v51, %v1525_v54  ;;  %v1530_v5 = vmul.f32 %v2697_v53, %v3452_v42  ;;  %v1697_v63 = vmax.f32 %v1521_v37, 1e-12 }
 0x393   :  { %v3518_v11 = vpop.xlane.xlu0 %1434  ;;  %2718 = vrsqrt.f32 %v3512_v39  ;;  %v1537_v57 = vmul.f32 %v2699_v23, %v3456_v29  ;;  %vm1561_vm11 = vcmp.eq.f32.partialorder %v3489_v41, 0.0  ;;  %v1562_v44 = vand.u32 2147483648, %v3489_v41 }
 0x394   :  { %v2701_v60 = vpop.eup %2700  ;;  %2720 = vrsqrt.f32 %v3518_v11  ;;  %v1532_v34 = vsel %vm1531_vm2, %v3452_v42, %v1530_v5  ;;  %v1698_v36 = vmax.f32 %v1528_v24, 1e-12  ;;  %vm1566_vm12 = vcmp.eq.f32.partialorder %v3493_v56, inf }
 0x395   :  { %v3529_v4 = vpop.eup %2702  ;;  %v1544_v8 = vmul.f32 %v2701_v60, %v3467_v50  ;;  %v3537_v51 = vpop.xlane.xlu1 %1436  ;;  %v1535_v26 = vsel %vm1533_vm3, %v1534_v20, %v1532_v34  ;;  %v1539_v12 = vsel %vm1538_vm4, %v3456_v29, %v1537_v57  ;;  %vm1568_vm13 = vcmp.eq.f32.partialorder %v3493_v56, 0.0 }
 0x396   :  { %v2705_v31 = vpop.eup %2704  ;;  %2722 = vrsqrt.f32 %v3537_v51  ;;  %v1699_v37 = vmax.f32 %v1535_v26, 1e-12  ;;  %v1542_v23 = vsel %vm1540_vm5, %v1541_v1, %v1539_v12  ;;  %v1569_v5 = vand.u32 2147483648, %v3493_v56 }
 0x397   :  { %v3545_v54 = vpop.xlane.xlu0 %1438  ;;  %v2707_v53 = vpop.eup %2706  ;;  %v1546_v24 = vsel %vm1545_vm6, %v3467_v50, %v1544_v8  ;;  %v1551_v42 = vmul.f32 %v2705_v31, %v3474_v2  ;;  %v1723_v60 = vmul.f32 %v2695_v35, %v3192_v0  ;;  %2724 = vrcp.f32 %v1697_v63 }
 0x398   :  { %v3553_v20 = vpop.eup %2708  ;;  %v1700_v29 = vmax.f32 %v1542_v23, 1e-12  ;;  %vm1573_vm14 = vcmp.eq.f32.partialorder %v3512_v39, inf  ;;  %2726 = vrcp.f32 %v1698_v36  ;;  %v1549_v31 = vsel %vm1547_vm7, %v1548_v6, %v1546_v24 }
 0x399   :  { %v3559_v57 = vpop.eup %2710  ;;  %v1553_v1 = vsel %vm1552_vm8, %v3474_v2, %v1551_v42  ;;  %v3565_v34 = vpop.xlane.xlu1 %1440  ;;  %vm1575_vm15 = vcmp.eq.f32.partialorder %v3512_v39, 0.0  ;;  %v1576_v0 = vand.u32 2147483648, %v3512_v39  ;;  %2728 = vrcp.f32 %v1699_v37 }
 0x39a   :  { %v2713_v8 = vpop.eup %2712  ;;  %vm1580_vm0 = vcmp.eq.f32.partialorder %v3518_v11, inf  ;;  %v1725_v12 = vmul.f32 %v2707_v53, %v3210_v3  ;;  %v1556_v50 = vsel %vm1554_vm9, %v1555_v59, %v1553_v1  ;;  %vm1582_vm1 = vcmp.eq.f32.partialorder %v3518_v11, 0.0 }
 0x39b   :  { %v3571_v35 = vpop.xlane.xlu0 %1442  ;;  %v2715_v63 = vpop.eup %2714  ;;  %v1558_v26 = vmul.f32 %v2713_v8, %v3489_v41  ;;  %2730 = vrsqrt.f32 %v3545_v54  ;;  %v1701_v37 = vmax.f32 %v1549_v31, 1e-12  ;;  %v1702_v8 = vmax.f32 %v1556_v50, 1e-12 }
 0x39c   :  { %v3576_v23 = vpop.eup %2716  ;;  %v1565_v6 = vmul.f32 %v2715_v63, %v3493_v56  ;;  %2732 = vrcp.f32 %v1700_v29  ;;  %v1786_v42 = vpack.c.bf16 %v1725_v12, %v1723_v60  ;;  %v1729_v12 = vmul.f32 %v3529_v4, %v3207_v15 }
 0x39d   :  { %v2719_v36 = vpop.eup %2718  ;;  %v1560_v24 = vsel %vm1559_vm10, %v3489_v41, %v1558_v26  ;;  %v3586_v3 = vpop.xlane.xlu1 %1444  ;;  %2734 = vrsqrt.f32 %v3565_v34  ;;  %v1727_v26 = vmul.f32 %v3500_v45, %v3187_v58  ;;  %v1583_v58 = vand.u32 2147483648, %v3518_v11 }
 0x39e   :  { %v2721_v53 = vpop.eup %2720  ;;  %v1563_v2 = vsel %vm1561_vm11, %v1562_v44, %v1560_v24  ;;  %v1567_v59 = vsel %vm1566_vm12, %v3493_v56, %v1565_v6  ;;  %v1572_v1 = vmul.f32 %v2719_v36, %v3512_v39  ;;  %2402 = vmatprep.mubr.bf16.mxu1 %v1786_v42  ;;  %2736 = vrsqrt.f32 %v3571_v35 }
 0x39f   :  { %v3595_v29 = vpop.xlane.xlu0 %1446  ;;  %v1703_v31 = vmax.f32 %v1563_v2, 1e-12  ;;  %v1570_v60 = vsel %vm1568_vm13, %v1569_v5, %v1567_v59  ;;  %v1579_v63 = vmul.f32 %v2721_v53, %v3518_v11  ;;  %2738 = vrcp.f32 %v1701_v37 }
 0x3a0   :  { %v2723_v41 = vpop.eup %2722  ;;  %v1574_v44 = vsel %vm1573_vm14, %v3512_v39, %v1572_v1  ;;  %v1704_v50 = vmax.f32 %v1570_v60, 1e-12  ;;  %vm1587_vm2 = vcmp.eq.f32.partialorder %v3537_v51, inf  ;;  %v1787_v15 = vpack.c.bf16 %v1729_v12, %v1727_v26 }
 0x3a1   :  { %v1577_v56 = vsel %vm1575_vm15, %v1576_v0, %v1574_v44  ;;  %v1581_v5 = vsel %vm1580_vm0, %v3518_v11, %v1579_v63  ;;  %v1586_v6 = vmul.f32 %v2723_v41, %v3537_v51  ;;  %v3614_v36 = vpop.xlane.xlu1 %1448  ;;  %v2725_v45 = vpop.eup %2724  ;;  %2740 = vrcp.f32 %v1702_v8 }
 0x3a2   :  { %v1705_v4 = vmax.f32 %v1577_v56, 1e-12  ;;  %vm1589_vm3 = vcmp.eq.f32.partialorder %v3537_v51, 0.0  ;;  %v3620_v0 = vpop.eup %2726  ;;  %2742 = vrcp.f32 %v1703_v31  ;;  %v1584_v24 = vsel %vm1582_vm1, %v1583_v58, %v1581_v5  ;;  %2403 = vmatmul.mubr.bf16.vlgmr.msra.gmra.mrb[32].mxu1 %v1787_v15 }
 0x3a3   :  { %v1588_v39 = vsel %vm1587_vm2, %v3537_v51, %v1586_v6  ;;  %v1590_v37 = vand.u32 2147483648, %v3537_v51  ;;  %vm1594_vm4 = vcmp.eq.f32.partialorder %v3545_v54, inf  ;;  %v3626_v42 = vpop.xlane.xlu0 %1450  ;;  %v2729_v53 = vpop.eup %2728  ;;  %2744 = vrcp.f32 %v1704_v50 }
 0x3a4   :  { %vm1596_vm5 = vcmp.eq.f32.partialorder %v3545_v54, 0.0  ;;  %v1597_v2 = vand.u32 2147483648, %v3545_v54  ;;  %vm1601_vm6 = vcmp.eq.f32.partialorder %v3565_v34, inf  ;;  %2746 = vrsqrt.f32 %v3586_v3 }
 0x3a5   :  { %v2731_v59 = vpop.eup %2730  ;;  %v1591_v1 = vsel %vm1589_vm3, %v1590_v37, %v1588_v39  ;;  %v1731_v11 = vmul.f32 %v3553_v20, %v3222_v30  ;;  %v1733_v51 = vmul.f32 %v3559_v57, %v3239_v25  ;;  %2748 = vrcp.f32 %v1705_v4  ;;  %v3640_v63 = vpop.xlane.xlu1 %1452 }
 0x3a6   :  { %v3636_v8 = vpop.eup %2732  ;;  %v1706_v31 = vmax.f32 %v1584_v24, 1e-12  ;;  %v1593_v60 = vmul.f32 %v2731_v59, %v3545_v54  ;;  %vm1603_vm7 = vcmp.eq.f32.partialorder %v3565_v34, 0.0  ;;  %v1604_v44 = vand.u32 2147483648, %v3565_v34 }
 0x3a7   :  { %v2735_v41 = vpop.eup %2734  ;;  %vm1608_vm8 = vcmp.eq.f32.partialorder %v3571_v35, inf  ;;  %v1788_v26 = vpack.c.bf16 %v1733_v51, %v1731_v11  ;;  %2750 = vrsqrt.f32 %v3595_v29  ;;  %v1707_v30 = vmax.f32 %v1591_v1, 1e-12  ;;  %v3655_v56 = vpop.xlane.xlu0 %1454 }
 0x3a8   :  { %v1600_v25 = vmul.f32 %v2735_v41, %v3565_v34  ;;  %vm1610_vm9 = vcmp.eq.f32.partialorder %v3571_v35, 0.0  ;;  %2752 = vrsqrt.f32 %v3614_v36  ;;  %v2737_v20 = vpop.eup %2736  ;;  %v1595_v57 = vsel %vm1594_vm4, %v3545_v54, %v1593_v60 }
 0x3a9   :  { %2406 = vmatprep.mubr.bf16.mxu1 %v1788_v26  ;;  %v1735_v12 = vmul.f32 %v3576_v23, %v3236_v32  ;;  %v1737_v50 = vmul.f32 %v2725_v45, %v3242_v46  ;;  %2754 = vrsqrt.f32 %v3626_v42  ;;  %v1607_v5 = vmul.f32 %v2737_v20, %v3571_v35  ;;  %v2739_v58 = vpop.eup %2738  ;;  %v3671_v4 = vpop.xlane.xlu1 %1456 }
 0x3aa   :  { %2756 = vrcp.f32 %v1706_v31  ;;  %v1611_v6 = vand.u32 2147483648, %v3571_v35  ;;  %vm1615_vm10 = vcmp.eq.f32.partialorder %v3586_v3, inf  ;;  %v1602_v15 = vsel %vm1601_vm6, %v3565_v34, %v1600_v25 }
 0x3ab   :  { %vm1617_vm11 = vcmp.eq.f32.partialorder %v3586_v3, 0.0  ;;  %v1618_v32 = vand.u32 2147483648, %v3586_v3  ;;  %v1789_v46 = vpack.c.bf16 %v1737_v50, %v1735_v12  ;;  %v3665_v23 = vpop.eup %2740  ;;  %2758 = vrcp.f32 %v1707_v30  ;;  %v3692_v60 = vpop.xlane.xlu0 %1458 }
 0x3ac   :  { %v1598_v45 = vsel %vm1596_vm5, %v1597_v2, %v1595_v57  ;;  %vm1622_vm12 = vcmp.eq.f32.partialorder %v3595_v29, inf  ;;  %vm1624_vm13 = vcmp.eq.f32.partialorder %v3595_v29, 0.0  ;;  %v3673_v39 = vpop.eup %2742  ;;  %v1609_v24 = vsel %vm1608_vm8, %v3571_v35, %v1607_v5 }
 0x3ad   :  { %v1625_v37 = vand.u32 2147483648, %v3595_v29  ;;  %vm1629_vm14 = vcmp.eq.f32.partialorder %v3614_v36, inf  ;;  %2407 = vmatmul.mubr.bf16.gmra.mrb[36].mxu1 %v1789_v46  ;;  %2760 = vrsqrt.f32 %v3640_v63  ;;  %v3681_v54 = vpop.eup %2744  ;;  %v1605_v2 = vsel %vm1603_vm7, %v1604_v44, %v1602_v15  ;;  %v3710_v57 = vpop.xlane.xlu1 %1460 }
 0x3ae   :  { %vm1631_vm15 = vcmp.eq.f32.partialorder %v3614_v36, 0.0  ;;  %v1739_v59 = vmul.f32 %v3620_v0, %v3263_v52  ;;  %v1741_v1 = vmul.f32 %v2729_v53, %v3276_v18  ;;  %v2747_v11 = vpop.eup %2746  ;;  %v1708_v51 = vmax.f32 %v1598_v45, 1e-12 }
 0x3af   :  { %v1632_v31 = vand.u32 2147483648, %v3614_v36  ;;  %vm1636_vm0 = vcmp.eq.f32.partialorder %v3626_v42, inf  ;;  %2762 = vrsqrt.f32 %v3655_v56  ;;  %v3694_v41 = vpop.eup %2748  ;;  %v1612_v34 = vsel %vm1610_vm9, %v1611_v6, %v1609_v24 }
 0x3b0   :  { %v1614_v44 = vmul.f32 %v2747_v11, %v3586_v3  ;;  %vm1638_vm1 = vcmp.eq.f32.partialorder %v3626_v42, 0.0  ;;  %v1790_v52 = vpack.c.bf16 %v1741_v1, %v1739_v59  ;;  %v1709_v0 = vmax.f32 %v1605_v2, 1e-12  ;;  %v3740_v1 = vpop.xlane.xlu0 %1462 }
 0x3b1   :  { %v2751_v18 = vpop.eup %2750  ;;  %v1639_v53 = vand.u32 2147483648, %v3626_v42  ;;  %2764 = vrsqrt.f32 %v3671_v4  ;;  %v1743_v26 = vmul.f32 %v3636_v8, %v3273_v17  ;;  %v1745_v20 = vmul.f32 %v2739_v58, %v3278_v16 }
 0x3b2   :  { %v2753_v30 = vpop.eup %2752  ;;  %v1616_v35 = vsel %vm1615_vm10, %v3586_v3, %v1614_v44  ;;  %v1621_v25 = vmul.f32 %v2751_v18, %v3595_v29  ;;  %2410 = vmatprep.mubr.bf16.mxu1 %v1790_v52  ;;  %2766 = vrsqrt.f32 %v3692_v60  ;;  %v1710_v50 = vmax.f32 %v1612_v34, 1e-12  ;;  %v3748_v52 = vpop.xlane.xlu1 %1464 }
 0x3b3   :  { %v2755_v12 = vpop.eup %2754  ;;  %2768 = vrcp.f32 %v1708_v51  ;;  %v1619_v17 = vsel %vm1617_vm11, %v1618_v32, %v1616_v35  ;;  %v1628_v8 = vmul.f32 %v2753_v30, %v3614_v36  ;;  %v1791_v58 = vpack.c.bf16 %v1745_v20, %v1743_v26 }
 0x3b4   :  { %v3715_v5 = vpop.eup %2756  ;;  %v1711_v6 = vmax.f32 %v1619_v17, 1e-12  ;;  %v1623_v15 = vsel %vm1622_vm12, %v3595_v29, %v1621_v25  ;;  %v1635_v16 = vmul.f32 %v2755_v12, %v3626_v42  ;;  %vm1643_vm2 = vcmp.eq.f32.partialorder %v3640_v63, inf }
 0x3b5   :  { %v1626_v46 = vsel %vm1624_vm13, %v1625_v37, %v1623_v15  ;;  %v1630_v3 = vsel %vm1629_vm14, %v3614_v36, %v1628_v8  ;;  %2770 = vrsqrt.f32 %v3710_v57  ;;  %v2759_v32 = vpop.eup %2758  ;;  %2411 = vmatmul.mubr.bf16.gmra.mrb[40].mxu1 %v1791_v58  ;;  %vm1645_vm3 = vcmp.eq.f32.partialorder %v3640_v63, 0.0 }
 0x3b6   :  { %2772 = vrcp.f32 %v1709_v0  ;;  %v1712_v45 = vmax.f32 %v1626_v46, 1e-12  ;;  %v1633_v24 = vsel %vm1631_vm15, %v1632_v31, %v1630_v3  ;;  %v1637_v2 = vsel %vm1636_vm0, %v3626_v42, %v1635_v16 }
 0x3b7   :  { %v2761_v29 = vpop.eup %2760  ;;  %2774 = vrcp.f32 %v1711_v6  ;;  %v1646_v37 = vand.u32 2147483648, %v3640_v63  ;;  %vm1650_vm4 = vcmp.eq.f32.partialorder %v3655_v56, inf  ;;  %vm1652_vm5 = vcmp.eq.f32.partialorder %v3655_v56, 0.0 }
 0x3b8   :  { %2776 = vrcp.f32 %v1710_v50  ;;  %v1642_v59 = vmul.f32 %v2761_v29, %v3640_v63  ;;  %v1653_v36 = vand.u32 2147483648, %v3655_v56  ;;  %vm1657_vm6 = vcmp.eq.f32.partialorder %v3671_v4, inf }
 0x3b9   :  { %v2763_v11 = vpop.eup %2762  ;;  %v1713_v51 = vmax.f32 %v1633_v24, 1e-12  ;;  %v1640_v31 = vsel %vm1638_vm1, %v1639_v53, %v1637_v2  ;;  %v1747_v34 = vmul.f32 %v3665_v23, %v3299_v48  ;;  %v1749_v44 = vmul.f32 %v3673_v39, %v3312_v27 }
 0x3ba   :  { %2778 = vrcp.f32 %v1712_v45  ;;  %v1644_v18 = vsel %vm1643_vm2, %v3640_v63, %v1642_v59  ;;  %v1649_v0 = vmul.f32 %v2763_v11, %v3655_v56  ;;  %vm1659_vm7 = vcmp.eq.f32.partialorder %v3671_v4, 0.0 }
 0x3bb   :  { %v2765_v26 = vpop.eup %2764  ;;  %v1647_v42 = vsel %vm1645_vm3, %v1646_v37, %v1644_v18  ;;  %v1660_v48 = vand.u32 2147483648, %v3671_v4  ;;  %v1792_v23 = vpack.c.bf16 %v1749_v44, %v1747_v34  ;;  %2780 = vrsqrt.f32 %v3740_v1 }
 0x3bc   :  { %v2767_v27 = vpop.eup %2766  ;;  %v1714_v39 = vmax.f32 %v1640_v31, 1e-12  ;;  %v1715_v53 = vmax.f32 %v1647_v42, 1e-12  ;;  %v1656_v30 = vmul.f32 %v2765_v26, %v3671_v4  ;;  %2782 = vrsqrt.f32 %v3748_v52 }
 0x3bd   :  { %v2769_v35 = vpop.eup %2768  ;;  %2784 = vrcp.f32 %v1713_v51  ;;  %v1663_v25 = vmul.f32 %v2767_v27, %v3692_v60  ;;  %vm1664_vm8 = vcmp.eq.f32.partialorder %v3692_v60, inf  ;;  %vm1666_vm9 = vcmp.eq.f32.partialorder %v3692_v60, 0.0  ;;  %2414 = vmatprep.mubr.bf16.mxu1 %v1792_v23 }
 0x3be   :  { %2786 = vrcp.f32 %v1715_v53  ;;  %v1651_v63 = vsel %vm1650_vm4, %v3655_v56, %v1649_v0  ;;  %v1658_v20 = vsel %vm1657_vm6, %v3671_v4, %v1656_v30  ;;  %v1667_v12 = vand.u32 2147483648, %v3692_v60 }
 0x3bf   :  { %v2771_v50 = vpop.eup %2770  ;;  %v1661_v17 = vsel %vm1659_vm7, %v1660_v48, %v1658_v20  ;;  %v1665_v8 = vsel %vm1664_vm8, %v3692_v60, %v1663_v25  ;;  %v1751_v6 = vmul.f32 %v3681_v54, %v3308_v47  ;;  %v1753_v15 = vmul.f32 %v3694_v41, %v3317_v62 }
 0x3c0   :  { %v2773_v16 = vpop.eup %2772  ;;  %2788 = vrcp.f32 %v1714_v39  ;;  %v1670_v58 = vmul.f32 %v2771_v50, %v3710_v57  ;;  %vm1671_vm10 = vcmp.eq.f32.partialorder %v3710_v57, inf  ;;  %v1674_v46 = vand.u32 2147483648, %v3710_v57 }
 0x3c1   :  { %v2775_v3 = vpop.eup %2774  ;;  %v1654_v4 = vsel %vm1652_vm5, %v1653_v36, %v1651_v63  ;;  %v1793_v45 = vpack.c.bf16 %v1753_v15, %v1751_v6  ;;  %v1755_v24 = vmul.f32 %v3715_v5, %v3334_v21  ;;  %v1757_v47 = vmul.f32 %v2759_v32, %v3348_v38 }
 0x3c2   :  { %v2777_v54 = vpop.eup %2776  ;;  %v1717_v62 = vmax.f32 %v1661_v17, 1e-12  ;;  %v1668_v41 = vsel %vm1666_vm9, %v1667_v12, %v1665_v8  ;;  %v1672_v2 = vsel %vm1671_vm10, %v3710_v57, %v1670_v58  ;;  %vm1673_vm11 = vcmp.eq.f32.partialorder %v3710_v57, 0.0 }
 0x3c3   :  { %v1675_v29 = vsel %vm1673_vm11, %v1674_v46, %v1672_v2  ;;  %2415 = vmatmul.mubr.bf16.gmra.mrb[44].mxu1 %v1793_v45  ;;  %v1794_v37 = vpack.c.bf16 %v1757_v47, %v1755_v24  ;;  %v1761_v56 = vmul.f32 %v2773_v16, %v3350_v14  ;;  %v1716_v36 = vmax.f32 %v1654_v4, 1e-12 }
 0x3c4   :  { %v2779_v59 = vpop.eup %2778  ;;  %v1719_v11 = vmax.f32 %v1675_v29, 1e-12  ;;  %v1765_v21 = vmul.f32 %v2775_v3, %v3381_v9  ;;  %v1718_v5 = vmax.f32 %v1668_v41, 1e-12  ;;  %vm1678_vm12 = vcmp.eq.f32.partialorder %v3740_v1, inf }
 0x3c5   :  { %v2781_v38 = vpop.eup %2780  ;;  %vm1680_vm13 = vcmp.eq.f32.partialorder %v3740_v1, 0.0  ;;  %2418 = vmatprep.mubr.bf16.mxu1 %v1794_v37  ;;  %v1759_v60 = vmul.f32 %v2769_v35, %v3345_v33  ;;  %2790 = vrcp.f32 %v1717_v62  ;;  %v1681_v14 = vand.u32 2147483648, %v3740_v1 }
 0x3c6   :  { %v2783_v57 = vpop.eup %2782  ;;  %v1677_v32 = vmul.f32 %v2781_v38, %v3740_v1  ;;  %v1763_v51 = vmul.f32 %v2777_v54, %v3372_v10  ;;  %2792 = vrcp.f32 %v1719_v11  ;;  %vm1685_vm14 = vcmp.eq.f32.partialorder %v3748_v52, inf }
 0x3c7   :  { %v2785_v31 = vpop.eup %2784  ;;  %v1684_v9 = vmul.f32 %v2783_v57, %v3748_v52  ;;  %v1795_v34 = vpack.c.bf16 %v1761_v56, %v1759_v60  ;;  %2794 = vrcp.f32 %v1716_v36  ;;  %v1688_v18 = vand.u32 2147483648, %v3748_v52 }
 0x3c8   :  { %v2787_v44 = vpop.eup %2786  ;;  %v1679_v33 = vsel %vm1678_vm12, %v3740_v1, %v1677_v32  ;;  %v1796_v0 = vpack.c.bf16 %v1765_v21, %v1763_v51  ;;  %2796 = vrcp.f32 %v1718_v5  ;;  %vm1687_vm15 = vcmp.eq.f32.partialorder %v3748_v52, 0.0 }
 0x3c9   :  { %v1682_v10 = vsel %vm1680_vm13, %v1681_v14, %v1679_v33  ;;  %v1686_v26 = vsel %vm1685_vm14, %v3748_v52, %v1684_v9  ;;  %v1769_v27 = vmul.f32 %v2785_v31, %v3388_v28  ;;  %v1773_v53 = vmul.f32 %v2787_v44, %v3404_v55 }
 0x3ca   :  { %v2789_v42 = vpop.eup %2788  ;;  %v1689_v48 = vsel %vm1687_vm15, %v1688_v18, %v1686_v26  ;;  %v1720_v39 = vmax.f32 %v1682_v10, 1e-12  ;;  %v1767_v30 = vmul.f32 %v2779_v59, %v3378_v13 }
 0x3cb   :  { %v1721_v23 = vmax.f32 %v1689_v48, 1e-12  ;;  %2419 = vmatmul.mubr.bf16.gmra.mrb[48].mxu1 %v1795_v34  ;;  %v1771_v1 = vmul.f32 %v2789_v42, %v3395_v49 }
 0x3cc   :  { %2422 = vmatprep.mubr.bf16.mxu1 %v1796_v0  ;;  %v1797_v35 = vpack.c.bf16 %v1769_v27, %v1767_v30 }
 0x3cd   :  { %2798 = vrcp.f32 %v1721_v23  ;;  %v1798_v63 = vpack.c.bf16 %v1773_v53, %v1771_v1 }
 0x3ce   :  { %2800 = vrcp.f32 %v1720_v39 }
 0x3cf   :  { %v2791_v25 = vpop.eup %2790 }
 0x3d0   :  { %v2793_v52 = vpop.eup %2792  ;;  %v1777_v50 = vmul.f32 %v2791_v25, %v3414_v40 }
 0x3d1   :  { %v2795_v20 = vpop.eup %2794  ;;  %v1781_v28 = vmul.f32 %v2793_v52, %v3425_v61 }
 0x3d2   :  { %v2797_v12 = vpop.eup %2796  ;;  %v1775_v55 = vmul.f32 %v2795_v20, %v3406_v7 }
 0x3d3   :  { %2423 = vmatmul.mubr.bf16.gmra.mrb[52].mxu1 %v1797_v35  ;;  %v1779_v13 = vmul.f32 %v2797_v12, %v3419_v19 }
 0x3d4   :  { %2426 = vmatprep.mubr.bf16.mxu1 %v1798_v63  ;;  %v1799_v17 = vpack.c.bf16 %v1777_v50, %v1775_v55 }
 0x3d5   :  { %v1800_v49 = vpack.c.bf16 %v1781_v28, %v1779_v13 }
 0x3d7   :  { %v2799_v8 = vpop.eup %2798 }
 0x3d8   :  { %v2801_v6 = vpop.eup %2800  ;;  %v1785_v15 = vmul.f32 %v2799_v8, %v3432_v43 }
 0x3d9   :  { %v1783_v16 = vmul.f32 %v2801_v6, %v3427_v22 }
 0x3db   :  { %2427 = vmatmul.mubr.bf16.gmra.mrb[56].mxu1 %v1799_v17  ;;  %v1801_v58 = vpack.c.bf16 %v1785_v15, %v1783_v16 }
 0x3dc   :  { %2430 = vmatprep.mubr.bf16.mxu1 %v1800_v49 }
 0x3e3   :  { %2431 = vmatmul.mubr.bf16.gmra.mrb[60].mxu1 %v1801_v58 }
 0x475   :  { %v2404_v40 = vpop.f32.mrb[32].mxu1 }
 0x476   :  { %2061 = vst [vmem:[%s3922_s8 + $0x10] sm:$0xff] %v2404_v40  ;;  %v1932_v7 = vpop.f32.mrb[33].mxu1 }
 0x477   :  { %2059 = vst [vmem:[%s3922_s8] sm:$0xff] %v1932_v7  ;;  %v2405_v19 = vpop.f32.mrb[34].mxu1 }
 0x478   :  { %2062 = vst [vmem:[%s3922_s8 + $0x18] sm:$0xff] %v2405_v19  ;;  %v1935_v61 = vpop.f32.mrb[35].mxu1 }
 0x479   :  { %2060 = vst [vmem:[%s3922_s8 + $0x8] sm:$0xff] %v1935_v61 }
 0x480   :  { %v2408_v22 = vpop.f32.mrb[36].mxu1 }
 0x481   :  { %2065 = vst [vmem:[%s3922_s8 + $0x30] sm:$0xff] %v2408_v22  ;;  %v1948_v43 = vpop.f32.mrb[37].mxu1 }
 0x482   :  { %2063 = vst [vmem:[%s3922_s8 + $0x20] sm:$0xff] %v1948_v43  ;;  %v2409_v46 = vpop.f32.mrb[38].mxu1 }
 0x483   :  { %2066 = vst [vmem:[%s3922_s8 + $0x38] sm:$0xff] %v2409_v46  ;;  %v1951_v3 = vpop.f32.mrb[39].mxu1 }
 0x484   :  { %2064 = vst [vmem:[%s3922_s8 + $0x28] sm:$0xff] %v1951_v3 }
 0x488   :  { %v2412_v4 = vpop.f32.mrb[40].mxu1 }
 0x489   :  { %2069 = vst [vmem:[%s3922_s8 + $0x50] sm:$0xff] %v2412_v4  ;;  %v1964_v45 = vpop.f32.mrb[41].mxu1 }
 0x48a   :  { %2067 = vst [vmem:[%s3922_s8 + $0x40] sm:$0xff] %v1964_v45  ;;  %v2413_v24 = vpop.f32.mrb[42].mxu1 }
 0x48b   :  { %2070 = vst [vmem:[%s3922_s8 + $0x58] sm:$0xff] %v2413_v24  ;;  %v1967_v47 = vpop.f32.mrb[43].mxu1 }
 0x48c   :  { %2068 = vst [vmem:[%s3922_s8 + $0x48] sm:$0xff] %v1967_v47 }
 0x496   :  { %v2416_v54 = vpop.f32.mrb[44].mxu1 }
 0x497   :  { %2073 = vst [vmem:[%s3922_s8 + $0x70] sm:$0xff] %v2416_v54  ;;  %v1980_v62 = vpop.f32.mrb[45].mxu1 }
 0x498   :  { %2071 = vst [vmem:[%s3922_s8 + $0x60] sm:$0xff] %v1980_v62  ;;  %v2417_v41 = vpop.f32.mrb[46].mxu1 }
 0x499   :  { %2074 = vst [vmem:[%s3922_s8 + $0x78] sm:$0xff] %v2417_v41  ;;  %v1983_v2 = vpop.f32.mrb[47].mxu1 }
 0x49a   :  { %2072 = vst [vmem:[%s3922_s8 + $0x68] sm:$0xff] %v1983_v2 }
 0x49e   :  { %v2420_v29 = vpop.f32.mrb[48].mxu1 }
 0x49f   :  { %2077 = vst [vmem:[%s3922_s8 + $0x90] sm:$0xff] %v2420_v29  ;;  %v1996_v37 = vpop.f32.mrb[49].mxu1 }
 0x4a0   :  { %2075 = vst [vmem:[%s3922_s8 + $0x80] sm:$0xff] %v1996_v37  ;;  %v2421_v56 = vpop.f32.mrb[50].mxu1 }
 0x4a1   :  { %2078 = vst [vmem:[%s3922_s8 + $0x98] sm:$0xff] %v2421_v56  ;;  %v1999_v59 = vpop.f32.mrb[51].mxu1 }
 0x4a2   :  { %2076 = vst [vmem:[%s3922_s8 + $0x88] sm:$0xff] %v1999_v59 }
 0x4a6   :  { %v2424_v36 = vpop.f32.mrb[52].mxu1 }
 0x4a7   :  { %2081 = vst [vmem:[%s3922_s8 + $0xb0] sm:$0xff] %v2424_v36  ;;  %v2012_v11 = vpop.f32.mrb[53].mxu1 }
 0x4a8   :  { %2079 = vst [vmem:[%s3922_s8 + $0xa0] sm:$0xff] %v2012_v11  ;;  %v2425_v21 = vpop.f32.mrb[54].mxu1 }
 0x4a9   :  { %2082 = vst [vmem:[%s3922_s8 + $0xb8] sm:$0xff] %v2425_v21  ;;  %v2015_v38 = vpop.f32.mrb[55].mxu1 }
 0x4aa   :  { %2080 = vst [vmem:[%s3922_s8 + $0xa8] sm:$0xff] %v2015_v38 }
 0x4ae   :  { %v2428_v5 = vpop.f32.mrb[56].mxu1 }
 0x4af   :  { %2085 = vst [vmem:[%s3922_s8 + $0xd0] sm:$0xff] %v2428_v5  ;;  %v2028_v60 = vpop.f32.mrb[57].mxu1 }
 0x4b0   :  { %2083 = vst [vmem:[%s3922_s8 + $0xc0] sm:$0xff] %v2028_v60  ;;  %v2429_v57 = vpop.f32.mrb[58].mxu1 }
 0x4b1   :  { %2086 = vst [vmem:[%s3922_s8 + $0xd8] sm:$0xff] %v2429_v57  ;;  %v2031_v32 = vpop.f32.mrb[59].mxu1 }
 0x4b2   :  { %2084 = vst [vmem:[%s3922_s8 + $0xc8] sm:$0xff] %v2031_v32 }
 0x4b6   :  { %v2432_v14 = vpop.f32.mrb[60].mxu1 }
 0x4b7   :  { %2089 = vst [vmem:[%s3922_s8 + $0xf0] sm:$0xff] %v2432_v14  ;;  %v2044_v51 = vpop.f32.mrb[61].mxu1 }
 0x4b8   :  { %2087 = vst [vmem:[%s3922_s8 + $0xe0] sm:$0xff] %v2044_v51  ;;  %v2433_v31 = vpop.f32.mrb[62].mxu1 }
 0x4b9   :  { %2090 = vst [vmem:[%s3922_s8 + $0xf8] sm:$0xff] %v2433_v31  ;;  %v2047_v9 = vpop.f32.mrb[63].mxu1 }
 0x4ba   :  { %2088 = vst [vmem:[%s3922_s8 + $0xe8] sm:$0xff] %v2047_v9 }

</bundles_post_ra>
